<compile_context>
chip_gen: v7x
topology: tpu7x:2x2x1
jax: 0.10.0
libtpu: 0.0.40
codegen_flags: <defaults>
</compile_context>

<pallas_src>
import functools

import jax
import jax.numpy as jnp
from jax.experimental import pallas as pl
from jax.experimental.pallas import tpu as pltpu

# ---- model config (SMALL shapes consistent with the module) -----------------
HIDDEN_LAYERS = 4          # `hidden_sizes` in the PyTorch module
INPUT_SIZE = 16 * 16       # lane-aligned stand-in for 28*28 = 784
OUTPUT_SIZE = 10
BATCH = 256                # >= 2 batch tiles on v7x so both TensorCores get work
LANE = 128
NEG_INF = -1e30


# ------------------------------ kernel ---------------------------------------
def _mlp_softmax_kernel(x_ref, wh_ref, bh_ref, wo_ref, bo_ref, out_ref,
                        *, num_hidden):
    """Fused forward: num_hidden x (Linear + ReLU) -> Linear -> softmax(dim=1).

    Shapes seen by the kernel (one batch tile, all feature dims lane-padded):
      x_ref  : (TILE_B, D)      f32   (cast to bf16 in-kernel for the MXU)
      wh_ref : (L, D, D)        bf16  stacked hidden weights, (in, out) layout
      bh_ref : (L, 1, D)        f32   stacked hidden biases
      wo_ref : (D, O_PAD)       bf16
      bo_ref : (1, O_PAD)       f32   padded lanes pre-set to -1e30 (softmax mask)
      out_ref: (TILE_B, O_PAD)  f32   lane-dense output; [:, :o_real] is valid
    """
    # In-kernel cast: avoids a separate wrapper-side XLA cast pass over x.
    go = x_ref[...].astype(jnp.bfloat16)                      # bf16 (TILE_B, D)

    # Hidden layers: go = relu(go @ W_l + b_l). Statically unrolled (L small).
    for l in range(num_hidden):
        y = jnp.dot(go, wh_ref[l], preferred_element_type=jnp.float32)  # f32 acc
        y = jnp.maximum(y + bh_ref[l], 0.0)                   # f32 bias + ReLU
        go = y.astype(jnp.bfloat16)                           # bf16 for next MXU

    # Output layer on a lane-dense 128-wide tile. bo already carries -1e30 in
    # the padded lanes (and the padded wo columns are zero), so no iota/where.
    logits = jnp.dot(go, wo_ref[...], preferred_element_type=jnp.float32)
    logits = logits + bo_ref[...]

    # Numerically stable softmax over the feature axis (PyTorch dim=1).
    m = jnp.max(logits, axis=-1, keepdims=True)
    e = jnp.exp(logits - m)
    denom = jnp.sum(e, axis=-1, keepdims=True)
    out_ref[...] = e * pl.reciprocal(denom, approx=True)      # EUP vrcp


# ------------------------------ helpers --------------------------------------
def _round_up(n, mult):
    return ((n + mult - 1) // mult) * mult


def _pad_axis(a, axis, mult):
    pad = (-a.shape[axis]) % mult
    if pad == 0:
        return a
    widths = [(0, 0)] * a.ndim
    widths[axis] = (0, pad)
    return jnp.pad(a, widths)


def _pick_tile_b(batch):
    """Generation-aware batch tile: grid=1 on single-TC chips, >=2 tiles on v7x."""
    try:
        kind = jax.devices()[0].device_kind.lower()
    except Exception:  # pragma: no cover - defensive
        kind = ""
    two_tensorcores = ("v7" in kind) or ("7x" in kind)
    batch8 = max(8, _round_up(batch, 8))        # keep (8,128) sublane alignment
    if two_tensorcores and batch >= 2 * LANE:
        return LANE                              # one 128-row tile per TensorCore
    return min(batch8, 512)                      # single grid step; cap VMEM use


def prepare_params(wh, bh, wo, bo):
    """One-time: lane-pad, cast weights to bf16, bake softmax pad mask into bo.

    wh: (L, D, D) f32 in (in, out) layout; bh: (L, 1, D); wo: (D, O); bo: (1, O).
    """
    o_real = wo.shape[1]

    wh_p = _pad_axis(_pad_axis(wh, 1, LANE), 2, LANE).astype(jnp.bfloat16)
    bh_p = _pad_axis(bh, 2, LANE).astype(jnp.float32)
    wo_p = _pad_axis(_pad_axis(wo, 0, LANE), 1, LANE).astype(jnp.bfloat16)
    bo_p = _pad_axis(bo, 1, LANE).astype(jnp.float32)

    # Padded wo columns are zero, so logits there equal bo; setting bo = -1e30
    # in those lanes masks them out of the softmax exactly (kept in f32).
    o_pad = bo_p.shape[1]
    lane_idx = jnp.arange(o_pad)[None, :]
    bo_p = jnp.where(lane_idx < o_real, bo_p, jnp.float32(NEG_INF))

    return (jax.device_put(wh_p), jax.device_put(bh_p),
            jax.device_put(wo_p), jax.device_put(bo_p), o_real)


# ------------------------------ pallas_call wrapper --------------------------
@functools.partial(jax.jit, static_argnames=("tile_b",))
def _forward_padded(x2d, wh_bf, bh_f, wo_bf, bo_f, *, tile_b):
    bp, d = x2d.shape
    num_hidden = wh_bf.shape[0]
    o_pad = wo_bf.shape[1]

    kernel = functools.partial(_mlp_softmax_kernel, num_hidden=num_hidden)

    flops = 2 * bp * (num_hidden * d * d + d * o_pad)
    bytes_accessed = (4 * bp * d                              # x (f32)
                      + 2 * num_hidden * d * d                # hidden weights bf16
                      + 4 * num_hidden * d                    # hidden biases f32
                      + 2 * d * o_pad + 4 * o_pad             # output layer
                      + 4 * bp * o_pad)                       # output f32

    return pl.pallas_call(
        kernel,
        out_shape=jax.ShapeDtypeStruct((bp, o_pad), jnp.float32),
        grid_spec=pltpu.PrefetchScalarGridSpec(
            num_scalar_prefetch=0,
            grid=(bp // tile_b,),
            in_specs=[
                pl.BlockSpec((tile_b, d), lambda i: (i, 0)),              # x tile
                pl.BlockSpec((num_hidden, d, d), lambda i: (0, 0, 0),
                             pipeline_mode=pl.Buffered(1)),               # Wh stack
                pl.BlockSpec((num_hidden, 1, d), lambda i: (0, 0, 0),
                             pipeline_mode=pl.Buffered(1)),               # bh stack
                pl.BlockSpec((d, o_pad), lambda i: (0, 0),
                             pipeline_mode=pl.Buffered(1)),               # Wo
                pl.BlockSpec((1, o_pad), lambda i: (0, 0),
                             pipeline_mode=pl.Buffered(1)),               # bo (masked)
            ],
            out_specs=pl.BlockSpec((tile_b, o_pad), lambda i: (i, 0)),
        ),
        compiler_params=pltpu.CompilerParams(
            dimension_semantics=("parallel",),
        ),
        cost_estimate=pl.CostEstimate(
            flops=flops,
            transcendentals=bp * o_pad,          # exp per logit (+1 recip/row, tiny)
            bytes_accessed=bytes_accessed,
        ),
    )(x2d, wh_bf, bh_f, wo_bf, bo_f)


def connected_rn_softmax(x, params):
    """x: (B, C, H, W) float32; params from prepare_params. Returns (B, O) softmax."""
    wh_bf, bh_f, wo_bf, bo_f, o_real = params
    b = x.shape[0]

    x2d = x.reshape(b, -1).astype(jnp.float32)   # == torch flatten(1)
    x2d = _pad_axis(x2d, 1, LANE)                # lane-align features (784 -> 896)

    tile_b = _pick_tile_b(b)
    x2d = _pad_axis(x2d, 0, tile_b)              # batch tail padding

    out = _forward_padded(x2d, wh_bf, bh_f, wo_bf, bo_f, tile_b=tile_b)
    # If the consumer tolerates the (B, 128) padded layout, this slice can be
    # dropped / fused into the consumer's first op.
    return out[:b, :o_real]


# ------------------------------ init & references ----------------------------
def init_params(key, input_size, hidden_layers, output_size):
    """Deterministic init mimicking nn.Linear's U(-1/sqrt(in), 1/sqrt(in)).

    Weights are produced directly in (in, out) layout (transposed vs PyTorch)."""
    keys = jax.random.split(key, 2 * hidden_layers + 2)
    bound = 1.0 / jnp.sqrt(jnp.float32(input_size))

    wh = jnp.stack([
        jax.random.uniform(keys[2 * l], (input_size, input_size),
                           jnp.float32, -bound, bound)
        for l in range(hidden_layers)
    ])                                                        # (L, D, D)
    bh = jnp.stack([
        jax.random.uniform(keys[2 * l + 1], (1, input_size),
                           jnp.float32, -bound, bound)
        for l in range(hidden_layers)
    ])                                                        # (L, 1, D)
    wo = jax.random.uniform(keys[-2], (input_size, output_size),
                            jnp.float32, -bound, bound)       # (D, O)
    bo = jax.random.uniform(keys[-1], (1, output_size),
                            jnp.float32, -bound, bound)       # (1, O)
    return wh, bh, wo, bo


def reference_forward_f32(x, wh, bh, wo, bo):
    go = x.reshape(x.shape[0], -1)
    for l in range(wh.shape[0]):
        go = jnp.maximum(go @ wh[l] + bh[l], 0.0)
    return jax.nn.softmax(go @ wo + bo, axis=1)


def reference_forward_bf16(x, wh, bh, wo, bo):
    """Mirrors the kernel's numerics: bf16 MXU operands, f32 accumulation."""
    go = x.reshape(x.shape[0], -1).astype(jnp.bfloat16)
    for l in range(wh.shape[0]):
        y = jnp.dot(go, wh[l].astype(jnp.bfloat16),
                    preferred_element_type=jnp.float32) + bh[l]
        go = jnp.maximum(y, 0.0).astype(jnp.bfloat16)
    logits = jnp.dot(go, wo.astype(jnp.bfloat16),
                     preferred_element_type=jnp.float32) + bo
    return jax.nn.softmax(logits, axis=1)


# ------------------------------ main ------------------------------------------
if __name__ == "__main__":
    key = jax.random.PRNGKey(0)
    k_x, k_p = jax.random.split(key)

    # Input analogous to MNIST-style NCHW images: (B, 1, 16, 16) -> flatten -> 256
    x = jax.random.normal(k_x, (BATCH, 1, 16, 16), jnp.float32)
    wh, bh, wo, bo = init_params(k_p, INPUT_SIZE, HIDDEN_LAYERS, OUTPUT_SIZE)

    # One-time parameter prep (pad + bf16 cast + softmax pad mask baked into bo).
    params = prepare_params(wh, bh, wo, bo)

    out = jax.block_until_ready(connected_rn_softmax(x, params))

    assert out.shape == (BATCH, OUTPUT_SIZE)
    assert bool(jnp.all(jnp.isfinite(out)))
    # approx reciprocal => rows sum to 1 within ~2^-12 relative error.
    assert jnp.allclose(jnp.sum(out, axis=1), 1.0, atol=1e-3)

    # Tight check vs a reference using the same bf16/f32-accumulate numerics.
    ref_bf16 = reference_forward_bf16(x, wh, bh, wo, bo)
    assert jnp.allclose(out, ref_bf16, atol=2e-3, rtol=2e-3), "mismatch vs bf16 ref"

    # Looser check vs the full-f32 reference (bf16 weight quantization error).
    ref_f32 = reference_forward_f32(x, wh, bh, wo, bo)
    assert jnp.allclose(out, ref_f32, atol=1e-2), "mismatch vs f32 reference"

    print("KERNEL_OK")
</pallas_src>

<mosaic_0001>
module attributes {stable_mosaic.version = 11 : i64} {
  func.func @_mlp_softmax_kernel(%arg0: i32, %arg1: memref<256x256xf32, #tpu.memory_space<vmem>>, %arg2: memref<4x256x256xbf16, #tpu.memory_space<vmem>>, %arg3: memref<4x1x256xf32, #tpu.memory_space<vmem>>, %arg4: memref<256x128xbf16, #tpu.memory_space<vmem>>, %arg5: memref<1x128xf32, #tpu.memory_space<vmem>>, %arg6: memref<256x128xf32, #tpu.memory_space<vmem>>) attributes {dimension_semantics = [#tpu.dimension_semantics<parallel>], iteration_bounds = array<i64: 1>, scalar_prefetch = 0 : i64, scratch_operands = 0 : i64, tpu.core_type = #tpu.core_type<tc>, window_params = [{transform_indices = @transform_0, window_bounds = array<i64: 256, 256>}, {pipeline_mode = #tpu.pipeline_mode<synchronous>, transform_indices = @transform_1, window_bounds = array<i64: 4, 256, 256>}, {pipeline_mode = #tpu.pipeline_mode<synchronous>, transform_indices = @transform_2, window_bounds = array<i64: 4, 1, 256>}, {pipeline_mode = #tpu.pipeline_mode<synchronous>, transform_indices = @transform_3, window_bounds = array<i64: 256, 128>}, {pipeline_mode = #tpu.pipeline_mode<synchronous>, transform_indices = @transform_4, window_bounds = array<i64: 1, 128>}, {transform_indices = @transform_5, window_bounds = array<i64: 256, 128>}]} {
    %c0 = arith.constant 0 : index
    %c0_0 = arith.constant 0 : index
    %0 = vector.load %arg1[%c0, %c0_0] : memref<256x256xf32, #tpu.memory_space<vmem>>, vector<256x256xf32>
    %1 = arith.truncf %0 : vector<256x256xf32> to vector<256x256xbf16>
    %c0_1 = arith.constant 0 : index
    %c0_2 = arith.constant 0 : index
    %c0_3 = arith.constant 0 : index
    %2 = vector.load %arg2[%c0_1, %c0_2, %c0_3] : memref<4x256x256xbf16, #tpu.memory_space<vmem>>, vector<1x256x256xbf16>
    %3 = vector.shape_cast %2 : vector<1x256x256xbf16> to vector<256x256xbf16>
    %cst = arith.constant dense<0.000000e+00> : vector<256x256xf32>
    %4 = tpu.matmul %1, %3, %cst {dimension_numbers = #tpu.dot_dimension_numbers<[1], [0], [0], [1], [0, 0, 1, 1], [], []>} : vector<256x256xbf16>, vector<256x256xbf16>, vector<256x256xf32> -> vector<256x256xf32>
    %c0_4 = arith.constant 0 : index
    %c0_5 = arith.constant 0 : index
    %c0_6 = arith.constant 0 : index
    %5 = vector.load %arg3[%c0_4, %c0_5, %c0_6] : memref<4x1x256xf32, #tpu.memory_space<vmem>>, vector<1x1x256xf32>
    %6 = vector.shape_cast %5 : vector<1x1x256xf32> to vector<1x256xf32>
    %7 = vector.broadcast %6 : vector<1x256xf32> to vector<256x256xf32>
    %8 = arith.addf %4, %7 : vector<256x256xf32>
    %cst_7 = arith.constant 0.000000e+00 : f32
    %9 = vector.broadcast %cst_7 : f32 to vector<256x256xf32>
    %10 = arith.maximumf %8, %9 : vector<256x256xf32>
    %11 = arith.truncf %10 : vector<256x256xf32> to vector<256x256xbf16>
    %c1 = arith.constant 1 : index
    %c0_8 = arith.constant 0 : index
    %c0_9 = arith.constant 0 : index
    %12 = vector.load %arg2[%c1, %c0_8, %c0_9] : memref<4x256x256xbf16, #tpu.memory_space<vmem>>, vector<1x256x256xbf16>
    %13 = vector.shape_cast %12 : vector<1x256x256xbf16> to vector<256x256xbf16>
    %cst_10 = arith.constant dense<0.000000e+00> : vector<256x256xf32>
    %14 = tpu.matmul %11, %13, %cst_10 {dimension_numbers = #tpu.dot_dimension_numbers<[1], [0], [0], [1], [0, 0, 1, 1], [], []>} : vector<256x256xbf16>, vector<256x256xbf16>, vector<256x256xf32> -> vector<256x256xf32>
    %c1_11 = arith.constant 1 : index
    %c0_12 = arith.constant 0 : index
    %c0_13 = arith.constant 0 : index
    %15 = vector.load %arg3[%c1_11, %c0_12, %c0_13] : memref<4x1x256xf32, #tpu.memory_space<vmem>>, vector<1x1x256xf32>
    %16 = vector.shape_cast %15 : vector<1x1x256xf32> to vector<1x256xf32>
    %17 = vector.broadcast %16 : vector<1x256xf32> to vector<256x256xf32>
    %18 = arith.addf %14, %17 : vector<256x256xf32>
    %cst_14 = arith.constant 0.000000e+00 : f32
    %19 = vector.broadcast %cst_14 : f32 to vector<256x256xf32>
    %20 = arith.maximumf %18, %19 : vector<256x256xf32>
    %21 = arith.truncf %20 : vector<256x256xf32> to vector<256x256xbf16>
    %c2 = arith.constant 2 : index
    %c0_15 = arith.constant 0 : index
    %c0_16 = arith.constant 0 : index
    %22 = vector.load %arg2[%c2, %c0_15, %c0_16] : memref<4x256x256xbf16, #tpu.memory_space<vmem>>, vector<1x256x256xbf16>
    %23 = vector.shape_cast %22 : vector<1x256x256xbf16> to vector<256x256xbf16>
    %cst_17 = arith.constant dense<0.000000e+00> : vector<256x256xf32>
    %24 = tpu.matmul %21, %23, %cst_17 {dimension_numbers = #tpu.dot_dimension_numbers<[1], [0], [0], [1], [0, 0, 1, 1], [], []>} : vector<256x256xbf16>, vector<256x256xbf16>, vector<256x256xf32> -> vector<256x256xf32>
    %c2_18 = arith.constant 2 : index
    %c0_19 = arith.constant 0 : index
    %c0_20 = arith.constant 0 : index
    %25 = vector.load %arg3[%c2_18, %c0_19, %c0_20] : memref<4x1x256xf32, #tpu.memory_space<vmem>>, vector<1x1x256xf32>
    %26 = vector.shape_cast %25 : vector<1x1x256xf32> to vector<1x256xf32>
    %27 = vector.broadcast %26 : vector<1x256xf32> to vector<256x256xf32>
    %28 = arith.addf %24, %27 : vector<256x256xf32>
    %cst_21 = arith.constant 0.000000e+00 : f32
    %29 = vector.broadcast %cst_21 : f32 to vector<256x256xf32>
    %30 = arith.maximumf %28, %29 : vector<256x256xf32>
    %31 = arith.truncf %30 : vector<256x256xf32> to vector<256x256xbf16>
    %c3 = arith.constant 3 : index
    %c0_22 = arith.constant 0 : index
    %c0_23 = arith.constant 0 : index
    %32 = vector.load %arg2[%c3, %c0_22, %c0_23] : memref<4x256x256xbf16, #tpu.memory_space<vmem>>, vector<1x256x256xbf16>
    %33 = vector.shape_cast %32 : vector<1x256x256xbf16> to vector<256x256xbf16>
    %cst_24 = arith.constant dense<0.000000e+00> : vector<256x256xf32>
    %34 = tpu.matmul %31, %33, %cst_24 {dimension_numbers = #tpu.dot_dimension_numbers<[1], [0], [0], [1], [0, 0, 1, 1], [], []>} : vector<256x256xbf16>, vector<256x256xbf16>, vector<256x256xf32> -> vector<256x256xf32>
    %c3_25 = arith.constant 3 : index
    %c0_26 = arith.constant 0 : index
    %c0_27 = arith.constant 0 : index
    %35 = vector.load %arg3[%c3_25, %c0_26, %c0_27] : memref<4x1x256xf32, #tpu.memory_space<vmem>>, vector<1x1x256xf32>
    %36 = vector.shape_cast %35 : vector<1x1x256xf32> to vector<1x256xf32>
    %37 = vector.broadcast %36 : vector<1x256xf32> to vector<256x256xf32>
    %38 = arith.addf %34, %37 : vector<256x256xf32>
    %cst_28 = arith.constant 0.000000e+00 : f32
    %39 = vector.broadcast %cst_28 : f32 to vector<256x256xf32>
    %40 = arith.maximumf %38, %39 : vector<256x256xf32>
    %41 = arith.truncf %40 : vector<256x256xf32> to vector<256x256xbf16>
    %c0_29 = arith.constant 0 : index
    %c0_30 = arith.constant 0 : index
    %42 = vector.load %arg4[%c0_29, %c0_30] : memref<256x128xbf16, #tpu.memory_space<vmem>>, vector<256x128xbf16>
    %cst_31 = arith.constant dense<0.000000e+00> : vector<256x128xf32>
    %43 = tpu.matmul %41, %42, %cst_31 {dimension_numbers = #tpu.dot_dimension_numbers<[1], [0], [0], [1], [0, 0, 1, 1], [], []>} : vector<256x256xbf16>, vector<256x128xbf16>, vector<256x128xf32> -> vector<256x128xf32>
    %c0_32 = arith.constant 0 : index
    %c0_33 = arith.constant 0 : index
    %44 = vector.load %arg5[%c0_32, %c0_33] : memref<1x128xf32, #tpu.memory_space<vmem>>, vector<1x128xf32>
    %45 = vector.broadcast %44 : vector<1x128xf32> to vector<256x128xf32>
    %46 = arith.addf %43, %45 : vector<256x128xf32>
    %cst_34 = arith.constant dense<0xFF800000> : vector<256xf32>
    %47 = vector.multi_reduction <maximumf>, %46, %cst_34 [1] : vector<256x128xf32> to vector<256xf32>
    %48 = vector.shape_cast %47 : vector<256xf32> to vector<256x1xf32>
    %49 = vector.broadcast %48 : vector<256x1xf32> to vector<256x128xf32>
    %50 = arith.subf %46, %49 : vector<256x128xf32>
    %51 = math.exp %50 : vector<256x128xf32>
    %cst_35 = arith.constant dense<0.000000e+00> : vector<256xf32>
    %52 = vector.multi_reduction <add>, %51, %cst_35 [1] : vector<256x128xf32> to vector<256xf32>
    %53 = vector.shape_cast %52 : vector<256xf32> to vector<256x1xf32>
    %54 = tpu.reciprocal %53 {approx = true} : vector<256x1xf32> -> vector<256x1xf32>
    %55 = vector.broadcast %54 : vector<256x1xf32> to vector<256x128xf32>
    %56 = arith.mulf %51, %55 : vector<256x128xf32>
    %c0_36 = arith.constant 0 : index
    %c0_37 = arith.constant 0 : index
    %57 = vector.load %arg6[%c0_36, %c0_37] : memref<256x128xf32, #tpu.memory_space<vmem>>, vector<256x128xf32>
    tpu.vector_store %arg6[%c0_36, %c0_37], %56 {strides = array<i32>} : memref<256x128xf32, #tpu.memory_space<vmem>>, vector<256x128xf32>,
    return
  }
  func.func @transform_0(%arg0: i32) -> (i32, i32) {
    %c0_i32 = arith.constant 0 : i32
    %c0_i32_0 = arith.constant 0 : i32
    return %arg0, %c0_i32 : i32, i32
  }
  func.func @transform_1(%arg0: i32) -> (i32, i32, i32) {
    %c0_i32 = arith.constant 0 : i32
    %c0_i32_0 = arith.constant 0 : i32
    %c0_i32_1 = arith.constant 0 : i32
    %c0_i32_2 = arith.constant 0 : i32
    return %c0_i32, %c0_i32_0, %c0_i32_1 : i32, i32, i32
  }
  func.func @transform_2(%arg0: i32) -> (i32, i32, i32) {
    %c0_i32 = arith.constant 0 : i32
    %c0_i32_0 = arith.constant 0 : i32
    %c0_i32_1 = arith.constant 0 : i32
    %c0_i32_2 = arith.constant 0 : i32
    return %c0_i32, %c0_i32_0, %c0_i32_1 : i32, i32, i32
  }
  func.func @transform_3(%arg0: i32) -> (i32, i32) {
    %c0_i32 = arith.constant 0 : i32
    %c0_i32_0 = arith.constant 0 : i32
    %c0_i32_1 = arith.constant 0 : i32
    return %c0_i32, %c0_i32_0 : i32, i32
  }
  func.func @transform_4(%arg0: i32) -> (i32, i32) {
    %c0_i32 = arith.constant 0 : i32
    %c0_i32_0 = arith.constant 0 : i32
    %c0_i32_1 = arith.constant 0 : i32
    return %c0_i32, %c0_i32_0 : i32, i32
  }
  func.func @transform_5(%arg0: i32) -> (i32, i32) {
    %c0_i32 = arith.constant 0 : i32
    %c0_i32_0 = arith.constant 0 : i32
    return %arg0, %c0_i32 : i32, i32
  }
}

</mosaic_0001>

<bundles_post_ra>
// kernel: _forward_padded.1
= control target key start
LH: loop header
LB: loop body
LE: loop exit
PB: predicated region body
PF: predicated region fallthrough
CT: control target
= control target key end

     0   :  { %10 = vsyncpa [#allocation3], 0  ;;  %s4264_s0 = inlined_call_operand.hbm [shape: f32[256,256], index: 0, kind: input, shape index: {}]   ;;  %s4265_s1 = inlined_call_operand.hbm [shape: bf16[4,256,256], index: 1, kind: input, shape index: {}]   ;;  %s4266_s2 = inlined_call_operand.hbm [shape: f32[4,1,256], index: 2, kind: input, shape index: {}]   ;;  %s4267_s3 = inlined_call_operand.hbm [shape: bf16[256,128], index: 3, kind: input, shape index: {}]   ;;  %s4268_s4 = inlined_call_operand.vmem [shape: f32[1,128], index: 4, kind: input, shape index: {}]   ;;  %s4269_s5 = inlined_call_operand.hbm [shape: f32[256,128], index: 5, kind: output, shape index: {}]  }
   0x1   :  { %11 = vsyncpa [#allocation6], 0 }
   0x2   :  { %12 = vsyncpa [#allocation9], 0 }
   0x3   :  { %13 = vsyncpa [#allocation4], 0  ;;  %s3542_s18 = smov [#allocation5]   ;;  %s3424_s22 = scalar_lea.hbm %s4265_s1, 16384 }
   0x4   :  { %s31_s19 = sshll.u32 %s3542_s18, 4  ;;  %p3425_p0 = scmp.ne.s32.totalorder %s4265_s1, %s3424_s22  ;;  %s32_s19 = int_to_ptr.vmem [resolvable:$true] %s31_s19 }
   0x5   :  { %p3428_p1 = scmp.lt.u32.totalorder %s3424_s22, %s4265_s1 }
   0x7   :  { %p3430_p2 = pnand %p3428_p1, %p3425_p0 }
   0x9   :  { %3433 = shalt.err (!%p3430_p2)
}
   0xa   :  { %s3434_s27 = scalar_lea.vmem %s32_s19, 16384  ;;  %p3439_p4 = scmp.lt.s32.totalorder %s32_s19, %s32_s19 }
   0xb   :  { %p3435_p3 = scmp.ne.s32.totalorder %s32_s19, %s3434_s27  ;;  %p3440_p5 = scmp.lt.s32.totalorder %s3434_s27, %s3434_s27 }
   0xd   :  { %p3441_p6 = por %p3440_p5, %p3439_p4 }
   0xf   :  { %p3442_p7 = pnand %p3441_p6, %p3435_p3 }
  0x11   :  { %3445 = shalt.err (!%p3442_p7)
}
  0x12   :  { %s3543_s28 = smov 128   ;;  %s3544_s29 = smov 8  }
  0x13   :  { %37 = dma.hbm_to_vmem [thread:$0]  %s4265_s1, 16384, %s32_s19, [#allocation6], %s3543_s28, %s3543_s28, %s3544_s29  }
  0x14   :  { %s3545_s7 = smov [#allocation2]   ;;  %s3446_s11 = scalar_lea.hbm %s4264_s0, 8192 }
  0x15   :  { %s19_s8 = sshll.u32 %s3545_s7, 4  ;;  %p3447_p8 = scmp.ne.s32.totalorder %s4264_s0, %s3446_s11  ;;  %s20_s8 = int_to_ptr.vmem [resolvable:$true] %s19_s8 }
  0x16   :  { %p3450_p9 = scmp.lt.u32.totalorder %s3446_s11, %s4264_s0 }
  0x18   :  { %p3452_p10 = pnand %p3450_p9, %p3447_p8 }
  0x1a   :  { %3455 = shalt.err (!%p3452_p10)
}
  0x1b   :  { %s3456_s16 = scalar_lea.vmem %s20_s8, 8192  ;;  %p3461_p12 = scmp.lt.s32.totalorder %s20_s8, %s20_s8 }
  0x1c   :  { %p3457_p11 = scmp.ne.s32.totalorder %s20_s8, %s3456_s16  ;;  %p3462_p13 = scmp.lt.s32.totalorder %s3456_s16, %s3456_s16 }
  0x1e   :  { %p3463_p0 = por %p3462_p13, %p3461_p12 }
  0x20   :  { %p3464_p1 = pnand %p3463_p0, %p3457_p11 }
  0x22   :  { %3467 = shalt.err (!%p3464_p1)
}
  0x23   :  { %s3546_s1 = smov 256   ;;  %s3547_s17 = smov 16  }
  0x24   :  { %25 = dma.hbm_to_vmem [thread:$0]  %s4264_s0, 8192, %s20_s8, [#allocation3], %s3546_s1, %s3546_s1, %s3547_s17  }
  0x25   :  { %s3548_s20 = smov [#allocation7]   ;;  %s3468_s24 = scalar_lea.hbm %s4266_s2, 128 }
  0x26   :  { %s43_s21 = sshll.u32 %s3548_s20, 4  ;;  %p3469_p2 = scmp.ne.s32.totalorder %s4266_s2, %s3468_s24  ;;  %s44_s21 = int_to_ptr.vmem [resolvable:$true] %s43_s21 }
  0x27   :  { %p3472_p3 = scmp.lt.u32.totalorder %s3468_s24, %s4266_s2 }
  0x29   :  { %p3474_p4 = pnand %p3472_p3, %p3469_p2 }
  0x2b   :  { %3477 = shalt.err (!%p3474_p4)
}
  0x2c   :  { %s3478_s6 = scalar_lea.vmem %s44_s21, 128  ;;  %p3483_p6 = scmp.lt.s32.totalorder %s44_s21, %s44_s21 }
  0x2d   :  { %p3479_p5 = scmp.ne.s32.totalorder %s44_s21, %s3478_s6  ;;  %p3484_p7 = scmp.lt.s32.totalorder %s3478_s6, %s3478_s6 }
  0x2f   :  { %p3485_p8 = por %p3484_p7, %p3483_p6 }
  0x31   :  { %p3486_p9 = pnand %p3485_p8, %p3479_p5 }
  0x33   :  { %3489 = shalt.err (!%p3486_p9)
}
  0x34   :  { %s3549_s0 = smov 32   ;;  %s3550_s7 = smov 2  }
  0x35   :  { %49 = dma.hbm_to_vmem [thread:$0]  %s4266_s2, 128, %s44_s21, [#allocation6], %s3549_s0, %s3549_s0, %s3550_s7  }
  0x36   :  { %s3551_s10 = smov [#allocation8]   ;;  %s3490_s14 = scalar_lea.hbm %s4267_s3, 2048 }
  0x37   :  { %s55_s11 = sshll.u32 %s3551_s10, 4  ;;  %p3491_p10 = scmp.ne.s32.totalorder %s4267_s3, %s3490_s14  ;;  %s56_s11 = int_to_ptr.vmem [resolvable:$true] %s55_s11 }
  0x38   :  { %p3494_p11 = scmp.lt.u32.totalorder %s3490_s14, %s4267_s3 }
  0x3a   :  { %p3496_p12 = pnand %p3494_p11, %p3491_p10 }
  0x3c   :  { %3499 = shalt.err (!%p3496_p12)
}
  0x3d   :  { %s3500_s18 = scalar_lea.vmem %s56_s11, 2048  ;;  %p3505_p0 = scmp.lt.s32.totalorder %s56_s11, %s56_s11 }
  0x3e   :  { %p3501_p13 = scmp.ne.s32.totalorder %s56_s11, %s3500_s18  ;;  %p3506_p1 = scmp.lt.s32.totalorder %s3500_s18, %s3500_s18 }
  0x40   :  { %p3507_p2 = por %p3506_p1, %p3505_p0 }
  0x42   :  { %p3508_p3 = pnand %p3507_p2, %p3501_p13 }
  0x44   :  { %3511 = shalt.err (!%p3508_p3)
}
  0x45   :  { %s3552_s2 = smov 64   ;;  %s3553_s19 = smov 4  }
  0x46   :  { %61 = dma.hbm_to_vmem [thread:$0]  %s4267_s3, 2048, %s56_s11, [#allocation9], %s3552_s2, %s3552_s2, %s3553_s19  }
  0x47   :  { %3534 = dma.done.wait [#allocation3], 8192  }
  0x48   :  { %3535 = vsyncadd [#allocation3], 4294959104 }
  0x49   :  { %3536 = dma.done.wait [#allocation6], 16512  }
  0x4a   :  { %3537 = vsyncadd [#allocation6], 4294950784 }
  0x4b   :  { %3538 = dma.done.wait [#allocation9], 2048  }
  0x4c   :  { %3539 = vsyncadd [#allocation9], 4294965248  ;;  %v3088_v0 = vld [vmem:[#allocation5 + $0x4] ss:$8 sps:$4 sm:$0xff]   ;;  %v3090_v1 = vld [vmem:[#allocation5] ss:$8 sps:$4 sm:$0xff]  }
  0x4d   :  { %377 = vmatprep.subr.bf16.mxu0 %v3088_v0  ;;  %v3091_v2 = vld [vmem:[#allocation5 + $0x14] ss:$8 sps:$4 sm:$0xff]   ;;  %3043 = vmatprep.subr.bf16.mxu1 %v3088_v0  ;;  %v3093_v3 = vld [vmem:[#allocation5 + $0x10] ss:$8 sps:$4 sm:$0xff]   ;;  %v3094_v4 = vld [vmem:[#allocation5 + $0x24] ss:$8 sps:$4 sm:$0xff]  }
  0x4e   :  { %378 = vmatpush1.bf16.msra.mxu0 %v3090_v1  ;;  %3059 = vmatpush1.bf16.msra.mxu1 %v3090_v1  ;;  %v3096_v5 = vld [vmem:[#allocation5 + $0x20] ss:$8 sps:$4 sm:$0xff]   ;;  %v3097_v6 = vld [vmem:[#allocation5 + $0x34] ss:$8 sps:$4 sm:$0xff]   ;;  %v3099_v7 = vld [vmem:[#allocation5 + $0x30] ss:$8 sps:$4 sm:$0xff]  }
  0x4f   :  { %379 = vmatprep.subr.bf16.mxu0 %v3091_v2  ;;  %3044 = vmatprep.subr.bf16.mxu1 %v3091_v2  ;;  %v3100_v8 = vld [vmem:[#allocation5 + $0x44] ss:$8 sps:$4 sm:$0xff]   ;;  %v3102_v9 = vld [vmem:[#allocation5 + $0x40] ss:$8 sps:$4 sm:$0xff]   ;;  %v3103_v10 = vld [vmem:[#allocation5 + $0x54] ss:$8 sps:$4 sm:$0xff]  }
  0x50   :  { %v3105_v11 = vld [vmem:[#allocation5 + $0x50] ss:$8 sps:$4 sm:$0xff]   ;;  %v3106_v12 = vld [vmem:[#allocation5 + $0x64] ss:$8 sps:$4 sm:$0xff]   ;;  %v3108_v16 = vld [vmem:[#allocation5 + $0x60] ss:$8 sps:$4 sm:$0xff]  }
  0x51   :  { %v78_v13 = vld [vmem:[#allocation2 + $0x8] sm:$0xff]  ;;  %v80_v14 = vld [vmem:[#allocation2 + $0x18] sm:$0xff]  ;;  %v77_v38 = vld [vmem:[#allocation2] sm:$0xff] }
  0x52   :  { %380 = vmatpush1.bf16.msra.mxu0 %v3093_v3  ;;  %3060 = vmatpush1.bf16.msra.mxu1 %v3093_v3  ;;  %v142_v15 = vpack.c.bf16 %v80_v14, %v78_v13  ;;  %v3109_v17 = vld [vmem:[#allocation5 + $0x74] ss:$8 sps:$4 sm:$0xff]   ;;  %v3111_v18 = vld [vmem:[#allocation5 + $0x70] ss:$8 sps:$4 sm:$0xff]   ;;  %v3112_v19 = vld [vmem:[#allocation5 + $0x84] ss:$8 sps:$4 sm:$0xff]  }
  0x53   :  { %381 = vmatprep.subr.bf16.mxu0 %v3094_v4  ;;  %3045 = vmatprep.subr.bf16.mxu1 %v3094_v4  ;;  %v3114_v20 = vld [vmem:[#allocation5 + $0x80] ss:$8 sps:$4 sm:$0xff]   ;;  %v3115_v21 = vld [vmem:[#allocation5 + $0x94] ss:$8 sps:$4 sm:$0xff]   ;;  %v3117_v25 = vld [vmem:[#allocation5 + $0x90] ss:$8 sps:$4 sm:$0xff]  }
  0x54   :  { %409 = vmatprep.mubr.bf16.mxu0 %v142_v15  ;;  %v110_v22 = vld [vmem:[#allocation2 + $0x108] sm:$0xff]  ;;  %v112_v23 = vld [vmem:[#allocation2 + $0x118] sm:$0xff]  ;;  %v79_v39 = vld [vmem:[#allocation2 + $0x10] sm:$0xff] }
  0x55   :  { %v158_v24 = vpack.c.bf16 %v112_v23, %v110_v22  ;;  %v3118_v26 = vld [vmem:[#allocation5 + $0xa4] ss:$8 sps:$4 sm:$0xff]   ;;  %v3120_v27 = vld [vmem:[#allocation5 + $0xa0] ss:$8 sps:$4 sm:$0xff]   ;;  %v3121_v28 = vld [vmem:[#allocation5 + $0xb4] ss:$8 sps:$4 sm:$0xff]   ;;  %v141_v47 = vpack.c.bf16 %v79_v39, %v77_v38 }
  0x56   :  { %382 = vmatpush1.bf16.msra.mxu0 %v3096_v5  ;;  %3061 = vmatpush1.bf16.msra.mxu1 %v3096_v5  ;;  %v3123_v29 = vld [vmem:[#allocation5 + $0xb0] ss:$8 sps:$4 sm:$0xff]   ;;  %v3124_v30 = vld [vmem:[#allocation5 + $0xc4] ss:$8 sps:$4 sm:$0xff]   ;;  %v3126_v31 = vld [vmem:[#allocation5 + $0xc0] ss:$8 sps:$4 sm:$0xff]  }
  0x57   :  { %383 = vmatprep.subr.bf16.mxu0 %v3097_v6  ;;  %3046 = vmatprep.subr.bf16.mxu1 %v3097_v6  ;;  %v3127_v32 = vld [vmem:[#allocation5 + $0xd4] ss:$8 sps:$4 sm:$0xff]   ;;  %v3129_v33 = vld [vmem:[#allocation5 + $0xd0] ss:$8 sps:$4 sm:$0xff]   ;;  %v3130_v34 = vld [vmem:[#allocation5 + $0xe4] ss:$8 sps:$4 sm:$0xff]  }
  0x58   :  { %489 = vmatprep.mubr.bf16.mxu1 %v158_v24  ;;  %v3132_v35 = vld [vmem:[#allocation5 + $0xe0] ss:$8 sps:$4 sm:$0xff]   ;;  %v3133_v36 = vld [vmem:[#allocation5 + $0xf4] ss:$8 sps:$4 sm:$0xff]   ;;  %v3135_v37 = vld [vmem:[#allocation5 + $0xf0] ss:$8 sps:$4 sm:$0xff]  }
  0x59   :  { %v82_v40 = vld [vmem:[#allocation2 + $0x28] sm:$0xff]  ;;  %v84_v41 = vld [vmem:[#allocation2 + $0x38] sm:$0xff]  ;;  %v109_v42 = vld [vmem:[#allocation2 + $0x100] sm:$0xff] }
  0x5a   :  { %384 = vmatpush1.bf16.msra.mxu0 %v3099_v7  ;;  %3062 = vmatpush1.bf16.msra.mxu1 %v3099_v7  ;;  %v111_v43 = vld [vmem:[#allocation2 + $0x110] sm:$0xff]  ;;  %v114_v44 = vld [vmem:[#allocation2 + $0x128] sm:$0xff]  ;;  %v116_v45 = vld [vmem:[#allocation2 + $0x138] sm:$0xff]  ;;  %v144_v50 = vpack.c.bf16 %v84_v41, %v82_v40 }
  0x5b   :  { %385 = vmatprep.subr.bf16.mxu0 %v3100_v8  ;;  %3047 = vmatprep.subr.bf16.mxu1 %v3100_v8  ;;  %v3138_v46 = vld [vmem:[#allocation5 + $0x104] ss:$8 sps:$4 sm:$0xff]   ;;  %v157_v48 = vpack.c.bf16 %v111_v43, %v109_v42  ;;  %v3136_v49 = vld [vmem:[#allocation5 + $0x100] ss:$8 sps:$4 sm:$0xff]   ;;  %v160_v51 = vpack.c.bf16 %v116_v45, %v114_v44  ;;  %v3141_v52 = vld [vmem:[#allocation5 + $0x114] ss:$8 sps:$4 sm:$0xff]  }
  0x5c   :  { %v81_v53 = vld [vmem:[#allocation2 + $0x20] sm:$0xff]  ;;  %v83_v54 = vld [vmem:[#allocation2 + $0x30] sm:$0xff]  ;;  %v86_v57 = vld [vmem:[#allocation2 + $0x48] sm:$0xff] }
  0x5d   :  { %v113_v55 = vld [vmem:[#allocation2 + $0x120] sm:$0xff]  ;;  %v115_v56 = vld [vmem:[#allocation2 + $0x130] sm:$0xff]  ;;  %v88_v58 = vld [vmem:[#allocation2 + $0x58] sm:$0xff]  ;;  %v143_v63 = vpack.c.bf16 %v83_v54, %v81_v53 }
  0x5e   :  { %386 = vmatpush1.bf16.msra.mxu0 %v3102_v9  ;;  %3063 = vmatpush1.bf16.msra.mxu1 %v3102_v9  ;;  %v118_v59 = vld [vmem:[#allocation2 + $0x148] sm:$0xff]  ;;  %v120_v60 = vld [vmem:[#allocation2 + $0x158] sm:$0xff]  ;;  %v159_v0 = vpack.c.bf16 %v115_v56, %v113_v55  ;;  %v146_v2 = vpack.c.bf16 %v88_v58, %v86_v57  ;;  %v85_v5 = vld [vmem:[#allocation2 + $0x40] sm:$0xff] }
  0x5f   :  { %387 = vmatprep.subr.bf16.mxu0 %v3103_v10  ;;  %3048 = vmatprep.subr.bf16.mxu1 %v3103_v10  ;;  %v3139_v61 = vld [vmem:[#allocation5 + $0x110] ss:$8 sps:$4 sm:$0xff]   ;;  %v3144_v62 = vld [vmem:[#allocation5 + $0x124] ss:$8 sps:$4 sm:$0xff]   ;;  %v3142_v1 = vld [vmem:[#allocation5 + $0x120] ss:$8 sps:$4 sm:$0xff]   ;;  %v162_v3 = vpack.c.bf16 %v120_v60, %v118_v59 }
  0x60   :  { %v3147_v4 = vld [vmem:[#allocation5 + $0x134] ss:$8 sps:$4 sm:$0xff]   ;;  %v117_v7 = vld [vmem:[#allocation2 + $0x140] sm:$0xff]  ;;  %v90_v9 = vld [vmem:[#allocation2 + $0x68] sm:$0xff] }
  0x61   :  { %v87_v6 = vld [vmem:[#allocation2 + $0x50] sm:$0xff]  ;;  %v92_v10 = vld [vmem:[#allocation2 + $0x78] sm:$0xff]  ;;  %v3150_v14 = vld [vmem:[#allocation5 + $0x144] ss:$8 sps:$4 sm:$0xff]  }
  0x62   :  { %388 = vmatpush1.bf16.msra.mxu0 %v3105_v11  ;;  %3064 = vmatpush1.bf16.msra.mxu1 %v3105_v11  ;;  %v119_v8 = vld [vmem:[#allocation2 + $0x150] sm:$0xff]  ;;  %v122_v11 = vld [vmem:[#allocation2 + $0x168] sm:$0xff]  ;;  %v145_v15 = vpack.c.bf16 %v87_v6, %v85_v5  ;;  %v121_v23 = vld [vmem:[#allocation2 + $0x160] sm:$0xff] }
  0x63   :  { %389 = vmatprep.subr.bf16.mxu0 %v3106_v12  ;;  %3049 = vmatprep.subr.bf16.mxu1 %v3106_v12  ;;  %v124_v12 = vld [vmem:[#allocation2 + $0x178] sm:$0xff]  ;;  %v91_v22 = vld [vmem:[#allocation2 + $0x70] sm:$0xff]  ;;  %v125_v39 = vld [vmem:[#allocation2 + $0x180] sm:$0xff] }
  0x64   :  { %v3145_v13 = vld [vmem:[#allocation5 + $0x130] ss:$8 sps:$4 sm:$0xff]   ;;  %v98_v41 = vld [vmem:[#allocation2 + $0xa8] sm:$0xff]  ;;  %v97_v53 = vld [vmem:[#allocation2 + $0xa0] sm:$0xff] }
  0x65   :  { %v123_v24 = vld [vmem:[#allocation2 + $0x170] sm:$0xff]  ;;  %v100_v42 = vld [vmem:[#allocation2 + $0xb8] sm:$0xff]  ;;  %v130_v43 = vld [vmem:[#allocation2 + $0x1a8] sm:$0xff] }
  0x66   :  { %390 = vmatpush1.bf16.msra.mxu0 %v3108_v16  ;;  %3065 = vmatpush1.bf16.msra.mxu1 %v3108_v16  ;;  %v161_v16 = vpack.c.bf16 %v119_v8, %v117_v7  ;;  %v95_v38 = vld [vmem:[#allocation2 + $0x90] sm:$0xff]  ;;  %v132_v44 = vld [vmem:[#allocation2 + $0x1b8] sm:$0xff]  ;;  %v102_v55 = vld [vmem:[#allocation2 + $0xc8] sm:$0xff] }
  0x67   :  { %391 = vmatprep.subr.bf16.mxu0 %v3109_v17  ;;  %3050 = vmatprep.subr.bf16.mxu1 %v3109_v17  ;;  %v3148_v17 = vld [vmem:[#allocation5 + $0x140] ss:$8 sps:$4 sm:$0xff]   ;;  %v127_v40 = vld [vmem:[#allocation2 + $0x190] sm:$0xff]  ;;  %v104_v56 = vld [vmem:[#allocation2 + $0xd8] sm:$0xff] }
  0x68   :  { %v3157_v45 = vld [vmem:[#allocation5 + $0x170] ss:$8 sps:$4 sm:$0xff]   ;;  %v129_v57 = vld [vmem:[#allocation2 + $0x1a0] sm:$0xff]  ;;  %v134_v59 = vld [vmem:[#allocation2 + $0x1c8] sm:$0xff] }
  0x69   :  { %v99_v54 = vld [vmem:[#allocation2 + $0xb0] sm:$0xff]  ;;  %v136_v60 = vld [vmem:[#allocation2 + $0x1d8] sm:$0xff]  ;;  %v101_v5 = vld [vmem:[#allocation2 + $0xc0] sm:$0xff] }
  0x6a   :  { %392 = vmatpush1.bf16.msra.mxu0 %v3111_v18  ;;  %3066 = vmatpush1.bf16.msra.mxu1 %v3111_v18  ;;  %v148_v18 = vpack.c.bf16 %v92_v10, %v90_v9  ;;  %v131_v58 = vld [vmem:[#allocation2 + $0x1b0] sm:$0xff]  ;;  %v106_v7 = vld [vmem:[#allocation2 + $0xe8] sm:$0xff]  ;;  %v108_v8 = vld [vmem:[#allocation2 + $0xf8] sm:$0xff] }
  0x6b   :  { %393 = vmatprep.subr.bf16.mxu0 %v3112_v19  ;;  %3051 = vmatprep.subr.bf16.mxu1 %v3112_v19  ;;  %v164_v19 = vpack.c.bf16 %v124_v12, %v122_v11  ;;  %v103_v6 = vld [vmem:[#allocation2 + $0xd0] sm:$0xff]  ;;  %v133_v9 = vld [vmem:[#allocation2 + $0x1c0] sm:$0xff]  ;;  %v138_v11 = vld [vmem:[#allocation2 + $0x1e8] sm:$0xff] }
  0x6c   :  { %v135_v10 = vld [vmem:[#allocation2 + $0x1d0] sm:$0xff]  ;;  %v140_v12 = vld [vmem:[#allocation2 + $0x1f8] sm:$0xff] }
  0x6e   :  { %394 = vmatpush1.bf16.msra.mxu0 %v3114_v20  ;;  %3067 = vmatpush1.bf16.msra.mxu1 %v3114_v20  ;;  %v3153_v20 = vld [vmem:[#allocation5 + $0x154] ss:$8 sps:$4 sm:$0xff]  }
  0x6f   :  { %395 = vmatprep.subr.bf16.mxu0 %v3115_v21  ;;  %3052 = vmatprep.subr.bf16.mxu1 %v3115_v21  ;;  %v89_v21 = vld [vmem:[#allocation2 + $0x60] sm:$0xff] }
  0x72   :  { %396 = vmatpush1.bf16.msra.mxu0 %v3117_v25  ;;  %3068 = vmatpush1.bf16.msra.mxu1 %v3117_v25  ;;  %v94_v25 = vld [vmem:[#allocation2 + $0x88] sm:$0xff] }
  0x73   :  { %397 = vmatprep.subr.bf16.mxu0 %v3118_v26  ;;  %3053 = vmatprep.subr.bf16.mxu1 %v3118_v26  ;;  %v96_v26 = vld [vmem:[#allocation2 + $0x98] sm:$0xff] }
  0x76   :  { %398 = vmatpush1.bf16.msra.mxu0 %v3120_v27  ;;  %3069 = vmatpush1.bf16.msra.mxu1 %v3120_v27  ;;  %v126_v27 = vld [vmem:[#allocation2 + $0x188] sm:$0xff] }
  0x77   :  { %399 = vmatprep.subr.bf16.mxu0 %v3121_v28  ;;  %3054 = vmatprep.subr.bf16.mxu1 %v3121_v28  ;;  %v128_v28 = vld [vmem:[#allocation2 + $0x198] sm:$0xff] }
  0x7a   :  { %400 = vmatpush1.bf16.msra.mxu0 %v3123_v29  ;;  %3070 = vmatpush1.bf16.msra.mxu1 %v3123_v29  ;;  %v3151_v29 = vld [vmem:[#allocation5 + $0x150] ss:$8 sps:$4 sm:$0xff]  }
  0x7b   :  { %401 = vmatprep.subr.bf16.mxu0 %v3124_v30  ;;  %3055 = vmatprep.subr.bf16.mxu1 %v3124_v30  ;;  %v3156_v30 = vld [vmem:[#allocation5 + $0x164] ss:$8 sps:$4 sm:$0xff]  }
  0x7e   :  { %402 = vmatpush1.bf16.msra.mxu0 %v3126_v31  ;;  %3071 = vmatpush1.bf16.msra.mxu1 %v3126_v31  ;;  %v147_v31 = vpack.c.bf16 %v91_v22, %v89_v21  ;;  %v105_v21 = vld [vmem:[#allocation2 + $0xe0] sm:$0xff]  ;;  %v107_v22 = vld [vmem:[#allocation2 + $0xf0] sm:$0xff] }
  0x7f   :  { %403 = vmatprep.subr.bf16.mxu0 %v3127_v32  ;;  %3056 = vmatprep.subr.bf16.mxu1 %v3127_v32  ;;  %v163_v32 = vpack.c.bf16 %v123_v24, %v121_v23  ;;  %v137_v23 = vld [vmem:[#allocation2 + $0x1e0] sm:$0xff]  ;;  %v139_v24 = vld [vmem:[#allocation2 + $0x1f0] sm:$0xff] }
  0x82   :  { %404 = vmatpush1.bf16.msra.mxu0 %v3129_v33  ;;  %3072 = vmatpush1.bf16.msra.mxu1 %v3129_v33  ;;  %v3154_v33 = vld [vmem:[#allocation5 + $0x160] ss:$8 sps:$4 sm:$0xff]  }
  0x83   :  { %405 = vmatprep.subr.bf16.mxu0 %v3130_v34  ;;  %3057 = vmatprep.subr.bf16.mxu1 %v3130_v34  ;;  %v150_v34 = vpack.c.bf16 %v96_v26, %v94_v25  ;;  %v3175_v25 = vld [vmem:[#allocation5 + $0x1d0] ss:$8 sps:$4 sm:$0xff]   ;;  %v155_v26 = vpack.c.bf16 %v107_v22, %v105_v21 }
  0x86   :  { %406 = vmatpush1.bf16.msra.mxu0 %v3132_v35  ;;  %3073 = vmatpush1.bf16.msra.mxu1 %v3132_v35  ;;  %v166_v35 = vpack.c.bf16 %v128_v28, %v126_v27  ;;  %v171_v27 = vpack.c.bf16 %v139_v24, %v137_v23  ;;  %v3180_v28 = vld [vmem:[#allocation5 + $0x1e4] ss:$8 sps:$4 sm:$0xff]   ;;  %v3190_v23 = vld [vmem:[#allocation5 + $0x220] ss:$8 sps:$4 sm:$0xff]  }
  0x87   :  { %407 = vmatprep.subr.bf16.mxu0 %v3133_v36  ;;  %3058 = vmatprep.subr.bf16.mxu1 %v3133_v36  ;;  %v3159_v36 = vld [vmem:[#allocation5 + $0x174] ss:$8 sps:$4 sm:$0xff]  }
  0x8a   :  { %408 = vmatpush1.bf16.msra.mxu0 %v3135_v37  ;;  %3074 = vmatpush1.bf16.msra.mxu1 %v3135_v37  ;;  %v93_v37 = vld [vmem:[#allocation2 + $0x80] sm:$0xff] }
  0x8b   :  { %872 = vmatprep.subr.bf16.mxu1 %v3138_v46  ;;  %v3162_v46 = vld [vmem:[#allocation5 + $0x184] ss:$8 sps:$4 sm:$0xff]  }
  0x8d   :  { %410 = vmatmul.mubr.bf16.vlgmr.msra.gmra.mrb[0].mxu0 %v141_v47  ;;  %490 = vmatmul.mubr.bf16.vlgmr.msra.gmra.mrb[0].mxu1 %v157_v48  ;;  %v149_v47 = vpack.c.bf16 %v95_v38, %v93_v37  ;;  %v165_v48 = vpack.c.bf16 %v127_v40, %v125_v39 }
  0x8e   :  { %419 = vmatprep.mubr.bf16.mxu0 %v144_v50  ;;  %499 = vmatprep.mubr.bf16.mxu1 %v160_v51  ;;  %v168_v50 = vpack.c.bf16 %v132_v44, %v130_v43  ;;  %v3160_v51 = vld [vmem:[#allocation5 + $0x180] ss:$8 sps:$4 sm:$0xff]  }
  0x8f   :  { %873 = vmatpush1.bf16.msra.mxu1 %v3136_v49  ;;  %v152_v49 = vpack.c.bf16 %v100_v42, %v98_v41 }
  0x90   :  { %874 = vmatprep.subr.bf16.mxu1 %v3141_v52  ;;  %v3165_v52 = vld [vmem:[#allocation5 + $0x194] ss:$8 sps:$4 sm:$0xff]  }
  0x93   :  { %875 = vmatpush1.bf16.msra.mxu1 %v3139_v61  ;;  %v3163_v61 = vld [vmem:[#allocation5 + $0x190] ss:$8 sps:$4 sm:$0xff]  }
  0x94   :  { %876 = vmatprep.subr.bf16.mxu1 %v3144_v62  ;;  %v3168_v62 = vld [vmem:[#allocation5 + $0x1a4] ss:$8 sps:$4 sm:$0xff]  }
  0x95   :  { %420 = vmatmul.mubr.bf16.gmra.mrb[4].mxu0 %v143_v63  ;;  %500 = vmatmul.mubr.bf16.gmra.mrb[4].mxu1 %v159_v0  ;;  %v151_v63 = vpack.c.bf16 %v99_v54, %v97_v53  ;;  %v167_v0 = vpack.c.bf16 %v131_v58, %v129_v57  ;;  %v3184_v54 = vld [vmem:[#allocation5 + $0x200] ss:$8 sps:$4 sm:$0xff]   ;;  %v3186_v58 = vld [vmem:[#allocation5 + $0x204] ss:$8 sps:$4 sm:$0xff]  }
  0x96   :  { %429 = vmatprep.mubr.bf16.mxu0 %v146_v2  ;;  %509 = vmatprep.mubr.bf16.mxu1 %v162_v3  ;;  %v170_v2 = vpack.c.bf16 %v136_v60, %v134_v59  ;;  %v3166_v3 = vld [vmem:[#allocation5 + $0x1a0] ss:$8 sps:$4 sm:$0xff]  }
  0x97   :  { %877 = vmatpush1.bf16.msra.mxu1 %v3142_v1  ;;  %v154_v1 = vpack.c.bf16 %v104_v56, %v102_v55  ;;  %1367 = vmatprep.subr.bf16.mxu0 %v3186_v58 }
  0x98   :  { %878 = vmatprep.subr.bf16.mxu1 %v3147_v4  ;;  %v3171_v4 = vld [vmem:[#allocation5 + $0x1b4] ss:$8 sps:$4 sm:$0xff]   ;;  %1368 = vmatpush1.bf16.msra.mxu0 %v3184_v54 }
  0x9b   :  { %879 = vmatpush1.bf16.msra.mxu1 %v3145_v13  ;;  %v3169_v13 = vld [vmem:[#allocation5 + $0x1b0] ss:$8 sps:$4 sm:$0xff]  }
  0x9c   :  { %880 = vmatprep.subr.bf16.mxu1 %v3150_v14  ;;  %v3174_v14 = vld [vmem:[#allocation5 + $0x1c4] ss:$8 sps:$4 sm:$0xff]  }
  0x9d   :  { %430 = vmatmul.mubr.bf16.gmra.mrb[8].mxu0 %v145_v15  ;;  %510 = vmatmul.mubr.bf16.gmra.mrb[8].mxu1 %v161_v16  ;;  %v153_v15 = vpack.c.bf16 %v103_v6, %v101_v5  ;;  %v169_v16 = vpack.c.bf16 %v135_v10, %v133_v9  ;;  %v3192_v9 = vld [vmem:[#allocation5 + $0x224] ss:$8 sps:$4 sm:$0xff]  }
  0x9e   :  { %439 = vmatprep.mubr.bf16.mxu0 %v148_v18  ;;  %519 = vmatprep.mubr.bf16.mxu1 %v164_v19  ;;  %v172_v18 = vpack.c.bf16 %v140_v12, %v138_v11  ;;  %v3172_v19 = vld [vmem:[#allocation5 + $0x1c0] ss:$8 sps:$4 sm:$0xff]  }
  0x9f   :  { %881 = vmatpush1.bf16.msra.mxu1 %v3148_v17  ;;  %v156_v17 = vpack.c.bf16 %v108_v8, %v106_v7 }
  0xa0   :  { %882 = vmatprep.subr.bf16.mxu1 %v3153_v20  ;;  %v3177_v20 = vld [vmem:[#allocation5 + $0x1d4] ss:$8 sps:$4 sm:$0xff]  }
  0xa3   :  { %883 = vmatpush1.bf16.msra.mxu1 %v3151_v29  ;;  %v3178_v29 = vld [vmem:[#allocation5 + $0x1e0] ss:$8 sps:$4 sm:$0xff]  }
  0xa4   :  { %884 = vmatprep.subr.bf16.mxu1 %v3156_v30  ;;  %v3183_v30 = vld [vmem:[#allocation5 + $0x1f4] ss:$8 sps:$4 sm:$0xff]  }
  0xa5   :  { %440 = vmatmul.mubr.bf16.gmra.mrb[12].mxu0 %v147_v31  ;;  %520 = vmatmul.mubr.bf16.gmra.mrb[12].mxu1 %v163_v32  ;;  %v3181_v31 = vld [vmem:[#allocation5 + $0x1f0] ss:$8 sps:$4 sm:$0xff]   ;;  %v207_v32 = vlaneseq }
  0xa6   :  { %449 = vmatprep.mubr.bf16.mxu0 %v150_v34  ;;  %529 = vmatprep.mubr.bf16.mxu1 %v166_v35  ;;  %v205_v35 = vld [vmem:[#allocation7] sm:$0x3] }
  0xa7   :  { %885 = vmatpush1.bf16.msra.mxu1 %v3154_v33  ;;  %v208_v33 = vshrl.u32 %v207_v32, 7 }
  0xa8   :  { %886 = vmatprep.subr.bf16.mxu1 %v3159_v36 }
  0xa9   :  { %v3636_v34 = vsub.s32 0, %v208_v33  ;;  %v3638_v36 = vsub.s32 1, %v208_v33 }
  0xab   :  { %887 = vmatpush1.bf16.msra.mxu1 %v3157_v45  ;;  %v3641_v37 = vrot.slane %v205_v35, %v3636_v34  ;;  %v3644_v38 = vrot.slane %v205_v35, %v3638_v36 }
  0xac   :  { %888 = vmatprep.subr.bf16.mxu1 %v3162_v46 }
  0xad   :  { %450 = vmatmul.mubr.bf16.gmra.mrb[16].mxu0 %v149_v47  ;;  %530 = vmatmul.mubr.bf16.gmra.mrb[16].mxu1 %v165_v48 }
  0xae   :  { %459 = vmatprep.mubr.bf16.mxu0 %v152_v49  ;;  %539 = vmatprep.mubr.bf16.mxu1 %v168_v50 }
  0xaf   :  { %889 = vmatpush1.bf16.msra.mxu1 %v3160_v51 }
  0xb0   :  { %890 = vmatprep.subr.bf16.mxu1 %v3165_v52 }
  0xb3   :  { %891 = vmatpush1.bf16.msra.mxu1 %v3163_v61 }
  0xb4   :  { %892 = vmatprep.subr.bf16.mxu1 %v3168_v62  ;;  %v3189_v62 = vld [vmem:[#allocation5 + $0x214] ss:$8 sps:$4 sm:$0xff]  }
  0xb5   :  { %460 = vmatmul.mubr.bf16.gmra.mrb[20].mxu0 %v151_v63  ;;  %540 = vmatmul.mubr.bf16.gmra.mrb[20].mxu1 %v167_v0 }
  0xb6   :  { %469 = vmatprep.mubr.bf16.mxu0 %v154_v1  ;;  %549 = vmatprep.mubr.bf16.mxu1 %v170_v2 }
  0xb7   :  { %893 = vmatpush1.bf16.msra.mxu1 %v3166_v3  ;;  %1369 = vmatprep.subr.bf16.mxu0 %v3189_v62 }
  0xb8   :  { %894 = vmatprep.subr.bf16.mxu1 %v3171_v4  ;;  %v3187_v4 = vld [vmem:[#allocation5 + $0x210] ss:$8 sps:$4 sm:$0xff]  }
  0xb9   :  { %1370 = vmatpush1.bf16.msra.mxu0 %v3187_v4 }
  0xba   :  { %1371 = vmatprep.subr.bf16.mxu0 %v3192_v9 }
  0xbb   :  { %895 = vmatpush1.bf16.msra.mxu1 %v3169_v13 }
  0xbc   :  { %896 = vmatprep.subr.bf16.mxu1 %v3174_v14 }
  0xbd   :  { %470 = vmatmul.mubr.bf16.gmra.mrb[24].mxu0 %v153_v15  ;;  %550 = vmatmul.mubr.bf16.gmra.mrb[24].mxu1 %v169_v16 }
  0xbe   :  { %479 = vmatprep.mubr.bf16.mxu0 %v156_v17  ;;  %559 = vmatprep.mubr.bf16.mxu1 %v172_v18 }
  0xbf   :  { %897 = vmatpush1.bf16.msra.mxu1 %v3172_v19  ;;  %1372 = vmatpush1.bf16.msra.mxu0 %v3190_v23 }
  0xc0   :  { %898 = vmatprep.subr.bf16.mxu1 %v3177_v20 }
  0xc3   :  { %899 = vmatpush1.bf16.msra.mxu1 %v3175_v25 }
  0xc4   :  { %900 = vmatprep.subr.bf16.mxu1 %v3180_v28 }
  0xc5   :  { %480 = vmatmul.mubr.bf16.gmra.mrb[28].mxu0 %v155_v26  ;;  %560 = vmatmul.mubr.bf16.gmra.mrb[28].mxu1 %v171_v27  ;;  %v3195_v27 = vld [vmem:[#allocation5 + $0x234] ss:$8 sps:$4 sm:$0xff]  }
  0xc6   :  { %1373 = vmatprep.subr.bf16.mxu0 %v3195_v27 }
  0xc7   :  { %901 = vmatpush1.bf16.msra.mxu1 %v3178_v29 }
  0xc8   :  { %902 = vmatprep.subr.bf16.mxu1 %v3183_v30 }
  0xcb   :  { %903 = vmatpush1.bf16.msra.mxu1 %v3181_v31 }
 0x160   :  { %v411_v39 = vpop.f32.mrb[0].mxu0  ;;  %v491_v40 = vpop.f32.mrb[0].mxu1 }
 0x161   :  { %v412_v41 = vadd.f32 %v411_v39, %v3641_v37  ;;  %v413_v42 = vpop.f32.mrb[1].mxu0  ;;  %v492_v43 = vadd.f32 %v491_v40, %v3641_v37  ;;  %v493_v44 = vpop.f32.mrb[1].mxu1  ;;  %v3193_v40 = vld [vmem:[#allocation5 + $0x230] ss:$8 sps:$4 sm:$0xff]  }
 0x162   :  { %v414_v45 = vadd.f32 %v413_v42, %v3644_v38  ;;  %v415_v46 = vpop.f32.mrb[2].mxu0  ;;  %v494_v47 = vadd.f32 %v493_v44, %v3644_v38  ;;  %v495_v48 = vpop.f32.mrb[2].mxu1  ;;  %1374 = vmatpush1.bf16.msra.mxu0 %v3193_v40 }
 0x163   :  { %v416_v49 = vadd.f32 %v415_v46, %v3641_v37  ;;  %v417_v50 = vpop.f32.mrb[3].mxu0  ;;  %v602_v51 = vmax.f32 %v492_v43, 0.0  ;;  %v496_v52 = vadd.f32 %v495_v48, %v3641_v37  ;;  %v497_v53 = vpop.f32.mrb[3].mxu1  ;;  %v570_v59 = vmax.f32 %v412_v41, 0.0 }
 0x164   :  { %v418_v55 = vadd.f32 %v417_v50, %v3644_v38  ;;  %v603_v56 = vmax.f32 %v494_v47, 0.0  ;;  %v498_v57 = vadd.f32 %v497_v53, %v3644_v38  ;;  %v571_v63 = vmax.f32 %v414_v45, 0.0  ;;  %v3198_v45 = vld [vmem:[#allocation5 + $0x244] ss:$8 sps:$4 sm:$0xff]  }
 0x165   :  { %v572_v60 = vmax.f32 %v416_v49, 0.0  ;;  %v604_v61 = vmax.f32 %v496_v52, 0.0  ;;  %1375 = vmatprep.subr.bf16.mxu0 %v3198_v45 }
 0x166   :  { %v573_v0 = vmax.f32 %v418_v55, 0.0  ;;  %v605_v1 = vmax.f32 %v498_v57, 0.0 }
 0x167   :  { %v634_v2 = vpack.c.bf16 %v572_v60, %v570_v59  ;;  %v3654_v3 = vpack.c.bf16 %v604_v61, %v602_v51  ;;  %v3196_v59 = vld [vmem:[#allocation5 + $0x240] ss:$8 sps:$4 sm:$0xff]  }
 0x168   :  { %v635_v5 = vpack.c.bf16 %v573_v0, %v571_v63  ;;  %v421_v6 = vpop.f32.mrb[4].mxu0  ;;  %v3656_v7 = vpack.c.bf16 %v605_v1, %v603_v56  ;;  %v501_v8 = vpop.f32.mrb[4].mxu1  ;;  %v3201_v63 = vld [vmem:[#allocation5 + $0x254] ss:$8 sps:$4 sm:$0xff]   ;;  %1376 = vmatpush1.bf16.msra.mxu0 %v3196_v59 }
 0x169   :  { %v422_v10 = vadd.f32 %v421_v6, %v3641_v37  ;;  %v423_v11 = vpop.f32.mrb[5].mxu0  ;;  %v502_v12 = vadd.f32 %v501_v8, %v3641_v37  ;;  %v503_v13 = vpop.f32.mrb[5].mxu1  ;;  %1377 = vmatprep.subr.bf16.mxu0 %v3201_v63 }
 0x16a   :  { %v424_v14 = vadd.f32 %v423_v11, %v3644_v38  ;;  %v425_v15 = vpop.f32.mrb[6].mxu0  ;;  %904 = vmatprep.mubr.bf16.mxu1 %v635_v5  ;;  %v504_v16 = vadd.f32 %v503_v13, %v3644_v38  ;;  %v505_v17 = vpop.f32.mrb[6].mxu1 }
 0x16b   :  { %v426_v18 = vadd.f32 %v425_v15, %v3641_v37  ;;  %v427_v19 = vpop.f32.mrb[7].mxu0  ;;  %905 = vmatmul.mubr.bf16.vlgmr.msra.gmra.mrb[32].mxu1 %v634_v2  ;;  %v606_v20 = vmax.f32 %v502_v12, 0.0  ;;  %v506_v21 = vadd.f32 %v505_v17, %v3641_v37  ;;  %v507_v22 = vpop.f32.mrb[7].mxu1  ;;  %v574_v28 = vmax.f32 %v422_v10, 0.0  ;;  %v3199_v10 = vld [vmem:[#allocation5 + $0x250] ss:$8 sps:$4 sm:$0xff]  }
 0x16c   :  { %v428_v24 = vadd.f32 %v427_v19, %v3644_v38  ;;  %v607_v25 = vmax.f32 %v504_v16, 0.0  ;;  %v508_v26 = vadd.f32 %v507_v22, %v3644_v38  ;;  %v575_v31 = vmax.f32 %v424_v14, 0.0  ;;  %v3204_v15 = vld [vmem:[#allocation5 + $0x264] ss:$8 sps:$4 sm:$0xff]   ;;  %1378 = vmatpush1.bf16.msra.mxu0 %v3199_v10  ;;  %v3213_v10 = vld [vmem:[#allocation5 + $0x294] ss:$8 sps:$4 sm:$0xff]  }
 0x16d   :  { %v576_v29 = vmax.f32 %v426_v18, 0.0  ;;  %v608_v30 = vmax.f32 %v506_v21, 0.0  ;;  %1379 = vmatprep.subr.bf16.mxu0 %v3204_v15 }
 0x16e   :  { %v577_v32 = vmax.f32 %v428_v24, 0.0  ;;  %v609_v33 = vmax.f32 %v508_v26, 0.0 }
 0x16f   :  { %v636_v35 = vpack.c.bf16 %v576_v29, %v574_v28  ;;  %v3666_v39 = vpack.c.bf16 %v608_v30, %v606_v20  ;;  %v3202_v29 = vld [vmem:[#allocation5 + $0x260] ss:$8 sps:$4 sm:$0xff]  }
 0x170   :  { %v637_v41 = vpack.c.bf16 %v577_v32, %v575_v31  ;;  %v431_v42 = vpop.f32.mrb[8].mxu0  ;;  %v3668_v43 = vpack.c.bf16 %v609_v33, %v607_v25  ;;  %v511_v44 = vpop.f32.mrb[8].mxu1  ;;  %v3207_v33 = vld [vmem:[#allocation5 + $0x274] ss:$8 sps:$4 sm:$0xff]   ;;  %1380 = vmatpush1.bf16.msra.mxu0 %v3202_v29 }
 0x171   :  { %v432_v46 = vadd.f32 %v431_v42, %v3641_v37  ;;  %v433_v47 = vpop.f32.mrb[9].mxu0  ;;  %v512_v48 = vadd.f32 %v511_v44, %v3641_v37  ;;  %v513_v49 = vpop.f32.mrb[9].mxu1  ;;  %1381 = vmatprep.subr.bf16.mxu0 %v3207_v33 }
 0x172   :  { %v434_v50 = vadd.f32 %v433_v47, %v3644_v38  ;;  %v435_v51 = vpop.f32.mrb[10].mxu0  ;;  %914 = vmatprep.mubr.bf16.mxu1 %v637_v41  ;;  %v514_v52 = vadd.f32 %v513_v49, %v3644_v38  ;;  %v515_v53 = vpop.f32.mrb[10].mxu1 }
 0x173   :  { %v436_v54 = vadd.f32 %v435_v51, %v3641_v37  ;;  %v437_v55 = vpop.f32.mrb[11].mxu0  ;;  %915 = vmatmul.mubr.bf16.gmra.mrb[36].mxu1 %v636_v35  ;;  %v610_v56 = vmax.f32 %v512_v48, 0.0  ;;  %v516_v57 = vadd.f32 %v515_v53, %v3641_v37  ;;  %v517_v58 = vpop.f32.mrb[11].mxu1  ;;  %v578_v0 = vmax.f32 %v432_v46, 0.0  ;;  %v3205_v48 = vld [vmem:[#allocation5 + $0x270] ss:$8 sps:$4 sm:$0xff]  }
 0x174   :  { %v438_v60 = vadd.f32 %v437_v55, %v3644_v38  ;;  %v611_v61 = vmax.f32 %v514_v52, 0.0  ;;  %v518_v62 = vadd.f32 %v517_v58, %v3644_v38  ;;  %v579_v4 = vmax.f32 %v434_v50, 0.0  ;;  %v3210_v53 = vld [vmem:[#allocation5 + $0x284] ss:$8 sps:$4 sm:$0xff]   ;;  %1382 = vmatpush1.bf16.msra.mxu0 %v3205_v48 }
 0x175   :  { %v580_v1 = vmax.f32 %v436_v54, 0.0  ;;  %v612_v2 = vmax.f32 %v516_v57, 0.0  ;;  %1383 = vmatprep.subr.bf16.mxu0 %v3210_v53 }
 0x176   :  { %v581_v5 = vmax.f32 %v438_v60, 0.0  ;;  %v613_v6 = vmax.f32 %v518_v62, 0.0 }
 0x177   :  { %v638_v8 = vpack.c.bf16 %v580_v1, %v578_v0  ;;  %v3678_v9 = vpack.c.bf16 %v612_v2, %v610_v56 }
 0x178   :  { %v639_v11 = vpack.c.bf16 %v581_v5, %v579_v4  ;;  %v441_v12 = vpop.f32.mrb[12].mxu0  ;;  %v3680_v13 = vpack.c.bf16 %v613_v6, %v611_v61  ;;  %v521_v14 = vpop.f32.mrb[12].mxu1  ;;  %v3208_v4 = vld [vmem:[#allocation5 + $0x280] ss:$8 sps:$4 sm:$0xff]  }
 0x179   :  { %v442_v16 = vadd.f32 %v441_v12, %v3641_v37  ;;  %v443_v17 = vpop.f32.mrb[13].mxu0  ;;  %v522_v18 = vadd.f32 %v521_v14, %v3641_v37  ;;  %v523_v19 = vpop.f32.mrb[13].mxu1  ;;  %1384 = vmatpush1.bf16.msra.mxu0 %v3208_v4 }
 0x17a   :  { %v444_v20 = vadd.f32 %v443_v17, %v3644_v38  ;;  %v445_v21 = vpop.f32.mrb[14].mxu0  ;;  %924 = vmatprep.mubr.bf16.mxu1 %v639_v11  ;;  %v524_v22 = vadd.f32 %v523_v19, %v3644_v38  ;;  %v525_v23 = vpop.f32.mrb[14].mxu1  ;;  %1385 = vmatprep.subr.bf16.mxu0 %v3213_v10 }
 0x17b   :  { %v446_v24 = vadd.f32 %v445_v21, %v3641_v37  ;;  %v447_v25 = vpop.f32.mrb[15].mxu0  ;;  %925 = vmatmul.mubr.bf16.gmra.mrb[40].mxu1 %v638_v8  ;;  %v614_v26 = vmax.f32 %v522_v18, 0.0  ;;  %v526_v27 = vadd.f32 %v525_v23, %v3641_v37  ;;  %v527_v28 = vpop.f32.mrb[15].mxu1  ;;  %v582_v35 = vmax.f32 %v442_v16, 0.0 }
 0x17c   :  { %v448_v30 = vadd.f32 %v447_v25, %v3644_v38  ;;  %v615_v31 = vmax.f32 %v524_v22, 0.0  ;;  %v528_v32 = vadd.f32 %v527_v28, %v3644_v38  ;;  %v583_v42 = vmax.f32 %v444_v20, 0.0  ;;  %v3211_v20 = vld [vmem:[#allocation5 + $0x290] ss:$8 sps:$4 sm:$0xff]   ;;  %v3216_v25 = vld [vmem:[#allocation5 + $0x2a4] ss:$8 sps:$4 sm:$0xff]  }
 0x17d   :  { %v584_v40 = vmax.f32 %v446_v24, 0.0  ;;  %v616_v41 = vmax.f32 %v526_v27, 0.0  ;;  %1386 = vmatpush1.bf16.msra.mxu0 %v3211_v20  ;;  %v3220_v20 = vld [vmem:[#allocation5 + $0x2c0] ss:$8 sps:$4 sm:$0xff]  }
 0x17e   :  { %v585_v44 = vmax.f32 %v448_v30, 0.0  ;;  %v617_v45 = vmax.f32 %v528_v32, 0.0  ;;  %1387 = vmatprep.subr.bf16.mxu0 %v3216_v25  ;;  %v3225_v25 = vld [vmem:[#allocation5 + $0x2d4] ss:$8 sps:$4 sm:$0xff]  }
 0x17f   :  { %v640_v46 = vpack.c.bf16 %v584_v40, %v582_v35  ;;  %v3690_v47 = vpack.c.bf16 %v616_v41, %v614_v26 }
 0x180   :  { %v641_v49 = vpack.c.bf16 %v585_v44, %v583_v42  ;;  %v451_v50 = vpop.f32.mrb[16].mxu0  ;;  %v3692_v51 = vpack.c.bf16 %v617_v45, %v615_v31  ;;  %v531_v52 = vpop.f32.mrb[16].mxu1  ;;  %v3214_v45 = vld [vmem:[#allocation5 + $0x2a0] ss:$8 sps:$4 sm:$0xff]  }
 0x181   :  { %v452_v54 = vadd.f32 %v451_v50, %v3641_v37  ;;  %v453_v55 = vpop.f32.mrb[17].mxu0  ;;  %v532_v56 = vadd.f32 %v531_v52, %v3641_v37  ;;  %v533_v57 = vpop.f32.mrb[17].mxu1  ;;  %v3219_v50 = vld [vmem:[#allocation5 + $0x2b4] ss:$8 sps:$4 sm:$0xff]   ;;  %1388 = vmatpush1.bf16.msra.mxu0 %v3214_v45 }
 0x182   :  { %v454_v58 = vadd.f32 %v453_v55, %v3644_v38  ;;  %v455_v59 = vpop.f32.mrb[18].mxu0  ;;  %934 = vmatprep.mubr.bf16.mxu1 %v641_v49  ;;  %v534_v60 = vadd.f32 %v533_v57, %v3644_v38  ;;  %v535_v61 = vpop.f32.mrb[18].mxu1  ;;  %1389 = vmatprep.subr.bf16.mxu0 %v3219_v50 }
 0x183   :  { %v456_v62 = vadd.f32 %v455_v59, %v3641_v37  ;;  %v457_v63 = vpop.f32.mrb[19].mxu0  ;;  %935 = vmatmul.mubr.bf16.gmra.mrb[44].mxu1 %v640_v46  ;;  %v618_v0 = vmax.f32 %v532_v56, 0.0  ;;  %v536_v1 = vadd.f32 %v535_v61, %v3641_v37  ;;  %v537_v2 = vpop.f32.mrb[19].mxu1  ;;  %v586_v11 = vmax.f32 %v452_v54, 0.0 }
 0x184   :  { %v458_v5 = vadd.f32 %v457_v63, %v3644_v38  ;;  %v619_v6 = vmax.f32 %v534_v60, 0.0  ;;  %v538_v8 = vadd.f32 %v537_v2, %v3644_v38  ;;  %v587_v15 = vmax.f32 %v454_v58, 0.0  ;;  %v3217_v60 = vld [vmem:[#allocation5 + $0x2b0] ss:$8 sps:$4 sm:$0xff]  }
 0x185   :  { %v588_v12 = vmax.f32 %v456_v62, 0.0  ;;  %v620_v14 = vmax.f32 %v536_v1, 0.0  ;;  %v3222_v1 = vld [vmem:[#allocation5 + $0x2c4] ss:$8 sps:$4 sm:$0xff]   ;;  %1390 = vmatpush1.bf16.msra.mxu0 %v3217_v60 }
 0x186   :  { %v589_v16 = vmax.f32 %v458_v5, 0.0  ;;  %v621_v17 = vmax.f32 %v538_v8, 0.0  ;;  %1391 = vmatprep.subr.bf16.mxu0 %v3222_v1 }
 0x187   :  { %v642_v18 = vpack.c.bf16 %v588_v12, %v586_v11  ;;  %v3702_v19 = vpack.c.bf16 %v620_v14, %v618_v0 }
 0x188   :  { %v643_v21 = vpack.c.bf16 %v589_v16, %v587_v15  ;;  %v461_v22 = vpop.f32.mrb[20].mxu0  ;;  %v3704_v23 = vpack.c.bf16 %v621_v17, %v619_v6  ;;  %v541_v24 = vpop.f32.mrb[20].mxu1 }
 0x189   :  { %v462_v26 = vadd.f32 %v461_v22, %v3641_v37  ;;  %v463_v27 = vpop.f32.mrb[21].mxu0  ;;  %v542_v28 = vadd.f32 %v541_v24, %v3641_v37  ;;  %v543_v29 = vpop.f32.mrb[21].mxu1  ;;  %1392 = vmatpush1.bf16.msra.mxu0 %v3220_v20 }
 0x18a   :  { %v464_v30 = vadd.f32 %v463_v27, %v3644_v38  ;;  %v465_v31 = vpop.f32.mrb[22].mxu0  ;;  %944 = vmatprep.mubr.bf16.mxu1 %v643_v21  ;;  %v544_v32 = vadd.f32 %v543_v29, %v3644_v38  ;;  %v545_v33 = vpop.f32.mrb[22].mxu1  ;;  %1393 = vmatprep.subr.bf16.mxu0 %v3225_v25  ;;  %v3244_v25 = vld [vmem:[#allocation5 + $0x340] ss:$8 sps:$4 sm:$0xff]  }
 0x18b   :  { %v466_v35 = vadd.f32 %v465_v31, %v3641_v37  ;;  %v467_v40 = vpop.f32.mrb[23].mxu0  ;;  %945 = vmatmul.mubr.bf16.gmra.mrb[48].mxu1 %v642_v18  ;;  %v622_v41 = vmax.f32 %v542_v28, 0.0  ;;  %v546_v42 = vadd.f32 %v545_v33, %v3641_v37  ;;  %v547_v44 = vpop.f32.mrb[23].mxu1  ;;  %v590_v52 = vmax.f32 %v462_v26, 0.0 }
 0x18c   :  { %v468_v46 = vadd.f32 %v467_v40, %v3644_v38  ;;  %v623_v48 = vmax.f32 %v544_v32, 0.0  ;;  %v548_v49 = vadd.f32 %v547_v44, %v3644_v38  ;;  %v591_v55 = vmax.f32 %v464_v30, 0.0 }
 0x18d   :  { %v592_v53 = vmax.f32 %v466_v35, 0.0  ;;  %v624_v54 = vmax.f32 %v546_v42, 0.0  ;;  %v3223_v35 = vld [vmem:[#allocation5 + $0x2d0] ss:$8 sps:$4 sm:$0xff]  }
 0x18e   :  { %v593_v56 = vmax.f32 %v468_v46, 0.0  ;;  %v625_v57 = vmax.f32 %v548_v49, 0.0  ;;  %1394 = vmatpush1.bf16.msra.mxu0 %v3223_v35  ;;  %v3247_v35 = vld [vmem:[#allocation5 + $0x350] ss:$8 sps:$4 sm:$0xff]  }
 0x18f   :  { %v644_v58 = vpack.c.bf16 %v592_v53, %v590_v52  ;;  %v3714_v59 = vpack.c.bf16 %v624_v54, %v622_v41 }
 0x190   :  { %v645_v61 = vpack.c.bf16 %v593_v56, %v591_v55  ;;  %v471_v62 = vpop.f32.mrb[24].mxu0  ;;  %v3716_v63 = vpack.c.bf16 %v625_v57, %v623_v48  ;;  %v551_v0 = vpop.f32.mrb[24].mxu1 }
 0x191   :  { %v472_v2 = vadd.f32 %v471_v62, %v3641_v37  ;;  %v473_v4 = vpop.f32.mrb[25].mxu0  ;;  %v552_v5 = vadd.f32 %v551_v0, %v3641_v37  ;;  %v553_v6 = vpop.f32.mrb[25].mxu1 }
 0x192   :  { %v474_v8 = vadd.f32 %v473_v4, %v3644_v38  ;;  %v475_v10 = vpop.f32.mrb[26].mxu0  ;;  %954 = vmatprep.mubr.bf16.mxu1 %v645_v61  ;;  %v554_v11 = vadd.f32 %v553_v6, %v3644_v38  ;;  %v555_v12 = vpop.f32.mrb[26].mxu1 }
 0x193   :  { %v476_v14 = vadd.f32 %v475_v10, %v3641_v37  ;;  %v477_v15 = vpop.f32.mrb[27].mxu0  ;;  %955 = vmatmul.mubr.bf16.gmra.mrb[52].mxu1 %v644_v58  ;;  %v626_v16 = vmax.f32 %v552_v5, 0.0  ;;  %v556_v17 = vadd.f32 %v555_v12, %v3641_v37  ;;  %v557_v18 = vpop.f32.mrb[27].mxu1  ;;  %v594_v26 = vmax.f32 %v472_v2, 0.0 }
 0x194   :  { %v478_v21 = vadd.f32 %v477_v15, %v3644_v38  ;;  %v627_v22 = vmax.f32 %v554_v11, 0.0  ;;  %v558_v24 = vadd.f32 %v557_v18, %v3644_v38  ;;  %v595_v29 = vmax.f32 %v474_v8, 0.0  ;;  %v3231_v15 = vld [vmem:[#allocation5 + $0x2f4] ss:$8 sps:$4 sm:$0xff]  }
 0x195   :  { %v596_v27 = vmax.f32 %v476_v14, 0.0  ;;  %v628_v28 = vmax.f32 %v556_v17, 0.0 }
 0x196   :  { %v597_v30 = vmax.f32 %v478_v21, 0.0  ;;  %v629_v31 = vmax.f32 %v558_v24, 0.0 }
 0x197   :  { %v646_v32 = vpack.c.bf16 %v596_v27, %v594_v26  ;;  %v662_v33 = vpack.c.bf16 %v628_v28, %v626_v16  ;;  %v3243_v16 = vld [vmem:[#allocation5 + $0x334] ss:$8 sps:$4 sm:$0xff]   ;;  %v3246_v26 = vld [vmem:[#allocation5 + $0x344] ss:$8 sps:$4 sm:$0xff]  }
 0x198   :  { %v647_v40 = vpack.c.bf16 %v597_v30, %v595_v29  ;;  %v481_v41 = vpop.f32.mrb[28].mxu0  ;;  %v663_v42 = vpack.c.bf16 %v629_v31, %v627_v22  ;;  %v561_v44 = vpop.f32.mrb[28].mxu1  ;;  %v3249_v28 = vld [vmem:[#allocation5 + $0x354] ss:$8 sps:$4 sm:$0xff]  }
 0x199   :  { %v482_v45 = vadd.f32 %v481_v41, %v3641_v37  ;;  %v483_v46 = vpop.f32.mrb[29].mxu0  ;;  %v562_v48 = vadd.f32 %v561_v44, %v3641_v37  ;;  %v563_v49 = vpop.f32.mrb[29].mxu1 }
 0x19a   :  { %v484_v50 = vadd.f32 %v483_v46, %v3644_v38  ;;  %v485_v52 = vpop.f32.mrb[30].mxu0  ;;  %964 = vmatprep.mubr.bf16.mxu1 %v647_v40  ;;  %v564_v53 = vadd.f32 %v563_v49, %v3644_v38  ;;  %v565_v54 = vpop.f32.mrb[30].mxu1 }
 0x19b   :  { %v486_v55 = vadd.f32 %v485_v52, %v3641_v37  ;;  %v487_v56 = vpop.f32.mrb[31].mxu0  ;;  %965 = vmatmul.mubr.bf16.gmra.mrb[56].mxu1 %v646_v32  ;;  %v630_v57 = vmax.f32 %v562_v48, 0.0  ;;  %v566_v58 = vadd.f32 %v565_v54, %v3641_v37  ;;  %v567_v60 = vpop.f32.mrb[31].mxu1  ;;  %v598_v1 = vmax.f32 %v482_v45, 0.0  ;;  %v3228_v37 = vld [vmem:[#allocation5 + $0x2e4] ss:$8 sps:$4 sm:$0xff]  }
 0x19c   :  { %v488_v61 = vadd.f32 %v487_v56, %v3644_v38  ;;  %v631_v62 = vmax.f32 %v564_v53, 0.0  ;;  %v568_v0 = vadd.f32 %v567_v60, %v3644_v38  ;;  %v599_v5 = vmax.f32 %v484_v50, 0.0  ;;  %v3226_v38 = vld [vmem:[#allocation5 + $0x2e0] ss:$8 sps:$4 sm:$0xff]   ;;  %1395 = vmatprep.subr.bf16.mxu0 %v3228_v37  ;;  %v3255_v54 = vld [vmem:[#allocation5 + $0x374] ss:$8 sps:$4 sm:$0xff]  }
 0x19d   :  { %v600_v2 = vmax.f32 %v486_v55, 0.0  ;;  %v632_v4 = vmax.f32 %v566_v58, 0.0  ;;  %1396 = vmatpush1.bf16.msra.mxu0 %v3226_v38  ;;  %v3250_v52 = vld [vmem:[#allocation5 + $0x360] ss:$8 sps:$4 sm:$0xff]  }
 0x19e   :  { %v601_v6 = vmax.f32 %v488_v61, 0.0  ;;  %v633_v8 = vmax.f32 %v568_v0, 0.0  ;;  %1397 = vmatprep.subr.bf16.mxu0 %v3231_v15  ;;  %v3253_v61 = vld [vmem:[#allocation5 + $0x370] ss:$8 sps:$4 sm:$0xff]  }
 0x19f   :  { %v648_v10 = vpack.c.bf16 %v600_v2, %v598_v1  ;;  %v664_v11 = vpack.c.bf16 %v632_v4, %v630_v57  ;;  %v3258_v1 = vld [vmem:[#allocation5 + $0x384] ss:$8 sps:$4 sm:$0xff]  }
 0x1a0   :  { %v649_v12 = vpack.c.bf16 %v601_v6, %v599_v5  ;;  %v665_v14 = vpack.c.bf16 %v633_v8, %v631_v62 }
 0x1a2   :  { %974 = vmatprep.mubr.bf16.mxu1 %v649_v12 }
 0x1a3   :  { %975 = vmatmul.mubr.bf16.gmra.mrb[60].mxu1 %v648_v10 }
 0x1a4   :  { %984 = vmatprep.mubr.bf16.mxu1 %v3656_v7  ;;  %v3232_v7 = vld [vmem:[#allocation5 + $0x300] ss:$8 sps:$4 sm:$0xff]  }
 0x1ab   :  { %985 = vmatmul.mubr.bf16.gmra.mrb[64].mxu1 %v3654_v3  ;;  %v3229_v3 = vld [vmem:[#allocation5 + $0x2f0] ss:$8 sps:$4 sm:$0xff]  }
 0x1ac   :  { %994 = vmatprep.mubr.bf16.mxu1 %v3668_v43  ;;  %1398 = vmatpush1.bf16.msra.mxu0 %v3229_v3  ;;  %v3235_v43 = vld [vmem:[#allocation5 + $0x310] ss:$8 sps:$4 sm:$0xff]  }
 0x1b3   :  { %995 = vmatmul.mubr.bf16.gmra.mrb[68].mxu1 %v3666_v39  ;;  %v3234_v39 = vld [vmem:[#allocation5 + $0x304] ss:$8 sps:$4 sm:$0xff]  }
 0x1b4   :  { %1004 = vmatprep.mubr.bf16.mxu1 %v3680_v13  ;;  %1862 = vmatprep.subr.bf16.mxu1 %v3234_v39  ;;  %v700_v13 = vld [vmem:[#allocation7 + $0x2] sm:$0x3]  ;;  %v3259_v39 = vld [vmem:[#allocation5 + $0x390] ss:$8 sps:$4 sm:$0xff]  }
 0x1b5   :  { %1863 = vmatpush1.bf16.msra.mxu1 %v3232_v7 }
 0x1bb   :  { %1005 = vmatmul.mubr.bf16.gmra.mrb[72].mxu1 %v3678_v9  ;;  %v3237_v9 = vld [vmem:[#allocation5 + $0x314] ss:$8 sps:$4 sm:$0xff]  }
 0x1bc   :  { %1014 = vmatprep.mubr.bf16.mxu1 %v3692_v51  ;;  %1864 = vmatprep.subr.bf16.mxu1 %v3237_v9  ;;  %v3240_v51 = vld [vmem:[#allocation5 + $0x324] ss:$8 sps:$4 sm:$0xff]  }
 0x1bd   :  { %1865 = vmatpush1.bf16.msra.mxu1 %v3235_v43 }
 0x1be   :  { %1866 = vmatprep.subr.bf16.mxu1 %v3240_v51 }
 0x1c3   :  { %1015 = vmatmul.mubr.bf16.gmra.mrb[76].mxu1 %v3690_v47  ;;  %v3238_v47 = vld [vmem:[#allocation5 + $0x320] ss:$8 sps:$4 sm:$0xff]  }
 0x1c4   :  { %1024 = vmatprep.mubr.bf16.mxu1 %v3704_v23  ;;  %v3750_v23 = vrot.slane %v700_v13, %v3638_v36  ;;  %1867 = vmatpush1.bf16.msra.mxu1 %v3238_v47 }
 0x1c5   :  { %1868 = vmatprep.subr.bf16.mxu1 %v3243_v16 }
 0x1cb   :  { %1025 = vmatmul.mubr.bf16.gmra.mrb[80].mxu1 %v3702_v19  ;;  %v3747_v19 = vrot.slane %v700_v13, %v3636_v34  ;;  %v3264_v13 = vld [vmem:[#allocation5 + $0x3a4] ss:$8 sps:$4 sm:$0xff]  }
 0x1cc   :  { %1034 = vmatprep.mubr.bf16.mxu1 %v3716_v63  ;;  %v3241_v63 = vld [vmem:[#allocation5 + $0x330] ss:$8 sps:$4 sm:$0xff]  }
 0x1cd   :  { %1869 = vmatpush1.bf16.msra.mxu1 %v3241_v63 }
 0x1ce   :  { %1870 = vmatprep.subr.bf16.mxu1 %v3246_v26 }
 0x1d1   :  { %1871 = vmatpush1.bf16.msra.mxu1 %v3244_v25 }
 0x1d2   :  { %1872 = vmatprep.subr.bf16.mxu1 %v3249_v28  ;;  %v3265_v28 = vld [vmem:[#allocation5 + $0x3b0] ss:$8 sps:$4 sm:$0xff]  }
 0x1d3   :  { %1035 = vmatmul.mubr.bf16.gmra.mrb[84].mxu1 %v3714_v59 }
 0x1d4   :  { %1044 = vmatprep.mubr.bf16.mxu1 %v663_v42  ;;  %v3252_v42 = vld [vmem:[#allocation5 + $0x364] ss:$8 sps:$4 sm:$0xff]  }
 0x1d5   :  { %1873 = vmatpush1.bf16.msra.mxu1 %v3247_v35 }
 0x1d6   :  { %1874 = vmatprep.subr.bf16.mxu1 %v3252_v42 }
 0x1d9   :  { %1875 = vmatpush1.bf16.msra.mxu1 %v3250_v52 }
 0x1da   :  { %1876 = vmatprep.subr.bf16.mxu1 %v3255_v54  ;;  %v3271_v54 = vld [vmem:[#allocation5 + $0x3d0] ss:$8 sps:$4 sm:$0xff]  }
 0x1db   :  { %1045 = vmatmul.mubr.bf16.gmra.mrb[88].mxu1 %v662_v33 }
 0x1dc   :  { %1054 = vmatprep.mubr.bf16.mxu1 %v665_v14  ;;  %v3261_v14 = vld [vmem:[#allocation5 + $0x394] ss:$8 sps:$4 sm:$0xff]  }
 0x1dd   :  { %1877 = vmatpush1.bf16.msra.mxu1 %v3253_v61 }
 0x1de   :  { %1878 = vmatprep.subr.bf16.mxu1 %v3258_v1 }
 0x1e3   :  { %1055 = vmatmul.mubr.bf16.gmra.mrb[92].mxu1 %v664_v11  ;;  %v3256_v11 = vld [vmem:[#allocation5 + $0x380] ss:$8 sps:$4 sm:$0xff]  }
 0x1e4   :  { %1879 = vmatpush1.bf16.msra.mxu1 %v3256_v11 }
 0x1e5   :  { %1880 = vmatprep.subr.bf16.mxu1 %v3261_v14 }
 0x1e8   :  { %1881 = vmatpush1.bf16.msra.mxu1 %v3259_v39 }
 0x1e9   :  { %1882 = vmatprep.subr.bf16.mxu1 %v3264_v13 }
 0x23e   :  { %v906_v59 = vpop.f32.mrb[32].mxu1 }
 0x23f   :  { %v907_v17 = vadd.f32 %v906_v59, %v3747_v19  ;;  %v908_v18 = vpop.f32.mrb[33].mxu1 }
 0x240   :  { %v909_v20 = vadd.f32 %v908_v18, %v3750_v23  ;;  %v910_v21 = vpop.f32.mrb[34].mxu1  ;;  %v3262_v18 = vld [vmem:[#allocation5 + $0x3a0] ss:$8 sps:$4 sm:$0xff]  }
 0x241   :  { %v911_v22 = vadd.f32 %v910_v21, %v3747_v19  ;;  %v912_v24 = vpop.f32.mrb[35].mxu1  ;;  %v1065_v29 = vmax.f32 %v907_v17, 0.0  ;;  %v3267_v21 = vld [vmem:[#allocation5 + $0x3b4] ss:$8 sps:$4 sm:$0xff]   ;;  %1883 = vmatpush1.bf16.msra.mxu1 %v3262_v18 }
 0x242   :  { %v913_v27 = vadd.f32 %v912_v24, %v3750_v23  ;;  %v1066_v31 = vmax.f32 %v909_v20, 0.0  ;;  %1884 = vmatprep.subr.bf16.mxu1 %v3267_v21 }
 0x243   :  { %v1067_v30 = vmax.f32 %v911_v22, 0.0 }
 0x244   :  { %v1068_v32 = vmax.f32 %v913_v27, 0.0 }
 0x245   :  { %v1129_v33 = vpack.c.bf16 %v1067_v30, %v1065_v29  ;;  %1885 = vmatpush1.bf16.msra.mxu1 %v3265_v28 }
 0x246   :  { %v1130_v40 = vpack.c.bf16 %v1068_v32, %v1066_v31  ;;  %v916_v41 = vpop.f32.mrb[36].mxu1  ;;  %v3270_v31 = vld [vmem:[#allocation5 + $0x3c4] ss:$8 sps:$4 sm:$0xff]  }
 0x247   :  { %v917_v44 = vadd.f32 %v916_v41, %v3747_v19  ;;  %v918_v45 = vpop.f32.mrb[37].mxu1  ;;  %1886 = vmatprep.subr.bf16.mxu1 %v3270_v31 }
 0x248   :  { %v919_v46 = vadd.f32 %v918_v45, %v3750_v23  ;;  %v920_v48 = vpop.f32.mrb[38].mxu1  ;;  %1399 = vmatprep.mubr.bf16.mxu0 %v1130_v40 }
 0x249   :  { %v921_v49 = vadd.f32 %v920_v48, %v3747_v19  ;;  %v922_v50 = vpop.f32.mrb[39].mxu1  ;;  %1400 = vmatmul.mubr.bf16.vlgmr.msra.gmra.mrb[32].mxu0 %v1129_v33  ;;  %v1069_v55 = vmax.f32 %v917_v44, 0.0  ;;  %v3268_v44 = vld [vmem:[#allocation5 + $0x3c0] ss:$8 sps:$4 sm:$0xff]  }
 0x24a   :  { %v923_v53 = vadd.f32 %v922_v50, %v3750_v23  ;;  %v1070_v57 = vmax.f32 %v919_v46, 0.0  ;;  %v3273_v46 = vld [vmem:[#allocation5 + $0x3d4] ss:$8 sps:$4 sm:$0xff]   ;;  %1887 = vmatpush1.bf16.msra.mxu1 %v3268_v44 }
 0x24b   :  { %v1071_v56 = vmax.f32 %v921_v49, 0.0  ;;  %1888 = vmatprep.subr.bf16.mxu1 %v3273_v46 }
 0x24c   :  { %v1072_v58 = vmax.f32 %v923_v53, 0.0 }
 0x24d   :  { %v1131_v60 = vpack.c.bf16 %v1071_v56, %v1069_v55 }
 0x24e   :  { %v1132_v62 = vpack.c.bf16 %v1072_v58, %v1070_v57  ;;  %v926_v0 = vpop.f32.mrb[40].mxu1  ;;  %v3276_v57 = vld [vmem:[#allocation5 + $0x3e4] ss:$8 sps:$4 sm:$0xff]   ;;  %1889 = vmatpush1.bf16.msra.mxu1 %v3271_v54 }
 0x24f   :  { %v927_v2 = vadd.f32 %v926_v0, %v3747_v19  ;;  %v928_v4 = vpop.f32.mrb[41].mxu1  ;;  %1890 = vmatprep.subr.bf16.mxu1 %v3276_v57 }
 0x250   :  { %v929_v5 = vadd.f32 %v928_v4, %v3750_v23  ;;  %v930_v6 = vpop.f32.mrb[42].mxu1  ;;  %1409 = vmatprep.mubr.bf16.mxu0 %v1132_v62 }
 0x251   :  { %v931_v8 = vadd.f32 %v930_v6, %v3747_v19  ;;  %v932_v10 = vpop.f32.mrb[43].mxu1  ;;  %1410 = vmatmul.mubr.bf16.gmra.mrb[36].mxu0 %v1131_v60  ;;  %v1073_v37 = vmax.f32 %v927_v2, 0.0  ;;  %v3274_v2 = vld [vmem:[#allocation5 + $0x3e0] ss:$8 sps:$4 sm:$0xff]  }
 0x252   :  { %v933_v12 = vadd.f32 %v932_v10, %v3750_v23  ;;  %v1074_v15 = vmax.f32 %v929_v5, 0.0  ;;  %1891 = vmatpush1.bf16.msra.mxu1 %v3274_v2 }
 0x253   :  { %v1075_v38 = vmax.f32 %v931_v8, 0.0 }
 0x254   :  { %v1076_v3 = vmax.f32 %v933_v12, 0.0 }
 0x255   :  { %v1133_v7 = vpack.c.bf16 %v1075_v38, %v1073_v37 }
 0x256   :  { %v1134_v43 = vpack.c.bf16 %v1076_v3, %v1074_v15  ;;  %v936_v9 = vpop.f32.mrb[44].mxu1 }
 0x257   :  { %v937_v47 = vadd.f32 %v936_v9, %v3747_v19  ;;  %v938_v51 = vpop.f32.mrb[45].mxu1 }
 0x258   :  { %v939_v59 = vadd.f32 %v938_v51, %v3750_v23  ;;  %v940_v63 = vpop.f32.mrb[46].mxu1  ;;  %1419 = vmatprep.mubr.bf16.mxu0 %v1134_v43 }
 0x259   :  { %v941_v16 = vadd.f32 %v940_v63, %v3747_v19  ;;  %v942_v17 = vpop.f32.mrb[47].mxu1  ;;  %1420 = vmatmul.mubr.bf16.gmra.mrb[40].mxu0 %v1133_v7  ;;  %v1077_v22 = vmax.f32 %v937_v47, 0.0 }
 0x25a   :  { %v943_v20 = vadd.f32 %v942_v17, %v3750_v23  ;;  %v1078_v25 = vmax.f32 %v939_v59, 0.0 }
 0x25b   :  { %v1079_v24 = vmax.f32 %v941_v16, 0.0 }
 0x25c   :  { %v1080_v26 = vmax.f32 %v943_v20, 0.0 }
 0x25d   :  { %v1135_v27 = vpack.c.bf16 %v1079_v24, %v1077_v22 }
 0x25e   :  { %v1136_v29 = vpack.c.bf16 %v1080_v26, %v1078_v25  ;;  %v946_v30 = vpop.f32.mrb[48].mxu1 }
 0x25f   :  { %v947_v32 = vadd.f32 %v946_v30, %v3747_v19  ;;  %v948_v33 = vpop.f32.mrb[49].mxu1 }
 0x260   :  { %v949_v35 = vadd.f32 %v948_v33, %v3750_v23  ;;  %v950_v40 = vpop.f32.mrb[50].mxu1  ;;  %1429 = vmatprep.mubr.bf16.mxu0 %v1136_v29 }
 0x261   :  { %v951_v41 = vadd.f32 %v950_v40, %v3747_v19  ;;  %v952_v42 = vpop.f32.mrb[51].mxu1  ;;  %1430 = vmatmul.mubr.bf16.gmra.mrb[44].mxu0 %v1135_v27  ;;  %v1081_v48 = vmax.f32 %v947_v32, 0.0 }
 0x262   :  { %v953_v45 = vadd.f32 %v952_v42, %v3750_v23  ;;  %v1082_v50 = vmax.f32 %v949_v35, 0.0 }
 0x263   :  { %v1083_v49 = vmax.f32 %v951_v41, 0.0 }
 0x264   :  { %v1084_v52 = vmax.f32 %v953_v45, 0.0 }
 0x265   :  { %v1137_v53 = vpack.c.bf16 %v1083_v49, %v1081_v48 }
 0x266   :  { %v1138_v55 = vpack.c.bf16 %v1084_v52, %v1082_v50  ;;  %v956_v56 = vpop.f32.mrb[52].mxu1 }
 0x267   :  { %v957_v58 = vadd.f32 %v956_v56, %v3747_v19  ;;  %v958_v60 = vpop.f32.mrb[53].mxu1 }
 0x268   :  { %v959_v61 = vadd.f32 %v958_v60, %v3750_v23  ;;  %v960_v62 = vpop.f32.mrb[54].mxu1  ;;  %1439 = vmatprep.mubr.bf16.mxu0 %v1138_v55 }
 0x269   :  { %v961_v0 = vadd.f32 %v960_v62, %v3747_v19  ;;  %v962_v1 = vpop.f32.mrb[55].mxu1  ;;  %1440 = vmatmul.mubr.bf16.gmra.mrb[48].mxu0 %v1137_v53  ;;  %v1085_v5 = vmax.f32 %v957_v58, 0.0 }
 0x26a   :  { %v963_v4 = vadd.f32 %v962_v1, %v3750_v23  ;;  %v1086_v8 = vmax.f32 %v959_v61, 0.0 }
 0x26b   :  { %v1087_v6 = vmax.f32 %v961_v0, 0.0 }
 0x26c   :  { %v1088_v10 = vmax.f32 %v963_v4, 0.0 }
 0x26d   :  { %v1139_v11 = vpack.c.bf16 %v1087_v6, %v1085_v5 }
 0x26e   :  { %v1140_v12 = vpack.c.bf16 %v1088_v10, %v1086_v8  ;;  %v966_v14 = vpop.f32.mrb[56].mxu1 }
 0x26f   :  { %v967_v37 = vadd.f32 %v966_v14, %v3747_v19  ;;  %v968_v38 = vpop.f32.mrb[57].mxu1 }
 0x270   :  { %v969_v15 = vadd.f32 %v968_v38, %v3750_v23  ;;  %v970_v3 = vpop.f32.mrb[58].mxu1  ;;  %1449 = vmatprep.mubr.bf16.mxu0 %v1140_v12 }
 0x271   :  { %v971_v7 = vadd.f32 %v970_v3, %v3747_v19  ;;  %v972_v39 = vpop.f32.mrb[59].mxu1  ;;  %1450 = vmatmul.mubr.bf16.gmra.mrb[52].mxu0 %v1139_v11  ;;  %v1089_v9 = vmax.f32 %v967_v37, 0.0 }
 0x272   :  { %v973_v43 = vadd.f32 %v972_v39, %v3750_v23  ;;  %v1090_v47 = vmax.f32 %v969_v15, 0.0 }
 0x273   :  { %v1091_v13 = vmax.f32 %v971_v7, 0.0 }
 0x274   :  { %v1092_v51 = vmax.f32 %v973_v43, 0.0 }
 0x275   :  { %v1141_v59 = vpack.c.bf16 %v1091_v13, %v1089_v9 }
 0x276   :  { %v1142_v63 = vpack.c.bf16 %v1092_v51, %v1090_v47  ;;  %v976_v16 = vpop.f32.mrb[60].mxu1 }
 0x277   :  { %v977_v17 = vadd.f32 %v976_v16, %v3747_v19  ;;  %v978_v18 = vpop.f32.mrb[61].mxu1 }
 0x278   :  { %v979_v20 = vadd.f32 %v978_v18, %v3750_v23  ;;  %v980_v21 = vpop.f32.mrb[62].mxu1  ;;  %1459 = vmatprep.mubr.bf16.mxu0 %v1142_v63 }
 0x279   :  { %v981_v22 = vadd.f32 %v980_v21, %v3747_v19  ;;  %v982_v24 = vpop.f32.mrb[63].mxu1  ;;  %1460 = vmatmul.mubr.bf16.gmra.mrb[56].mxu0 %v1141_v59  ;;  %v1093_v26 = vmax.f32 %v977_v17, 0.0 }
 0x27a   :  { %v983_v25 = vadd.f32 %v982_v24, %v3750_v23  ;;  %v1094_v28 = vmax.f32 %v979_v20, 0.0 }
 0x27b   :  { %v1095_v27 = vmax.f32 %v981_v22, 0.0 }
 0x27c   :  { %v1096_v29 = vmax.f32 %v983_v25, 0.0 }
 0x27d   :  { %v1143_v30 = vpack.c.bf16 %v1095_v27, %v1093_v26 }
 0x27e   :  { %v1144_v31 = vpack.c.bf16 %v1096_v29, %v1094_v28  ;;  %v986_v32 = vpop.f32.mrb[64].mxu1 }
 0x27f   :  { %v987_v33 = vadd.f32 %v986_v32, %v3747_v19  ;;  %v988_v35 = vpop.f32.mrb[65].mxu1 }
 0x280   :  { %v989_v40 = vadd.f32 %v988_v35, %v3750_v23  ;;  %v990_v41 = vpop.f32.mrb[66].mxu1  ;;  %1469 = vmatprep.mubr.bf16.mxu0 %v1144_v31 }
 0x281   :  { %v991_v42 = vadd.f32 %v990_v41, %v3747_v19  ;;  %v992_v44 = vpop.f32.mrb[67].mxu1  ;;  %1470 = vmatmul.mubr.bf16.gmra.mrb[60].mxu0 %v1143_v30  ;;  %v1097_v46 = vmax.f32 %v987_v33, 0.0 }
 0x282   :  { %v993_v45 = vadd.f32 %v992_v44, %v3750_v23  ;;  %v1098_v49 = vmax.f32 %v989_v40, 0.0  ;;  %v3279_v40 = vld [vmem:[#allocation5 + $0x3f4] ss:$8 sps:$4 sm:$0xff]  }
 0x283   :  { %v1099_v48 = vmax.f32 %v991_v42, 0.0  ;;  %v3277_v42 = vld [vmem:[#allocation5 + $0x3f0] ss:$8 sps:$4 sm:$0xff]   ;;  %1892 = vmatprep.subr.bf16.mxu1 %v3279_v40 }
 0x284   :  { %v1100_v50 = vmax.f32 %v993_v45, 0.0  ;;  %1893 = vmatpush1.bf16.msra.mxu1 %v3277_v42 }
 0x285   :  { %v1145_v52 = vpack.c.bf16 %v1099_v48, %v1097_v46 }
 0x286   :  { %v1146_v53 = vpack.c.bf16 %v1100_v50, %v1098_v49  ;;  %v996_v54 = vpop.f32.mrb[68].mxu1 }
 0x287   :  { %v997_v55 = vadd.f32 %v996_v54, %v3747_v19  ;;  %v998_v56 = vpop.f32.mrb[69].mxu1 }
 0x288   :  { %v999_v57 = vadd.f32 %v998_v56, %v3750_v23  ;;  %v1000_v58 = vpop.f32.mrb[70].mxu1  ;;  %1479 = vmatprep.mubr.bf16.mxu0 %v1146_v53 }
 0x289   :  { %v1001_v60 = vadd.f32 %v1000_v58, %v3747_v19  ;;  %v1002_v61 = vpop.f32.mrb[71].mxu1  ;;  %1480 = vmatmul.mubr.bf16.gmra.mrb[64].mxu0 %v1145_v52  ;;  %v1101_v0 = vmax.f32 %v997_v55, 0.0 }
 0x28a   :  { %v1003_v62 = vadd.f32 %v1002_v61, %v3750_v23  ;;  %v1102_v2 = vmax.f32 %v999_v57, 0.0 }
 0x28b   :  { %v1103_v1 = vmax.f32 %v1001_v60, 0.0 }
 0x28c   :  { %v1104_v4 = vmax.f32 %v1003_v62, 0.0 }
 0x28d   :  { %v1147_v5 = vpack.c.bf16 %v1103_v1, %v1101_v0 }
 0x28e   :  { %v1148_v6 = vpack.c.bf16 %v1104_v4, %v1102_v2  ;;  %v1006_v8 = vpop.f32.mrb[72].mxu1 }
 0x28f   :  { %v1007_v10 = vadd.f32 %v1006_v8, %v3747_v19  ;;  %v1008_v11 = vpop.f32.mrb[73].mxu1 }
 0x290   :  { %v1009_v12 = vadd.f32 %v1008_v11, %v3750_v23  ;;  %v1010_v14 = vpop.f32.mrb[74].mxu1  ;;  %1489 = vmatprep.mubr.bf16.mxu0 %v1148_v6 }
 0x291   :  { %v1011_v37 = vadd.f32 %v1010_v14, %v3747_v19  ;;  %v1012_v38 = vpop.f32.mrb[75].mxu1  ;;  %1490 = vmatmul.mubr.bf16.gmra.mrb[68].mxu0 %v1147_v5  ;;  %v1105_v3 = vmax.f32 %v1007_v10, 0.0 }
 0x292   :  { %v1013_v15 = vadd.f32 %v1012_v38, %v3750_v23  ;;  %v1106_v39 = vmax.f32 %v1009_v12, 0.0 }
 0x293   :  { %v1107_v7 = vmax.f32 %v1011_v37, 0.0 }
 0x294   :  { %v1108_v43 = vmax.f32 %v1013_v15, 0.0 }
 0x295   :  { %v1149_v9 = vpack.c.bf16 %v1107_v7, %v1105_v3 }
 0x296   :  { %v1150_v13 = vpack.c.bf16 %v1108_v43, %v1106_v39  ;;  %v1016_v47 = vpop.f32.mrb[76].mxu1 }
 0x297   :  { %v1017_v51 = vadd.f32 %v1016_v47, %v3747_v19  ;;  %v1018_v59 = vpop.f32.mrb[77].mxu1 }
 0x298   :  { %v1019_v63 = vadd.f32 %v1018_v59, %v3750_v23  ;;  %v1020_v16 = vpop.f32.mrb[78].mxu1  ;;  %1499 = vmatprep.mubr.bf16.mxu0 %v1150_v13 }
 0x299   :  { %v1021_v17 = vadd.f32 %v1020_v16, %v3747_v19  ;;  %v1022_v18 = vpop.f32.mrb[79].mxu1  ;;  %1500 = vmatmul.mubr.bf16.gmra.mrb[72].mxu0 %v1149_v9  ;;  %v1109_v21 = vmax.f32 %v1017_v51, 0.0 }
 0x29a   :  { %v1023_v20 = vadd.f32 %v1022_v18, %v3750_v23  ;;  %v1110_v24 = vmax.f32 %v1019_v63, 0.0 }
 0x29b   :  { %v1111_v22 = vmax.f32 %v1021_v17, 0.0 }
 0x29c   :  { %v1112_v25 = vmax.f32 %v1023_v20, 0.0 }
 0x29d   :  { %v1151_v26 = vpack.c.bf16 %v1111_v22, %v1109_v21 }
 0x29e   :  { %v1152_v27 = vpack.c.bf16 %v1112_v25, %v1110_v24  ;;  %v1026_v28 = vpop.f32.mrb[80].mxu1 }
 0x29f   :  { %v1027_v29 = vadd.f32 %v1026_v28, %v3747_v19  ;;  %v1028_v30 = vpop.f32.mrb[81].mxu1  ;;  %v1195_v28 = vld [vmem:[#allocation7 + $0x4] sm:$0x3] }
 0x2a0   :  { %v1029_v31 = vadd.f32 %v1028_v30, %v3750_v23  ;;  %v1030_v32 = vpop.f32.mrb[82].mxu1  ;;  %1509 = vmatprep.mubr.bf16.mxu0 %v1152_v27  ;;  %v3281_v27 = vld [vmem:[#allocation8] sm:$0xff]   ;;  %v3283_v30 = vld [vmem:[#allocation8 + $0x8] sm:$0xff]  }
 0x2a1   :  { %v1031_v33 = vadd.f32 %v1030_v32, %v3747_v19  ;;  %v1032_v35 = vpop.f32.mrb[83].mxu1  ;;  %1510 = vmatmul.mubr.bf16.gmra.mrb[76].mxu0 %v1151_v26  ;;  %v1113_v44 = vmax.f32 %v1027_v29, 0.0  ;;  %v3280_v26 = vld [vmem:[#allocation8 + $0x40] sm:$0xff]   ;;  %v3282_v29 = vld [vmem:[#allocation8 + $0x48] sm:$0xff]  }
 0x2a2   :  { %v1033_v41 = vadd.f32 %v1032_v35, %v3750_v23  ;;  %v1114_v46 = vmax.f32 %v1029_v31, 0.0  ;;  %2931 = vmatprep.subr.bf16.mxu0 %v3280_v26 }
 0x2a3   :  { %v1115_v45 = vmax.f32 %v1031_v33, 0.0  ;;  %2932 = vmatpush3.bf16.msra.mxu0 %v3281_v27 }
 0x2a4   :  { %v1116_v48 = vmax.f32 %v1033_v41, 0.0  ;;  %2933 = vmatprep.subr.bf16.mxu0 %v3282_v29 }
 0x2a5   :  { %v1153_v49 = vpack.c.bf16 %v1115_v45, %v1113_v44  ;;  %v3284_v44 = vld [vmem:[#allocation8 + $0x50] sm:$0xff]  }
 0x2a6   :  { %v1154_v50 = vpack.c.bf16 %v1116_v48, %v1114_v46  ;;  %v1036_v52 = vpop.f32.mrb[84].mxu1  ;;  %v3285_v45 = vld [vmem:[#allocation8 + $0x10] sm:$0xff]   ;;  %v3286_v46 = vld [vmem:[#allocation8 + $0x58] sm:$0xff]  }
 0x2a7   :  { %v1037_v53 = vadd.f32 %v1036_v52, %v3747_v19  ;;  %v1038_v54 = vpop.f32.mrb[85].mxu1  ;;  %2934 = vmatpush3.bf16.msra.mxu0 %v3283_v30 }
 0x2a8   :  { %v1039_v55 = vadd.f32 %v1038_v54, %v3750_v23  ;;  %v1040_v56 = vpop.f32.mrb[86].mxu1  ;;  %1519 = vmatprep.mubr.bf16.mxu0 %v1154_v50  ;;  %2935 = vmatprep.subr.bf16.mxu0 %v3284_v44  ;;  %v3287_v54 = vld [vmem:[#allocation8 + $0x18] sm:$0xff]  }
 0x2a9   :  { %v1041_v57 = vadd.f32 %v1040_v56, %v3747_v19  ;;  %v1042_v58 = vpop.f32.mrb[87].mxu1  ;;  %1520 = vmatmul.mubr.bf16.gmra.mrb[80].mxu0 %v1153_v49  ;;  %v1117_v61 = vmax.f32 %v1037_v53, 0.0  ;;  %v3288_v56 = vld [vmem:[#allocation8 + $0x60] sm:$0xff]  }
 0x2aa   :  { %v1043_v60 = vadd.f32 %v1042_v58, %v3750_v23  ;;  %v1118_v0 = vmax.f32 %v1039_v55, 0.0 }
 0x2ab   :  { %v1119_v62 = vmax.f32 %v1041_v57, 0.0  ;;  %2936 = vmatpush3.bf16.msra.mxu0 %v3285_v45 }
 0x2ac   :  { %v1120_v1 = vmax.f32 %v1043_v60, 0.0  ;;  %2937 = vmatprep.subr.bf16.mxu0 %v3286_v46 }
 0x2ad   :  { %v1155_v2 = vpack.c.bf16 %v1119_v62, %v1117_v61 }
 0x2ae   :  { %v1156_v4 = vpack.c.bf16 %v1120_v1, %v1118_v0  ;;  %v1046_v5 = vpop.f32.mrb[88].mxu1  ;;  %v3289_v1 = vld [vmem:[#allocation8 + $0x20] sm:$0xff]  }
 0x2af   :  { %v1047_v6 = vadd.f32 %v1046_v5, %v3747_v19  ;;  %v1048_v8 = vpop.f32.mrb[89].mxu1  ;;  %2938 = vmatpush3.bf16.msra.mxu0 %v3287_v54  ;;  %v3290_v5 = vld [vmem:[#allocation8 + $0x68] sm:$0xff]  }
 0x2b0   :  { %v1049_v10 = vadd.f32 %v1048_v8, %v3750_v23  ;;  %v1050_v11 = vpop.f32.mrb[90].mxu1  ;;  %1529 = vmatprep.mubr.bf16.mxu0 %v1156_v4  ;;  %2939 = vmatprep.subr.bf16.mxu0 %v3288_v56 }
 0x2b1   :  { %v1051_v12 = vadd.f32 %v1050_v11, %v3747_v19  ;;  %v1052_v14 = vpop.f32.mrb[91].mxu1  ;;  %1530 = vmatmul.mubr.bf16.gmra.mrb[84].mxu0 %v1155_v2  ;;  %v1121_v38 = vmax.f32 %v1047_v6, 0.0 }
 0x2b2   :  { %v1053_v37 = vadd.f32 %v1052_v14, %v3750_v23  ;;  %v1122_v3 = vmax.f32 %v1049_v10, 0.0  ;;  %v3291_v14 = vld [vmem:[#allocation8 + $0x28] sm:$0xff]  }
 0x2b3   :  { %v1123_v15 = vmax.f32 %v1051_v12, 0.0  ;;  %2940 = vmatpush3.bf16.msra.mxu0 %v3289_v1 }
 0x2b4   :  { %v1124_v7 = vmax.f32 %v1053_v37, 0.0  ;;  %2941 = vmatprep.subr.bf16.mxu0 %v3290_v5 }
 0x2b5   :  { %v1157_v39 = vpack.c.bf16 %v1123_v15, %v1121_v38  ;;  %v3292_v38 = vld [vmem:[#allocation8 + $0x70] sm:$0xff]  }
 0x2b6   :  { %v1158_v43 = vpack.c.bf16 %v1124_v7, %v1122_v3  ;;  %v1056_v9 = vpop.f32.mrb[92].mxu1 }
 0x2b7   :  { %v1057_v13 = vadd.f32 %v1056_v9, %v3747_v19  ;;  %v1058_v47 = vpop.f32.mrb[93].mxu1  ;;  %2942 = vmatpush3.bf16.msra.mxu0 %v3291_v14 }
 0x2b8   :  { %v1059_v51 = vadd.f32 %v1058_v47, %v3750_v23  ;;  %v1060_v59 = vpop.f32.mrb[94].mxu1  ;;  %1539 = vmatprep.mubr.bf16.mxu0 %v1158_v43  ;;  %2943 = vmatprep.subr.bf16.mxu0 %v3292_v38 }
 0x2b9   :  { %v1061_v63 = vadd.f32 %v1060_v59, %v3747_v19  ;;  %v1062_v16 = vpop.f32.mrb[95].mxu1  ;;  %1540 = vmatmul.mubr.bf16.gmra.mrb[88].mxu0 %v1157_v39  ;;  %v1125_v18 = vmax.f32 %v1057_v13, 0.0  ;;  %v3817_v19 = vrot.slane %v1195_v28, %v3636_v34  ;;  %v3293_v13 = vld [vmem:[#allocation8 + $0x30] sm:$0xff]   ;;  %v3294_v59 = vld [vmem:[#allocation8 + $0x78] sm:$0xff]  }
 0x2ba   :  { %v1063_v17 = vadd.f32 %v1062_v16, %v3750_v23  ;;  %v1126_v21 = vmax.f32 %v1059_v51, 0.0  ;;  %v3820_v23 = vrot.slane %v1195_v28, %v3638_v36 }
 0x2bb   :  { %v1127_v20 = vmax.f32 %v1061_v63, 0.0  ;;  %2944 = vmatpush3.bf16.msra.mxu0 %v3293_v13 }
 0x2bc   :  { %v1128_v22 = vmax.f32 %v1063_v17, 0.0  ;;  %2945 = vmatprep.subr.bf16.mxu0 %v3294_v59 }
 0x2bd   :  { %v1159_v24 = vpack.c.bf16 %v1127_v20, %v1125_v18 }
 0x2be   :  { %v1160_v25 = vpack.c.bf16 %v1128_v22, %v1126_v21  ;;  %v3295_v21 = vld [vmem:[#allocation8 + $0x38] sm:$0xff]  }
 0x2bf   :  { %2946 = vmatpush3.bf16.msra.mxu0 %v3295_v21 }
 0x2c0   :  { %1549 = vmatprep.mubr.bf16.mxu0 %v1160_v25 }
 0x2c1   :  { %1550 = vmatmul.mubr.bf16.gmra.mrb[92].mxu0 %v1159_v24 }
 0x31c   :  { %v1401_v31 = vpop.f32.mrb[32].mxu0 }
 0x31d   :  { %v1402_v32 = vadd.f32 %v1401_v31, %v3817_v19  ;;  %v1403_v33 = vpop.f32.mrb[33].mxu0 }
 0x31e   :  { %v1404_v35 = vadd.f32 %v1403_v33, %v3820_v23  ;;  %v1405_v40 = vpop.f32.mrb[34].mxu0 }
 0x31f   :  { %v1406_v41 = vadd.f32 %v1405_v40, %v3817_v19  ;;  %v1407_v42 = vpop.f32.mrb[35].mxu0  ;;  %v1560_v49 = vmax.f32 %v1402_v32, 0.0 }
 0x320   :  { %v1408_v48 = vadd.f32 %v1407_v42, %v3820_v23  ;;  %v1561_v52 = vmax.f32 %v1404_v35, 0.0 }
 0x321   :  { %v1562_v50 = vmax.f32 %v1406_v41, 0.0 }
 0x322   :  { %v1563_v53 = vmax.f32 %v1408_v48, 0.0 }
 0x323   :  { %v1624_v55 = vpack.c.bf16 %v1562_v50, %v1560_v49 }
 0x324   :  { %v1625_v57 = vpack.c.bf16 %v1563_v53, %v1561_v52  ;;  %v1411_v58 = vpop.f32.mrb[36].mxu0 }
 0x325   :  { %v1412_v60 = vadd.f32 %v1411_v58, %v3817_v19  ;;  %v1413_v61 = vpop.f32.mrb[37].mxu0 }
 0x326   :  { %v1414_v62 = vadd.f32 %v1413_v61, %v3820_v23  ;;  %v1415_v0 = vpop.f32.mrb[38].mxu0  ;;  %1894 = vmatprep.mubr.bf16.mxu1 %v1625_v57 }
 0x327   :  { %v1416_v2 = vadd.f32 %v1415_v0, %v3817_v19  ;;  %v1417_v4 = vpop.f32.mrb[39].mxu0  ;;  %1895 = vmatmul.mubr.bf16.vlgmr.msra.gmra.mrb[96].mxu1 %v1624_v55  ;;  %v1564_v8 = vmax.f32 %v1412_v60, 0.0 }
 0x328   :  { %v1418_v6 = vadd.f32 %v1417_v4, %v3820_v23  ;;  %v1565_v11 = vmax.f32 %v1414_v62, 0.0 }
 0x329   :  { %v1566_v10 = vmax.f32 %v1416_v2, 0.0 }
 0x32a   :  { %v1567_v12 = vmax.f32 %v1418_v6, 0.0 }
 0x32b   :  { %v1626_v37 = vpack.c.bf16 %v1566_v10, %v1564_v8 }
 0x32c   :  { %v1627_v15 = vpack.c.bf16 %v1567_v12, %v1565_v11  ;;  %v1421_v3 = vpop.f32.mrb[40].mxu0 }
 0x32d   :  { %v1422_v7 = vadd.f32 %v1421_v3, %v3817_v19  ;;  %v1423_v39 = vpop.f32.mrb[41].mxu0 }
 0x32e   :  { %v1424_v43 = vadd.f32 %v1423_v39, %v3820_v23  ;;  %v1425_v9 = vpop.f32.mrb[42].mxu0  ;;  %1904 = vmatprep.mubr.bf16.mxu1 %v1627_v15 }
 0x32f   :  { %v1426_v47 = vadd.f32 %v1425_v9, %v3817_v19  ;;  %v1427_v51 = vpop.f32.mrb[43].mxu0  ;;  %1905 = vmatmul.mubr.bf16.gmra.mrb[100].mxu1 %v1626_v37  ;;  %v1568_v16 = vmax.f32 %v1422_v7, 0.0 }
 0x330   :  { %v1428_v63 = vadd.f32 %v1427_v51, %v3820_v23  ;;  %v1569_v18 = vmax.f32 %v1424_v43, 0.0 }
 0x331   :  { %v1570_v17 = vmax.f32 %v1426_v47, 0.0 }
 0x332   :  { %v1571_v20 = vmax.f32 %v1428_v63, 0.0 }
 0x333   :  { %v1628_v22 = vpack.c.bf16 %v1570_v17, %v1568_v16 }
 0x334   :  { %v1629_v24 = vpack.c.bf16 %v1571_v20, %v1569_v18  ;;  %v1431_v25 = vpop.f32.mrb[44].mxu0 }
 0x335   :  { %v1432_v26 = vadd.f32 %v1431_v25, %v3817_v19  ;;  %v1433_v27 = vpop.f32.mrb[45].mxu0 }
 0x336   :  { %v1434_v28 = vadd.f32 %v1433_v27, %v3820_v23  ;;  %v1435_v29 = vpop.f32.mrb[46].mxu0  ;;  %1914 = vmatprep.mubr.bf16.mxu1 %v1629_v24 }
 0x337   :  { %v1436_v30 = vadd.f32 %v1435_v29, %v3817_v19  ;;  %v1437_v31 = vpop.f32.mrb[47].mxu0  ;;  %1915 = vmatmul.mubr.bf16.gmra.mrb[104].mxu1 %v1628_v22  ;;  %v1572_v33 = vmax.f32 %v1432_v26, 0.0 }
 0x338   :  { %v1438_v32 = vadd.f32 %v1437_v31, %v3820_v23  ;;  %v1573_v40 = vmax.f32 %v1434_v28, 0.0 }
 0x339   :  { %v1574_v35 = vmax.f32 %v1436_v30, 0.0 }
 0x33a   :  { %v1575_v41 = vmax.f32 %v1438_v32, 0.0 }
 0x33b   :  { %v1630_v42 = vpack.c.bf16 %v1574_v35, %v1572_v33 }
 0x33c   :  { %v1631_v44 = vpack.c.bf16 %v1575_v41, %v1573_v40  ;;  %v1441_v45 = vpop.f32.mrb[48].mxu0 }
 0x33d   :  { %v1442_v46 = vadd.f32 %v1441_v45, %v3817_v19  ;;  %v1443_v48 = vpop.f32.mrb[49].mxu0 }
 0x33e   :  { %v1444_v49 = vadd.f32 %v1443_v48, %v3820_v23  ;;  %v1445_v50 = vpop.f32.mrb[50].mxu0  ;;  %1924 = vmatprep.mubr.bf16.mxu1 %v1631_v44 }
 0x33f   :  { %v1446_v52 = vadd.f32 %v1445_v50, %v3817_v19  ;;  %v1447_v53 = vpop.f32.mrb[51].mxu0  ;;  %1925 = vmatmul.mubr.bf16.gmra.mrb[108].mxu1 %v1630_v42  ;;  %v1576_v55 = vmax.f32 %v1442_v46, 0.0 }
 0x340   :  { %v1448_v54 = vadd.f32 %v1447_v53, %v3820_v23  ;;  %v1577_v57 = vmax.f32 %v1444_v49, 0.0 }
 0x341   :  { %v1578_v56 = vmax.f32 %v1446_v52, 0.0 }
 0x342   :  { %v1579_v58 = vmax.f32 %v1448_v54, 0.0 }
 0x343   :  { %v1632_v60 = vpack.c.bf16 %v1578_v56, %v1576_v55 }
 0x344   :  { %v1633_v61 = vpack.c.bf16 %v1579_v58, %v1577_v57  ;;  %v1451_v62 = vpop.f32.mrb[52].mxu0 }
 0x345   :  { %v1452_v0 = vadd.f32 %v1451_v62, %v3817_v19  ;;  %v1453_v1 = vpop.f32.mrb[53].mxu0 }
 0x346   :  { %v1454_v2 = vadd.f32 %v1453_v1, %v3820_v23  ;;  %v1455_v4 = vpop.f32.mrb[54].mxu0  ;;  %1934 = vmatprep.mubr.bf16.mxu1 %v1633_v61 }
 0x347   :  { %v1456_v5 = vadd.f32 %v1455_v4, %v3817_v19  ;;  %v1457_v6 = vpop.f32.mrb[55].mxu0  ;;  %1935 = vmatmul.mubr.bf16.gmra.mrb[112].mxu1 %v1632_v60  ;;  %v1580_v10 = vmax.f32 %v1452_v0, 0.0 }
 0x348   :  { %v1458_v8 = vadd.f32 %v1457_v6, %v3820_v23  ;;  %v1581_v12 = vmax.f32 %v1454_v2, 0.0 }
 0x349   :  { %v1582_v11 = vmax.f32 %v1456_v5, 0.0 }
 0x34a   :  { %v1583_v14 = vmax.f32 %v1458_v8, 0.0 }
 0x34b   :  { %v1634_v37 = vpack.c.bf16 %v1582_v11, %v1580_v10 }
 0x34c   :  { %v1635_v38 = vpack.c.bf16 %v1583_v14, %v1581_v12  ;;  %v1461_v15 = vpop.f32.mrb[56].mxu0 }
 0x34d   :  { %v1462_v3 = vadd.f32 %v1461_v15, %v3817_v19  ;;  %v1463_v7 = vpop.f32.mrb[57].mxu0 }
 0x34e   :  { %v1464_v39 = vadd.f32 %v1463_v7, %v3820_v23  ;;  %v1465_v43 = vpop.f32.mrb[58].mxu0  ;;  %1944 = vmatprep.mubr.bf16.mxu1 %v1635_v38 }
 0x34f   :  { %v1466_v9 = vadd.f32 %v1465_v43, %v3817_v19  ;;  %v1467_v13 = vpop.f32.mrb[59].mxu0  ;;  %1945 = vmatmul.mubr.bf16.gmra.mrb[116].mxu1 %v1634_v37  ;;  %v1584_v51 = vmax.f32 %v1462_v3, 0.0 }
 0x350   :  { %v1468_v47 = vadd.f32 %v1467_v13, %v3820_v23  ;;  %v1585_v63 = vmax.f32 %v1464_v39, 0.0 }
 0x351   :  { %v1586_v59 = vmax.f32 %v1466_v9, 0.0 }
 0x352   :  { %v1587_v16 = vmax.f32 %v1468_v47, 0.0 }
 0x353   :  { %v1636_v17 = vpack.c.bf16 %v1586_v59, %v1584_v51 }
 0x354   :  { %v1637_v18 = vpack.c.bf16 %v1587_v16, %v1585_v63  ;;  %v1471_v20 = vpop.f32.mrb[60].mxu0 }
 0x355   :  { %v1472_v21 = vadd.f32 %v1471_v20, %v3817_v19  ;;  %v1473_v22 = vpop.f32.mrb[61].mxu0 }
 0x356   :  { %v1474_v24 = vadd.f32 %v1473_v22, %v3820_v23  ;;  %v1475_v25 = vpop.f32.mrb[62].mxu0  ;;  %1954 = vmatprep.mubr.bf16.mxu1 %v1637_v18 }
 0x357   :  { %v1476_v26 = vadd.f32 %v1475_v25, %v3817_v19  ;;  %v1477_v27 = vpop.f32.mrb[63].mxu0  ;;  %1955 = vmatmul.mubr.bf16.gmra.mrb[120].mxu1 %v1636_v17  ;;  %v1588_v29 = vmax.f32 %v1472_v21, 0.0 }
 0x358   :  { %v1478_v28 = vadd.f32 %v1477_v27, %v3820_v23  ;;  %v1589_v31 = vmax.f32 %v1474_v24, 0.0 }
 0x359   :  { %v1590_v30 = vmax.f32 %v1476_v26, 0.0 }
 0x35a   :  { %v1591_v32 = vmax.f32 %v1478_v28, 0.0 }
 0x35b   :  { %v1638_v33 = vpack.c.bf16 %v1590_v30, %v1588_v29 }
 0x35c   :  { %v1639_v35 = vpack.c.bf16 %v1591_v32, %v1589_v31  ;;  %v1481_v40 = vpop.f32.mrb[64].mxu0 }
 0x35d   :  { %v1482_v41 = vadd.f32 %v1481_v40, %v3817_v19  ;;  %v1483_v42 = vpop.f32.mrb[65].mxu0 }
 0x35e   :  { %v1484_v44 = vadd.f32 %v1483_v42, %v3820_v23  ;;  %v1485_v45 = vpop.f32.mrb[66].mxu0  ;;  %1964 = vmatprep.mubr.bf16.mxu1 %v1639_v35 }
 0x35f   :  { %v1486_v46 = vadd.f32 %v1485_v45, %v3817_v19  ;;  %v1487_v48 = vpop.f32.mrb[67].mxu0  ;;  %1965 = vmatmul.mubr.bf16.gmra.mrb[124].mxu1 %v1638_v33  ;;  %v1592_v50 = vmax.f32 %v1482_v41, 0.0 }
 0x360   :  { %v1488_v49 = vadd.f32 %v1487_v48, %v3820_v23  ;;  %v1593_v53 = vmax.f32 %v1484_v44, 0.0 }
 0x361   :  { %v1594_v52 = vmax.f32 %v1486_v46, 0.0 }
 0x362   :  { %v1595_v54 = vmax.f32 %v1488_v49, 0.0 }
 0x363   :  { %v1640_v55 = vpack.c.bf16 %v1594_v52, %v1592_v50 }
 0x364   :  { %v1641_v56 = vpack.c.bf16 %v1595_v54, %v1593_v53  ;;  %v1491_v57 = vpop.f32.mrb[68].mxu0 }
 0x365   :  { %v1492_v58 = vadd.f32 %v1491_v57, %v3817_v19  ;;  %v1493_v60 = vpop.f32.mrb[69].mxu0 }
 0x366   :  { %v1494_v61 = vadd.f32 %v1493_v60, %v3820_v23  ;;  %v1495_v62 = vpop.f32.mrb[70].mxu0  ;;  %1974 = vmatprep.mubr.bf16.mxu1 %v1641_v56 }
 0x367   :  { %v1496_v0 = vadd.f32 %v1495_v62, %v3817_v19  ;;  %v1497_v1 = vpop.f32.mrb[71].mxu0  ;;  %1975 = vmatmul.mubr.bf16.gmra.mrb[128].mxu1 %v1640_v55  ;;  %v1596_v4 = vmax.f32 %v1492_v58, 0.0 }
 0x368   :  { %v1498_v2 = vadd.f32 %v1497_v1, %v3820_v23  ;;  %v1597_v6 = vmax.f32 %v1494_v61, 0.0 }
 0x369   :  { %v1598_v5 = vmax.f32 %v1496_v0, 0.0 }
 0x36a   :  { %v1599_v8 = vmax.f32 %v1498_v2, 0.0 }
 0x36b   :  { %v1642_v10 = vpack.c.bf16 %v1598_v5, %v1596_v4 }
 0x36c   :  { %v1643_v11 = vpack.c.bf16 %v1599_v8, %v1597_v6  ;;  %v1501_v12 = vpop.f32.mrb[72].mxu0 }
 0x36d   :  { %v1502_v14 = vadd.f32 %v1501_v12, %v3817_v19  ;;  %v1503_v37 = vpop.f32.mrb[73].mxu0 }
 0x36e   :  { %v1504_v38 = vadd.f32 %v1503_v37, %v3820_v23  ;;  %v1505_v15 = vpop.f32.mrb[74].mxu0  ;;  %1984 = vmatprep.mubr.bf16.mxu1 %v1643_v11 }
 0x36f   :  { %v1506_v3 = vadd.f32 %v1505_v15, %v3817_v19  ;;  %v1507_v7 = vpop.f32.mrb[75].mxu0  ;;  %1985 = vmatmul.mubr.bf16.gmra.mrb[132].mxu1 %v1642_v10  ;;  %v1600_v43 = vmax.f32 %v1502_v14, 0.0 }
 0x370   :  { %v1508_v39 = vadd.f32 %v1507_v7, %v3820_v23  ;;  %v1601_v13 = vmax.f32 %v1504_v38, 0.0 }
 0x371   :  { %v1602_v9 = vmax.f32 %v1506_v3, 0.0 }
 0x372   :  { %v1603_v47 = vmax.f32 %v1508_v39, 0.0 }
 0x373   :  { %v1644_v51 = vpack.c.bf16 %v1602_v9, %v1600_v43 }
 0x374   :  { %v1645_v59 = vpack.c.bf16 %v1603_v47, %v1601_v13  ;;  %v1511_v63 = vpop.f32.mrb[76].mxu0 }
 0x375   :  { %v1512_v16 = vadd.f32 %v1511_v63, %v3817_v19  ;;  %v1513_v17 = vpop.f32.mrb[77].mxu0 }
 0x376   :  { %v1514_v18 = vadd.f32 %v1513_v17, %v3820_v23  ;;  %v1515_v20 = vpop.f32.mrb[78].mxu0  ;;  %1994 = vmatprep.mubr.bf16.mxu1 %v1645_v59 }
 0x377   :  { %v1516_v21 = vadd.f32 %v1515_v20, %v3817_v19  ;;  %v1517_v22 = vpop.f32.mrb[79].mxu0  ;;  %1995 = vmatmul.mubr.bf16.gmra.mrb[136].mxu1 %v1644_v51  ;;  %v1604_v25 = vmax.f32 %v1512_v16, 0.0 }
 0x378   :  { %v1518_v24 = vadd.f32 %v1517_v22, %v3820_v23  ;;  %v1605_v27 = vmax.f32 %v1514_v18, 0.0 }
 0x379   :  { %v1606_v26 = vmax.f32 %v1516_v21, 0.0 }
 0x37a   :  { %v1607_v28 = vmax.f32 %v1518_v24, 0.0 }
 0x37b   :  { %v1646_v29 = vpack.c.bf16 %v1606_v26, %v1604_v25 }
 0x37c   :  { %v1647_v30 = vpack.c.bf16 %v1607_v28, %v1605_v27  ;;  %v1521_v31 = vpop.f32.mrb[80].mxu0  ;;  %v1690_v27 = vld [vmem:[#allocation7 + $0x6] sm:$0x3] }
 0x37d   :  { %v1522_v32 = vadd.f32 %v1521_v31, %v3817_v19  ;;  %v1523_v33 = vpop.f32.mrb[81].mxu0  ;;  %v3887_v28 = vrot.slane %v1690_v27, %v3636_v34 }
 0x37e   :  { %v1524_v35 = vadd.f32 %v1523_v33, %v3820_v23  ;;  %v1525_v40 = vpop.f32.mrb[82].mxu0  ;;  %2004 = vmatprep.mubr.bf16.mxu1 %v1647_v30 }
 0x37f   :  { %v1526_v41 = vadd.f32 %v1525_v40, %v3817_v19  ;;  %v1527_v42 = vpop.f32.mrb[83].mxu0  ;;  %2005 = vmatmul.mubr.bf16.gmra.mrb[140].mxu1 %v1646_v29  ;;  %v1608_v45 = vmax.f32 %v1522_v32, 0.0  ;;  %v3890_v29 = vrot.slane %v1690_v27, %v3638_v36 }
 0x380   :  { %v1528_v44 = vadd.f32 %v1527_v42, %v3820_v23  ;;  %v1609_v48 = vmax.f32 %v1524_v35, 0.0 }
 0x381   :  { %v1610_v46 = vmax.f32 %v1526_v41, 0.0 }
 0x382   :  { %v1611_v49 = vmax.f32 %v1528_v44, 0.0 }
 0x383   :  { %v1648_v50 = vpack.c.bf16 %v1610_v46, %v1608_v45 }
 0x384   :  { %v1649_v52 = vpack.c.bf16 %v1611_v49, %v1609_v48  ;;  %v1531_v53 = vpop.f32.mrb[84].mxu0 }
 0x385   :  { %v1532_v54 = vadd.f32 %v1531_v53, %v3817_v19  ;;  %v1533_v55 = vpop.f32.mrb[85].mxu0 }
 0x386   :  { %v1534_v56 = vadd.f32 %v1533_v55, %v3820_v23  ;;  %v1535_v57 = vpop.f32.mrb[86].mxu0  ;;  %2014 = vmatprep.mubr.bf16.mxu1 %v1649_v52 }
 0x387   :  { %v1536_v58 = vadd.f32 %v1535_v57, %v3817_v19  ;;  %v1537_v60 = vpop.f32.mrb[87].mxu0  ;;  %2015 = vmatmul.mubr.bf16.gmra.mrb[144].mxu1 %v1648_v50  ;;  %v1612_v62 = vmax.f32 %v1532_v54, 0.0 }
 0x388   :  { %v1538_v61 = vadd.f32 %v1537_v60, %v3820_v23  ;;  %v1613_v1 = vmax.f32 %v1534_v56, 0.0 }
 0x389   :  { %v1614_v0 = vmax.f32 %v1536_v58, 0.0 }
 0x38a   :  { %v1615_v2 = vmax.f32 %v1538_v61, 0.0 }
 0x38b   :  { %v1650_v4 = vpack.c.bf16 %v1614_v0, %v1612_v62 }
 0x38c   :  { %v1651_v5 = vpack.c.bf16 %v1615_v2, %v1613_v1  ;;  %v1541_v6 = vpop.f32.mrb[88].mxu0 }
 0x38d   :  { %v1542_v8 = vadd.f32 %v1541_v6, %v3817_v19  ;;  %v1543_v10 = vpop.f32.mrb[89].mxu0 }
 0x38e   :  { %v1544_v11 = vadd.f32 %v1543_v10, %v3820_v23  ;;  %v1545_v12 = vpop.f32.mrb[90].mxu0  ;;  %2024 = vmatprep.mubr.bf16.mxu1 %v1651_v5 }
 0x38f   :  { %v1546_v14 = vadd.f32 %v1545_v12, %v3817_v19  ;;  %v1547_v37 = vpop.f32.mrb[91].mxu0  ;;  %2025 = vmatmul.mubr.bf16.gmra.mrb[148].mxu1 %v1650_v4  ;;  %v1616_v15 = vmax.f32 %v1542_v8, 0.0 }
 0x390   :  { %v1548_v38 = vadd.f32 %v1547_v37, %v3820_v23  ;;  %v1617_v7 = vmax.f32 %v1544_v11, 0.0 }
 0x391   :  { %v1618_v3 = vmax.f32 %v1546_v14, 0.0 }
 0x392   :  { %v1619_v39 = vmax.f32 %v1548_v38, 0.0 }
 0x393   :  { %v1652_v43 = vpack.c.bf16 %v1618_v3, %v1616_v15 }
 0x394   :  { %v1653_v9 = vpack.c.bf16 %v1619_v39, %v1617_v7  ;;  %v1551_v13 = vpop.f32.mrb[92].mxu0 }
 0x395   :  { %v1552_v47 = vadd.f32 %v1551_v13, %v3817_v19  ;;  %v1553_v51 = vpop.f32.mrb[93].mxu0 }
 0x396   :  { %v1554_v59 = vadd.f32 %v1553_v51, %v3820_v23  ;;  %v1555_v63 = vpop.f32.mrb[94].mxu0  ;;  %2034 = vmatprep.mubr.bf16.mxu1 %v1653_v9 }
 0x397   :  { %v1556_v16 = vadd.f32 %v1555_v63, %v3817_v19  ;;  %v1557_v17 = vpop.f32.mrb[95].mxu0  ;;  %2035 = vmatmul.mubr.bf16.gmra.mrb[152].mxu1 %v1652_v43  ;;  %v1620_v20 = vmax.f32 %v1552_v47, 0.0 }
 0x398   :  { %v1558_v18 = vadd.f32 %v1557_v17, %v3820_v23  ;;  %v1621_v22 = vmax.f32 %v1554_v59, 0.0 }
 0x399   :  { %v1622_v21 = vmax.f32 %v1556_v16, 0.0 }
 0x39a   :  { %v1623_v24 = vmax.f32 %v1558_v18, 0.0 }
 0x39b   :  { %v1654_v25 = vpack.c.bf16 %v1622_v21, %v1620_v20 }
 0x39c   :  { %v1655_v26 = vpack.c.bf16 %v1623_v24, %v1621_v22 }
 0x39e   :  { %2044 = vmatprep.mubr.bf16.mxu1 %v1655_v26 }
 0x39f   :  { %2045 = vmatmul.mubr.bf16.gmra.mrb[156].mxu1 %v1654_v25 }
 0x3fa   :  { %v1896_v19 = vpop.f32.mrb[96].mxu1 }
 0x3fb   :  { %v1897_v30 = vadd.f32 %v1896_v19, %v3887_v28  ;;  %v1898_v31 = vpop.f32.mrb[97].mxu1 }
 0x3fc   :  { %v1899_v23 = vadd.f32 %v1898_v31, %v3890_v29  ;;  %v1900_v32 = vpop.f32.mrb[98].mxu1 }
 0x3fd   :  { %v1901_v33 = vadd.f32 %v1900_v32, %v3887_v28  ;;  %v1902_v35 = vpop.f32.mrb[99].mxu1  ;;  %v2055_v41 = vmax.f32 %v1897_v30, 0.0 }
 0x3fe   :  { %v1903_v40 = vadd.f32 %v1902_v35, %v3890_v29  ;;  %v2056_v44 = vmax.f32 %v1899_v23, 0.0 }
 0x3ff   :  { %v2057_v42 = vmax.f32 %v1901_v33, 0.0 }
 0x400   :  { %v2058_v34 = vmax.f32 %v1903_v40, 0.0 }
 0x401   :  { %v2119_v45 = vpack.c.bf16 %v2057_v42, %v2055_v41 }
 0x402   :  { %v2120_v46 = vpack.c.bf16 %v2058_v34, %v2056_v44  ;;  %v1906_v36 = vpop.f32.mrb[100].mxu1 }
 0x403   :  { %v1907_v48 = vadd.f32 %v1906_v36, %v3887_v28  ;;  %v1908_v49 = vpop.f32.mrb[101].mxu1 }
 0x404   :  { %v1909_v50 = vadd.f32 %v1908_v49, %v3890_v29  ;;  %v1910_v52 = vpop.f32.mrb[102].mxu1  ;;  %2318 = vmatprep.mubr.bf16.mxu0 %v2120_v46 }
 0x405   :  { %v1911_v53 = vadd.f32 %v1910_v52, %v3887_v28  ;;  %v1912_v54 = vpop.f32.mrb[103].mxu1  ;;  %2319 = vmatmul.mubr.bf16.vlgmr.msra.gmra.mrb[96].mxu0 %v2119_v45  ;;  %v2059_v56 = vmax.f32 %v1907_v48, 0.0 }
 0x406   :  { %v1913_v55 = vadd.f32 %v1912_v54, %v3890_v29  ;;  %v2060_v58 = vmax.f32 %v1909_v50, 0.0 }
 0x407   :  { %v2061_v57 = vmax.f32 %v1911_v53, 0.0 }
 0x408   :  { %v2062_v60 = vmax.f32 %v1913_v55, 0.0 }
 0x409   :  { %v2121_v61 = vpack.c.bf16 %v2061_v57, %v2059_v56 }
 0x40a   :  { %v2122_v62 = vpack.c.bf16 %v2062_v60, %v2060_v58  ;;  %v1916_v0 = vpop.f32.mrb[104].mxu1 }
 0x40b   :  { %v1917_v1 = vadd.f32 %v1916_v0, %v3887_v28  ;;  %v1918_v2 = vpop.f32.mrb[105].mxu1 }
 0x40c   :  { %v1919_v4 = vadd.f32 %v1918_v2, %v3890_v29  ;;  %v1920_v5 = vpop.f32.mrb[106].mxu1  ;;  %2326 = vmatprep.mubr.bf16.mxu0 %v2122_v62 }
 0x40d   :  { %v1921_v6 = vadd.f32 %v1920_v5, %v3887_v28  ;;  %v1922_v8 = vpop.f32.mrb[107].mxu1  ;;  %2327 = vmatmul.mubr.bf16.gmra.mrb[100].mxu0 %v2121_v61  ;;  %v2063_v11 = vmax.f32 %v1917_v1, 0.0 }
 0x40e   :  { %v1923_v10 = vadd.f32 %v1922_v8, %v3890_v29  ;;  %v2064_v14 = vmax.f32 %v1919_v4, 0.0 }
 0x40f   :  { %v2065_v12 = vmax.f32 %v1921_v6, 0.0 }
 0x410   :  { %v2066_v37 = vmax.f32 %v1923_v10, 0.0 }
 0x411   :  { %v2123_v38 = vpack.c.bf16 %v2065_v12, %v2063_v11 }
 0x412   :  { %v2124_v15 = vpack.c.bf16 %v2066_v37, %v2064_v14  ;;  %v1926_v3 = vpop.f32.mrb[108].mxu1 }
 0x413   :  { %v1927_v7 = vadd.f32 %v1926_v3, %v3887_v28  ;;  %v1928_v39 = vpop.f32.mrb[109].mxu1 }
 0x414   :  { %v1929_v43 = vadd.f32 %v1928_v39, %v3890_v29  ;;  %v1930_v9 = vpop.f32.mrb[110].mxu1  ;;  %2334 = vmatprep.mubr.bf16.mxu0 %v2124_v15 }
 0x415   :  { %v1931_v13 = vadd.f32 %v1930_v9, %v3887_v28  ;;  %v1932_v47 = vpop.f32.mrb[111].mxu1  ;;  %2335 = vmatmul.mubr.bf16.gmra.mrb[104].mxu0 %v2123_v38  ;;  %v2067_v59 = vmax.f32 %v1927_v7, 0.0 }
 0x416   :  { %v1933_v51 = vadd.f32 %v1932_v47, %v3890_v29  ;;  %v2068_v16 = vmax.f32 %v1929_v43, 0.0 }
 0x417   :  { %v2069_v63 = vmax.f32 %v1931_v13, 0.0 }
 0x418   :  { %v2070_v17 = vmax.f32 %v1933_v51, 0.0 }
 0x419   :  { %v2125_v18 = vpack.c.bf16 %v2069_v63, %v2067_v59 }
 0x41a   :  { %v2126_v20 = vpack.c.bf16 %v2070_v17, %v2068_v16  ;;  %v1936_v21 = vpop.f32.mrb[112].mxu1 }
 0x41b   :  { %v1937_v22 = vadd.f32 %v1936_v21, %v3887_v28  ;;  %v1938_v24 = vpop.f32.mrb[113].mxu1 }
 0x41c   :  { %v1939_v25 = vadd.f32 %v1938_v24, %v3890_v29  ;;  %v1940_v26 = vpop.f32.mrb[114].mxu1  ;;  %2342 = vmatprep.mubr.bf16.mxu0 %v2126_v20 }
 0x41d   :  { %v1941_v27 = vadd.f32 %v1940_v26, %v3887_v28  ;;  %v1942_v19 = vpop.f32.mrb[115].mxu1  ;;  %2343 = vmatmul.mubr.bf16.gmra.mrb[108].mxu0 %v2125_v18  ;;  %v2071_v31 = vmax.f32 %v1937_v22, 0.0 }
 0x41e   :  { %v1943_v30 = vadd.f32 %v1942_v19, %v3890_v29  ;;  %v2072_v32 = vmax.f32 %v1939_v25, 0.0 }
 0x41f   :  { %v2073_v23 = vmax.f32 %v1941_v27, 0.0 }
 0x420   :  { %v2074_v33 = vmax.f32 %v1943_v30, 0.0 }
 0x421   :  { %v2127_v35 = vpack.c.bf16 %v2073_v23, %v2071_v31 }
 0x422   :  { %v2128_v40 = vpack.c.bf16 %v2074_v33, %v2072_v32  ;;  %v1946_v41 = vpop.f32.mrb[116].mxu1 }
 0x423   :  { %v1947_v42 = vadd.f32 %v1946_v41, %v3887_v28  ;;  %v1948_v44 = vpop.f32.mrb[117].mxu1 }
 0x424   :  { %v1949_v34 = vadd.f32 %v1948_v44, %v3890_v29  ;;  %v1950_v45 = vpop.f32.mrb[118].mxu1  ;;  %2350 = vmatprep.mubr.bf16.mxu0 %v2128_v40 }
 0x425   :  { %v1951_v46 = vadd.f32 %v1950_v45, %v3887_v28  ;;  %v1952_v36 = vpop.f32.mrb[119].mxu1  ;;  %2351 = vmatmul.mubr.bf16.gmra.mrb[112].mxu0 %v2127_v35  ;;  %v2075_v49 = vmax.f32 %v1947_v42, 0.0 }
 0x426   :  { %v1953_v48 = vadd.f32 %v1952_v36, %v3890_v29  ;;  %v2076_v52 = vmax.f32 %v1949_v34, 0.0 }
 0x427   :  { %v2077_v50 = vmax.f32 %v1951_v46, 0.0 }
 0x428   :  { %v2078_v53 = vmax.f32 %v1953_v48, 0.0 }
 0x429   :  { %v2129_v54 = vpack.c.bf16 %v2077_v50, %v2075_v49 }
 0x42a   :  { %v2130_v55 = vpack.c.bf16 %v2078_v53, %v2076_v52  ;;  %v1956_v56 = vpop.f32.mrb[120].mxu1 }
 0x42b   :  { %v1957_v57 = vadd.f32 %v1956_v56, %v3887_v28  ;;  %v1958_v58 = vpop.f32.mrb[121].mxu1 }
 0x42c   :  { %v1959_v60 = vadd.f32 %v1958_v58, %v3890_v29  ;;  %v1960_v61 = vpop.f32.mrb[122].mxu1  ;;  %2358 = vmatprep.mubr.bf16.mxu0 %v2130_v55 }
 0x42d   :  { %v1961_v62 = vadd.f32 %v1960_v61, %v3887_v28  ;;  %v1962_v0 = vpop.f32.mrb[123].mxu1  ;;  %2359 = vmatmul.mubr.bf16.gmra.mrb[116].mxu0 %v2129_v54  ;;  %v2079_v2 = vmax.f32 %v1957_v57, 0.0 }
 0x42e   :  { %v1963_v1 = vadd.f32 %v1962_v0, %v3890_v29  ;;  %v2080_v5 = vmax.f32 %v1959_v60, 0.0 }
 0x42f   :  { %v2081_v4 = vmax.f32 %v1961_v62, 0.0 }
 0x430   :  { %v2082_v6 = vmax.f32 %v1963_v1, 0.0 }
 0x431   :  { %v2131_v8 = vpack.c.bf16 %v2081_v4, %v2079_v2 }
 0x432   :  { %v2132_v10 = vpack.c.bf16 %v2082_v6, %v2080_v5  ;;  %v1966_v11 = vpop.f32.mrb[124].mxu1 }
 0x433   :  { %v1967_v12 = vadd.f32 %v1966_v11, %v3887_v28  ;;  %v1968_v14 = vpop.f32.mrb[125].mxu1 }
 0x434   :  { %v1969_v37 = vadd.f32 %v1968_v14, %v3890_v29  ;;  %v1970_v38 = vpop.f32.mrb[126].mxu1  ;;  %2366 = vmatprep.mubr.bf16.mxu0 %v2132_v10 }
 0x435   :  { %v1971_v15 = vadd.f32 %v1970_v38, %v3887_v28  ;;  %v1972_v3 = vpop.f32.mrb[127].mxu1  ;;  %2367 = vmatmul.mubr.bf16.gmra.mrb[120].mxu0 %v2131_v8  ;;  %v2083_v39 = vmax.f32 %v1967_v12, 0.0 }
 0x436   :  { %v1973_v7 = vadd.f32 %v1972_v3, %v3890_v29  ;;  %v2084_v9 = vmax.f32 %v1969_v37, 0.0 }
 0x437   :  { %v2085_v43 = vmax.f32 %v1971_v15, 0.0 }
 0x438   :  { %v2086_v13 = vmax.f32 %v1973_v7, 0.0 }
 0x439   :  { %v2133_v47 = vpack.c.bf16 %v2085_v43, %v2083_v39 }
 0x43a   :  { %v2134_v51 = vpack.c.bf16 %v2086_v13, %v2084_v9  ;;  %v1976_v59 = vpop.f32.mrb[128].mxu1 }
 0x43b   :  { %v1977_v63 = vadd.f32 %v1976_v59, %v3887_v28  ;;  %v1978_v16 = vpop.f32.mrb[129].mxu1 }
 0x43c   :  { %v1979_v17 = vadd.f32 %v1978_v16, %v3890_v29  ;;  %v1980_v18 = vpop.f32.mrb[130].mxu1  ;;  %2374 = vmatprep.mubr.bf16.mxu0 %v2134_v51 }
 0x43d   :  { %v1981_v20 = vadd.f32 %v1980_v18, %v3887_v28  ;;  %v1982_v21 = vpop.f32.mrb[131].mxu1  ;;  %2375 = vmatmul.mubr.bf16.gmra.mrb[124].mxu0 %v2133_v47  ;;  %v2087_v24 = vmax.f32 %v1977_v63, 0.0 }
 0x43e   :  { %v1983_v22 = vadd.f32 %v1982_v21, %v3890_v29  ;;  %v2088_v26 = vmax.f32 %v1979_v17, 0.0 }
 0x43f   :  { %v2089_v25 = vmax.f32 %v1981_v20, 0.0 }
 0x440   :  { %v2090_v27 = vmax.f32 %v1983_v22, 0.0 }
 0x441   :  { %v2135_v19 = vpack.c.bf16 %v2089_v25, %v2087_v24 }
 0x442   :  { %v2136_v30 = vpack.c.bf16 %v2090_v27, %v2088_v26  ;;  %v1986_v31 = vpop.f32.mrb[132].mxu1 }
 0x443   :  { %v1987_v23 = vadd.f32 %v1986_v31, %v3887_v28  ;;  %v1988_v32 = vpop.f32.mrb[133].mxu1 }
 0x444   :  { %v1989_v33 = vadd.f32 %v1988_v32, %v3890_v29  ;;  %v1990_v35 = vpop.f32.mrb[134].mxu1  ;;  %2382 = vmatprep.mubr.bf16.mxu0 %v2136_v30 }
 0x445   :  { %v1991_v40 = vadd.f32 %v1990_v35, %v3887_v28  ;;  %v1992_v41 = vpop.f32.mrb[135].mxu1  ;;  %2383 = vmatmul.mubr.bf16.gmra.mrb[128].mxu0 %v2135_v19  ;;  %v2091_v44 = vmax.f32 %v1987_v23, 0.0 }
 0x446   :  { %v1993_v42 = vadd.f32 %v1992_v41, %v3890_v29  ;;  %v2092_v45 = vmax.f32 %v1989_v33, 0.0 }
 0x447   :  { %v2093_v34 = vmax.f32 %v1991_v40, 0.0 }
 0x448   :  { %v2094_v46 = vmax.f32 %v1993_v42, 0.0 }
 0x449   :  { %v2137_v36 = vpack.c.bf16 %v2093_v34, %v2091_v44 }
 0x44a   :  { %v2138_v48 = vpack.c.bf16 %v2094_v46, %v2092_v45  ;;  %v1996_v49 = vpop.f32.mrb[136].mxu1 }
 0x44b   :  { %v1997_v50 = vadd.f32 %v1996_v49, %v3887_v28  ;;  %v1998_v52 = vpop.f32.mrb[137].mxu1 }
 0x44c   :  { %v1999_v53 = vadd.f32 %v1998_v52, %v3890_v29  ;;  %v2000_v54 = vpop.f32.mrb[138].mxu1  ;;  %2390 = vmatprep.mubr.bf16.mxu0 %v2138_v48 }
 0x44d   :  { %v2001_v55 = vadd.f32 %v2000_v54, %v3887_v28  ;;  %v2002_v56 = vpop.f32.mrb[139].mxu1  ;;  %2391 = vmatmul.mubr.bf16.gmra.mrb[132].mxu0 %v2137_v36  ;;  %v2095_v58 = vmax.f32 %v1997_v50, 0.0 }
 0x44e   :  { %v2003_v57 = vadd.f32 %v2002_v56, %v3890_v29  ;;  %v2096_v61 = vmax.f32 %v1999_v53, 0.0 }
 0x44f   :  { %v2097_v60 = vmax.f32 %v2001_v55, 0.0 }
 0x450   :  { %v2098_v62 = vmax.f32 %v2003_v57, 0.0 }
 0x451   :  { %v2139_v0 = vpack.c.bf16 %v2097_v60, %v2095_v58 }
 0x452   :  { %v2140_v1 = vpack.c.bf16 %v2098_v62, %v2096_v61  ;;  %v2006_v2 = vpop.f32.mrb[140].mxu1 }
 0x453   :  { %v2007_v4 = vadd.f32 %v2006_v2, %v3887_v28  ;;  %v2008_v5 = vpop.f32.mrb[141].mxu1 }
 0x454   :  { %v2009_v6 = vadd.f32 %v2008_v5, %v3890_v29  ;;  %v2010_v8 = vpop.f32.mrb[142].mxu1  ;;  %2398 = vmatprep.mubr.bf16.mxu0 %v2140_v1 }
 0x455   :  { %v2011_v10 = vadd.f32 %v2010_v8, %v3887_v28  ;;  %v2012_v11 = vpop.f32.mrb[143].mxu1  ;;  %2399 = vmatmul.mubr.bf16.gmra.mrb[136].mxu0 %v2139_v0  ;;  %v2099_v14 = vmax.f32 %v2007_v4, 0.0 }
 0x456   :  { %v2013_v12 = vadd.f32 %v2012_v11, %v3890_v29  ;;  %v2100_v38 = vmax.f32 %v2009_v6, 0.0 }
 0x457   :  { %v2101_v37 = vmax.f32 %v2011_v10, 0.0 }
 0x458   :  { %v2102_v15 = vmax.f32 %v2013_v12, 0.0 }
 0x459   :  { %v2141_v3 = vpack.c.bf16 %v2101_v37, %v2099_v14 }
 0x45a   :  { %v2142_v7 = vpack.c.bf16 %v2102_v15, %v2100_v38  ;;  %v2016_v39 = vpop.f32.mrb[144].mxu1  ;;  %v3959_v38 = vld [vmem:[%s4268_s4] ss:$0 sm:$0xff]  ;;  %s3554_s4 = smov [#allocation10]  }
 0x45b   :  { %v2017_v43 = vadd.f32 %v2016_v39, %v3887_v28  ;;  %v2018_v9 = vpop.f32.mrb[145].mxu1  ;;  %s2772_s23 = sshll.u32 %s3554_s4, 4  ;;  %s2773_s23 = int_to_ptr.vmem [resolvable:$true] %s2772_s23 }
 0x45c   :  { %v2019_v13 = vadd.f32 %v2018_v9, %v3890_v29  ;;  %v2020_v47 = vpop.f32.mrb[146].mxu1  ;;  %2406 = vmatprep.mubr.bf16.mxu0 %v2142_v7  ;;  %s3512_s24 = scalar_lea.vmem %s2773_s23, 4096  ;;  %p3517_p5 = scmp.lt.s32.totalorder %s2773_s23, %s2773_s23 }
 0x45d   :  { %v2021_v51 = vadd.f32 %v2020_v47, %v3887_v28  ;;  %v2022_v59 = vpop.f32.mrb[147].mxu1  ;;  %2407 = vmatmul.mubr.bf16.gmra.mrb[140].mxu0 %v2141_v3  ;;  %v2103_v16 = vmax.f32 %v2017_v43, 0.0  ;;  %p3513_p4 = scmp.ne.s32.totalorder %s2773_s23, %s3512_s24  ;;  %p3518_p6 = scmp.lt.s32.totalorder %s3512_s24, %s3512_s24 }
 0x45e   :  { %v2023_v63 = vadd.f32 %v2022_v59, %v3890_v29  ;;  %v2104_v18 = vmax.f32 %v2019_v13, 0.0 }
 0x45f   :  { %v2105_v17 = vmax.f32 %v2021_v51, 0.0  ;;  %p3519_p7 = por %p3518_p6, %p3517_p5 }
 0x460   :  { %v2106_v20 = vmax.f32 %v2023_v63, 0.0 }
 0x461   :  { %v2143_v21 = vpack.c.bf16 %v2105_v17, %v2103_v16  ;;  %p3520_p8 = pnand %p3519_p7, %p3513_p4 }
 0x462   :  { %v2144_v22 = vpack.c.bf16 %v2106_v20, %v2104_v18  ;;  %v2026_v24 = vpop.f32.mrb[148].mxu1 }
 0x463   :  { %v2027_v25 = vadd.f32 %v2026_v24, %v3887_v28  ;;  %v2028_v26 = vpop.f32.mrb[149].mxu1 }
 0x464   :  { %v2029_v27 = vadd.f32 %v2028_v26, %v3890_v29  ;;  %v2030_v19 = vpop.f32.mrb[150].mxu1  ;;  %2414 = vmatprep.mubr.bf16.mxu0 %v2144_v22 }
 0x465   :  { %v2031_v30 = vadd.f32 %v2030_v19, %v3887_v28  ;;  %v2032_v31 = vpop.f32.mrb[151].mxu1  ;;  %2415 = vmatmul.mubr.bf16.gmra.mrb[144].mxu0 %v2143_v21  ;;  %v2107_v32 = vmax.f32 %v2027_v25, 0.0 }
 0x466   :  { %v2033_v23 = vadd.f32 %v2032_v31, %v3890_v29  ;;  %v2108_v35 = vmax.f32 %v2029_v27, 0.0 }
 0x467   :  { %v2109_v33 = vmax.f32 %v2031_v30, 0.0 }
 0x468   :  { %v2110_v40 = vmax.f32 %v2033_v23, 0.0 }
 0x469   :  { %v2145_v41 = vpack.c.bf16 %v2109_v33, %v2107_v32 }
 0x46a   :  { %v2146_v42 = vpack.c.bf16 %v2110_v40, %v2108_v35  ;;  %v2036_v44 = vpop.f32.mrb[152].mxu1 }
 0x46b   :  { %v2037_v34 = vadd.f32 %v2036_v44, %v3887_v28  ;;  %v2038_v45 = vpop.f32.mrb[153].mxu1 }
 0x46c   :  { %v2039_v46 = vadd.f32 %v2038_v45, %v3890_v29  ;;  %v2040_v36 = vpop.f32.mrb[154].mxu1  ;;  %2422 = vmatprep.mubr.bf16.mxu0 %v2146_v42 }
 0x46d   :  { %v2041_v48 = vadd.f32 %v2040_v36, %v3887_v28  ;;  %v2042_v49 = vpop.f32.mrb[155].mxu1  ;;  %2423 = vmatmul.mubr.bf16.gmra.mrb[148].mxu0 %v2145_v41  ;;  %v2111_v52 = vmax.f32 %v2037_v34, 0.0 }
 0x46e   :  { %v2043_v50 = vadd.f32 %v2042_v49, %v3890_v29  ;;  %v2112_v54 = vmax.f32 %v2039_v46, 0.0 }
 0x46f   :  { %v2113_v53 = vmax.f32 %v2041_v48, 0.0 }
 0x470   :  { %v2114_v55 = vmax.f32 %v2043_v50, 0.0 }
 0x471   :  { %v2147_v56 = vpack.c.bf16 %v2113_v53, %v2111_v52 }
 0x472   :  { %v2148_v57 = vpack.c.bf16 %v2114_v55, %v2112_v54  ;;  %v2046_v58 = vpop.f32.mrb[156].mxu1 }
 0x473   :  { %v2047_v60 = vadd.f32 %v2046_v58, %v3887_v28  ;;  %v2048_v61 = vpop.f32.mrb[157].mxu1 }
 0x474   :  { %v2049_v62 = vadd.f32 %v2048_v61, %v3890_v29  ;;  %v2050_v0 = vpop.f32.mrb[158].mxu1  ;;  %2430 = vmatprep.mubr.bf16.mxu0 %v2148_v57 }
 0x475   :  { %v2051_v1 = vadd.f32 %v2050_v0, %v3887_v28  ;;  %v2052_v2 = vpop.f32.mrb[159].mxu1  ;;  %2431 = vmatmul.mubr.bf16.gmra.mrb[152].mxu0 %v2147_v56  ;;  %v2115_v5 = vmax.f32 %v2047_v60, 0.0 }
 0x476   :  { %v2053_v4 = vadd.f32 %v2052_v2, %v3890_v29  ;;  %v2116_v8 = vmax.f32 %v2049_v62, 0.0 }
 0x477   :  { %v2117_v6 = vmax.f32 %v2051_v1, 0.0 }
 0x478   :  { %v2118_v10 = vmax.f32 %v2053_v4, 0.0 }
 0x479   :  { %v2149_v11 = vpack.c.bf16 %v2117_v6, %v2115_v5 }
 0x47a   :  { %v2150_v12 = vpack.c.bf16 %v2118_v10, %v2116_v8 }
 0x47c   :  { %2438 = vmatprep.mubr.bf16.mxu0 %v2150_v12 }
 0x47d   :  { %2439 = vmatmul.mubr.bf16.gmra.mrb[156].mxu0 %v2149_v11 }
 0x4d8   :  { %v2947_v14 = vpop.f32.mrb[96].mxu0 }
 0x4d9   :  { %v2948_v37 = vpop.f32.mrb[97].mxu0 }
 0x4da   :  { %v2949_v28 = vadd.f32 %v2948_v37, %v2947_v14  ;;  %v2950_v15 = vpop.f32.mrb[98].mxu0 }
 0x4db   :  { %v2951_v3 = vpop.f32.mrb[99].mxu0 }
 0x4dc   :  { %v2952_v7 = vadd.f32 %v2951_v3, %v2950_v15  ;;  %v3962_v29 = vadd.f32 %v2949_v28, %v3959_v38 }
 0x4de   :  { %2447 = vmax.xlane.f32.xlu0 %v3962_v29  ;;  %v3966_v43 = vadd.f32 %v2952_v7, %v3959_v38 }
 0x4e0   :  { %v2953_v39 = vpop.f32.mrb[100].mxu0 }
 0x4e1   :  { %v2954_v9 = vpop.f32.mrb[101].mxu0 }
 0x4e2   :  { %v2955_v13 = vadd.f32 %v2954_v9, %v2953_v39  ;;  %v2956_v47 = vpop.f32.mrb[102].mxu0  ;;  %2449 = vmax.xlane.f32.xlu0 %v3966_v43 }
 0x4e3   :  { %v2957_v51 = vpop.f32.mrb[103].mxu0 }
 0x4e4   :  { %v2958_v59 = vadd.f32 %v2957_v51, %v2956_v47  ;;  %v3970_v63 = vadd.f32 %v2955_v13, %v3959_v38 }
 0x4e6   :  { %2451 = vmax.xlane.f32.xlu1 %v3970_v63  ;;  %v3974_v17 = vadd.f32 %v2958_v59, %v3959_v38 }
 0x4e8   :  { %v2959_v16 = vpop.f32.mrb[104].mxu0 }
 0x4e9   :  { %v2960_v18 = vpop.f32.mrb[105].mxu0 }
 0x4ea   :  { %v2961_v20 = vadd.f32 %v2960_v18, %v2959_v16  ;;  %v2962_v21 = vpop.f32.mrb[106].mxu0  ;;  %2453 = vmax.xlane.f32.xlu1 %v3974_v17 }
 0x4eb   :  { %v2963_v22 = vpop.f32.mrb[107].mxu0 }
 0x4ec   :  { %v2964_v24 = vadd.f32 %v2963_v22, %v2962_v21  ;;  %v3978_v25 = vadd.f32 %v2961_v20, %v3959_v38 }
 0x4ee   :  { %2455 = vmax.xlane.f32.xlu0 %v3978_v25  ;;  %v3982_v26 = vadd.f32 %v2964_v24, %v3959_v38 }
 0x4f0   :  { %v2965_v27 = vpop.f32.mrb[108].mxu0  ;;  %2457 = vmax.xlane.f32.xlu1 %v3982_v26 }
 0x4f1   :  { %v2966_v19 = vpop.f32.mrb[109].mxu0 }
 0x4f2   :  { %v2967_v30 = vadd.f32 %v2966_v19, %v2965_v27  ;;  %v2968_v31 = vpop.f32.mrb[110].mxu0 }
 0x4f3   :  { %v2969_v23 = vpop.f32.mrb[111].mxu0 }
 0x4f4   :  { %v2970_v32 = vadd.f32 %v2969_v23, %v2968_v31  ;;  %v3986_v33 = vadd.f32 %v2967_v30, %v3959_v38 }
 0x4f6   :  { %2459 = vmax.xlane.f32.xlu0 %v3986_v33  ;;  %v3990_v35 = vadd.f32 %v2970_v32, %v3959_v38 }
 0x4f8   :  { %v2971_v40 = vpop.f32.mrb[112].mxu0  ;;  %2461 = vmax.xlane.f32.xlu1 %v3990_v35 }
 0x4f9   :  { %v2972_v41 = vpop.f32.mrb[113].mxu0 }
 0x4fa   :  { %v2973_v42 = vadd.f32 %v2972_v41, %v2971_v40  ;;  %v2974_v44 = vpop.f32.mrb[114].mxu0 }
 0x4fb   :  { %v2975_v34 = vpop.f32.mrb[115].mxu0 }
 0x4fc   :  { %v2976_v45 = vadd.f32 %v2975_v34, %v2974_v44  ;;  %v3994_v46 = vadd.f32 %v2973_v42, %v3959_v38 }
 0x4fe   :  { %2463 = vmax.xlane.f32.xlu0 %v3994_v46  ;;  %v3998_v36 = vadd.f32 %v2976_v45, %v3959_v38 }
 0x500   :  { %v2977_v48 = vpop.f32.mrb[116].mxu0  ;;  %2465 = vmax.xlane.f32.xlu1 %v3998_v36 }
 0x501   :  { %v2978_v49 = vpop.f32.mrb[117].mxu0 }
 0x502   :  { %v2979_v50 = vadd.f32 %v2978_v49, %v2977_v48  ;;  %v2980_v52 = vpop.f32.mrb[118].mxu0 }
 0x503   :  { %v2981_v53 = vpop.f32.mrb[119].mxu0 }
 0x504   :  { %v2982_v54 = vadd.f32 %v2981_v53, %v2980_v52  ;;  %v4002_v55 = vadd.f32 %v2979_v50, %v3959_v38 }
 0x506   :  { %2467 = vmax.xlane.f32.xlu0 %v4002_v55  ;;  %v4006_v56 = vadd.f32 %v2982_v54, %v3959_v38 }
 0x508   :  { %v2983_v57 = vpop.f32.mrb[120].mxu0  ;;  %2469 = vmax.xlane.f32.xlu1 %v4006_v56 }
 0x509   :  { %v2984_v58 = vpop.f32.mrb[121].mxu0 }
 0x50a   :  { %v2985_v60 = vadd.f32 %v2984_v58, %v2983_v57  ;;  %v2986_v61 = vpop.f32.mrb[122].mxu0 }
 0x50b   :  { %v2987_v62 = vpop.f32.mrb[123].mxu0 }
 0x50c   :  { %v2988_v0 = vadd.f32 %v2987_v62, %v2986_v61  ;;  %v4010_v1 = vadd.f32 %v2985_v60, %v3959_v38 }
 0x50e   :  { %2471 = vmax.xlane.f32.xlu0 %v4010_v1  ;;  %v4014_v2 = vadd.f32 %v2988_v0, %v3959_v38 }
 0x510   :  { %v2989_v4 = vpop.f32.mrb[124].mxu0  ;;  %2473 = vmax.xlane.f32.xlu1 %v4014_v2 }
 0x511   :  { %v2990_v5 = vpop.f32.mrb[125].mxu0 }
 0x512   :  { %v2991_v6 = vadd.f32 %v2990_v5, %v2989_v4  ;;  %v2992_v8 = vpop.f32.mrb[126].mxu0 }
 0x513   :  { %v2993_v10 = vpop.f32.mrb[127].mxu0 }
 0x514   :  { %v2994_v11 = vadd.f32 %v2993_v10, %v2992_v8  ;;  %v4018_v12 = vadd.f32 %v2991_v6, %v3959_v38 }
 0x516   :  { %2475 = vmax.xlane.f32.xlu0 %v4018_v12  ;;  %v4022_v14 = vadd.f32 %v2994_v11, %v3959_v38 }
 0x518   :  { %v2995_v37 = vpop.f32.mrb[128].mxu0  ;;  %2477 = vmax.xlane.f32.xlu1 %v4022_v14 }
 0x519   :  { %v2996_v28 = vpop.f32.mrb[129].mxu0 }
 0x51a   :  { %v2997_v15 = vadd.f32 %v2996_v28, %v2995_v37  ;;  %v2998_v3 = vpop.f32.mrb[130].mxu0 }
 0x51b   :  { %v2999_v7 = vpop.f32.mrb[131].mxu0 }
 0x51c   :  { %v3000_v39 = vadd.f32 %v2999_v7, %v2998_v3  ;;  %v4026_v9 = vadd.f32 %v2997_v15, %v3959_v38 }
 0x51e   :  { %2479 = vmax.xlane.f32.xlu0 %v4026_v9  ;;  %v4030_v13 = vadd.f32 %v3000_v39, %v3959_v38 }
 0x520   :  { %v3001_v47 = vpop.f32.mrb[132].mxu0  ;;  %2481 = vmax.xlane.f32.xlu1 %v4030_v13 }
 0x521   :  { %v3002_v51 = vpop.f32.mrb[133].mxu0 }
 0x522   :  { %v3003_v59 = vadd.f32 %v3002_v51, %v3001_v47  ;;  %v3004_v16 = vpop.f32.mrb[134].mxu0 }
 0x523   :  { %v3005_v18 = vpop.f32.mrb[135].mxu0 }
 0x524   :  { %v3006_v20 = vadd.f32 %v3005_v18, %v3004_v16  ;;  %v4034_v21 = vadd.f32 %v3003_v59, %v3959_v38 }
 0x526   :  { %2483 = vmax.xlane.f32.xlu0 %v4034_v21  ;;  %v4038_v22 = vadd.f32 %v3006_v20, %v3959_v38 }
 0x528   :  { %v3007_v24 = vpop.f32.mrb[136].mxu0  ;;  %2485 = vmax.xlane.f32.xlu1 %v4038_v22 }
 0x529   :  { %v3008_v27 = vpop.f32.mrb[137].mxu0 }
 0x52a   :  { %v3009_v19 = vadd.f32 %v3008_v27, %v3007_v24  ;;  %v3010_v30 = vpop.f32.mrb[138].mxu0 }
 0x52b   :  { %v3011_v31 = vpop.f32.mrb[139].mxu0 }
 0x52c   :  { %v3012_v23 = vadd.f32 %v3011_v31, %v3010_v30  ;;  %v4042_v32 = vadd.f32 %v3009_v19, %v3959_v38 }
 0x52e   :  { %2487 = vmax.xlane.f32.xlu0 %v4042_v32  ;;  %v4046_v40 = vadd.f32 %v3012_v23, %v3959_v38 }
 0x530   :  { %v3013_v41 = vpop.f32.mrb[140].mxu0  ;;  %2489 = vmax.xlane.f32.xlu1 %v4046_v40 }
 0x531   :  { %v3014_v42 = vpop.f32.mrb[141].mxu0 }
 0x532   :  { %v3015_v44 = vadd.f32 %v3014_v42, %v3013_v41  ;;  %v3016_v34 = vpop.f32.mrb[142].mxu0 }
 0x533   :  { %v3017_v45 = vpop.f32.mrb[143].mxu0 }
 0x534   :  { %v3018_v48 = vadd.f32 %v3017_v45, %v3016_v34  ;;  %v4050_v49 = vadd.f32 %v3015_v44, %v3959_v38 }
 0x536   :  { %2491 = vmax.xlane.f32.xlu0 %v4050_v49  ;;  %v4054_v50 = vadd.f32 %v3018_v48, %v3959_v38 }
 0x538   :  { %v3019_v52 = vpop.f32.mrb[144].mxu0  ;;  %2493 = vmax.xlane.f32.xlu1 %v4054_v50 }
 0x539   :  { %v3020_v53 = vpop.f32.mrb[145].mxu0 }
 0x53a   :  { %v3021_v54 = vadd.f32 %v3020_v53, %v3019_v52  ;;  %v3022_v57 = vpop.f32.mrb[146].mxu0 }
 0x53b   :  { %v3023_v58 = vpop.f32.mrb[147].mxu0 }
 0x53c   :  { %v3024_v60 = vadd.f32 %v3023_v58, %v3022_v57  ;;  %v4058_v61 = vadd.f32 %v3021_v54, %v3959_v38 }
 0x53e   :  { %2495 = vmax.xlane.f32.xlu0 %v4058_v61  ;;  %v4062_v62 = vadd.f32 %v3024_v60, %v3959_v38 }
 0x540   :  { %v3025_v0 = vpop.f32.mrb[148].mxu0  ;;  %2497 = vmax.xlane.f32.xlu1 %v4062_v62 }
 0x541   :  { %v3026_v4 = vpop.f32.mrb[149].mxu0 }
 0x542   :  { %v3027_v5 = vadd.f32 %v3026_v4, %v3025_v0  ;;  %v3028_v6 = vpop.f32.mrb[150].mxu0 }
 0x543   :  { %v3029_v8 = vpop.f32.mrb[151].mxu0 }
 0x544   :  { %v3030_v10 = vadd.f32 %v3029_v8, %v3028_v6  ;;  %v4066_v11 = vadd.f32 %v3027_v5, %v3959_v38 }
 0x546   :  { %2499 = vmax.xlane.f32.xlu0 %v4066_v11  ;;  %v4070_v37 = vadd.f32 %v3030_v10, %v3959_v38 }
 0x548   :  { %v3031_v28 = vpop.f32.mrb[152].mxu0  ;;  %2501 = vmax.xlane.f32.xlu1 %v4070_v37 }
 0x549   :  { %v3032_v15 = vpop.f32.mrb[153].mxu0 }
 0x54a   :  { %v3033_v3 = vadd.f32 %v3032_v15, %v3031_v28  ;;  %v3034_v7 = vpop.f32.mrb[154].mxu0 }
 0x54b   :  { %v3035_v39 = vpop.f32.mrb[155].mxu0 }
 0x54c   :  { %v3036_v47 = vadd.f32 %v3035_v39, %v3034_v7  ;;  %v4074_v51 = vadd.f32 %v3033_v3, %v3959_v38 }
 0x54e   :  { %2503 = vmax.xlane.f32.xlu0 %v4074_v51  ;;  %v4078_v59 = vadd.f32 %v3036_v47, %v3959_v38 }
 0x550   :  { %v3037_v16 = vpop.f32.mrb[156].mxu0  ;;  %2505 = vmax.xlane.f32.xlu1 %v4078_v59 }
 0x551   :  { %v3038_v18 = vpop.f32.mrb[157].mxu0 }
 0x552   :  { %v3039_v20 = vadd.f32 %v3038_v18, %v3037_v16  ;;  %v3040_v24 = vpop.f32.mrb[158].mxu0 }
 0x553   :  { %v3041_v27 = vpop.f32.mrb[159].mxu0 }
 0x554   :  { %v3042_v19 = vadd.f32 %v3041_v27, %v3040_v24  ;;  %v4082_v30 = vadd.f32 %v3039_v20, %v3959_v38 }
 0x556   :  { %2507 = vmax.xlane.f32.xlu0 %v4082_v30  ;;  %v4086_v31 = vadd.f32 %v3042_v19, %v3959_v38 }
 0x558   :  { %2509 = vmax.xlane.f32.xlu1 %v4086_v31 }
 0x56b   :  { %v2448_v23 = vpop.xlane.xlu0 %2447 }
 0x56c   :  { %v2511_v41 = vsub.f32 %v3962_v29, %v2448_v23 }
 0x56e   :  { %v2543_v42 = vmul.f32 1.442695, %v2511_v41 }
 0x56f   :  { %v2450_v44 = vpop.xlane.xlu0 %2449 }
 0x570   :  { %3296 = vpow2.f32 %v2543_v42  ;;  %v2512_v34 = vsub.f32 %v3966_v43, %v2450_v44 }
 0x572   :  { %v2545_v45 = vmul.f32 1.442695, %v2512_v34 }
 0x573   :  { %v2452_v48 = vpop.xlane.xlu1 %2451 }
 0x574   :  { %3298 = vpow2.f32 %v2545_v45  ;;  %v2513_v52 = vsub.f32 %v3970_v63, %v2452_v48 }
 0x576   :  { %v2547_v53 = vmul.f32 1.442695, %v2513_v52 }
 0x577   :  { %v2454_v54 = vpop.xlane.xlu1 %2453 }
 0x578   :  { %3300 = vpow2.f32 %v2547_v53  ;;  %v2514_v38 = vsub.f32 %v3974_v17, %v2454_v54 }
 0x57a   :  { %v4093_v57 = vpop.eup %3296  ;;  %v2549_v58 = vmul.f32 1.442695, %v2514_v38 }
 0x57b   :  { %2607 = vadd.xlane.f32.xlu0 %v4093_v57  ;;  %v2456_v29 = vpop.xlane.xlu0 %2455 }
 0x57c   :  { %3302 = vpow2.f32 %v2549_v58  ;;  %v2515_v60 = vsub.f32 %v3978_v25, %v2456_v29 }
 0x57d   :  { %v2458_v43 = vpop.xlane.xlu1 %2457 }
 0x57e   :  { %v4097_v0 = vpop.eup %3298  ;;  %v2551_v4 = vmul.f32 1.442695, %v2515_v60  ;;  %v2516_v63 = vsub.f32 %v3982_v26, %v2458_v43 }
 0x57f   :  { %2609 = vadd.xlane.f32.xlu1 %v4097_v0 }
 0x580   :  { %3304 = vpow2.f32 %v2551_v4  ;;  %v2553_v5 = vmul.f32 1.442695, %v2516_v63 }
 0x582   :  { %v4101_v17 = vpop.eup %3300  ;;  %3306 = vpow2.f32 %v2553_v5 }
 0x583   :  { %2611 = vadd.xlane.f32.xlu0 %v4101_v17  ;;  %v2460_v6 = vpop.xlane.xlu0 %2459 }
 0x584   :  { %v2517_v8 = vsub.f32 %v3986_v33, %v2460_v6 }
 0x585   :  { %v2462_v10 = vpop.xlane.xlu1 %2461 }
 0x586   :  { %v4105_v25 = vpop.eup %3302  ;;  %v2555_v28 = vmul.f32 1.442695, %v2517_v8  ;;  %v2518_v15 = vsub.f32 %v3990_v35, %v2462_v10 }
 0x587   :  { %2613 = vadd.xlane.f32.xlu1 %v4105_v25 }
 0x588   :  { %3308 = vpow2.f32 %v2555_v28  ;;  %v2557_v26 = vmul.f32 1.442695, %v2518_v15 }
 0x58a   :  { %v4109_v3 = vpop.eup %3304  ;;  %3310 = vpow2.f32 %v2557_v26 }
 0x58b   :  { %2615 = vadd.xlane.f32.xlu0 %v4109_v3  ;;  %v2464_v7 = vpop.xlane.xlu0 %2463 }
 0x58c   :  { %v4112_v39 = vpop.eup %3306  ;;  %v2519_v33 = vsub.f32 %v3994_v46, %v2464_v7 }
 0x58d   :  { %v2466_v47 = vpop.xlane.xlu1 %2465  ;;  %2617 = vadd.xlane.f32.xlu1 %v4112_v39 }
 0x58e   :  { %v2559_v16 = vmul.f32 1.442695, %v2519_v33  ;;  %v2520_v35 = vsub.f32 %v3998_v36, %v2466_v47 }
 0x590   :  { %3312 = vpow2.f32 %v2559_v16  ;;  %v2561_v18 = vmul.f32 1.442695, %v2520_v35 }
 0x592   :  { %v4117_v20 = vpop.eup %3308  ;;  %3314 = vpow2.f32 %v2561_v18 }
 0x593   :  { %2619 = vadd.xlane.f32.xlu0 %v4117_v20  ;;  %v2468_v24 = vpop.xlane.xlu0 %2467 }
 0x594   :  { %v4120_v27 = vpop.eup %3310  ;;  %v2521_v19 = vsub.f32 %v4002_v55, %v2468_v24 }
 0x595   :  { %v2470_v23 = vpop.xlane.xlu1 %2469  ;;  %2621 = vadd.xlane.f32.xlu1 %v4120_v27 }
 0x596   :  { %v2563_v46 = vmul.f32 1.442695, %v2521_v19  ;;  %v2522_v41 = vsub.f32 %v4006_v56, %v2470_v23 }
 0x598   :  { %3316 = vpow2.f32 %v2563_v46  ;;  %v2565_v36 = vmul.f32 1.442695, %v2522_v41 }
 0x59a   :  { %v4125_v42 = vpop.eup %3312  ;;  %3318 = vpow2.f32 %v2565_v36 }
 0x59b   :  { %2623 = vadd.xlane.f32.xlu0 %v4125_v42  ;;  %v2472_v44 = vpop.xlane.xlu0 %2471 }
 0x59c   :  { %v4128_v34 = vpop.eup %3314  ;;  %v2523_v45 = vsub.f32 %v4010_v1, %v2472_v44 }
 0x59d   :  { %v2474_v48 = vpop.xlane.xlu1 %2473  ;;  %2625 = vadd.xlane.f32.xlu1 %v4128_v34 }
 0x59e   :  { %v2567_v55 = vmul.f32 1.442695, %v2523_v45  ;;  %v2524_v52 = vsub.f32 %v4014_v2, %v2474_v48 }
 0x5a0   :  { %3320 = vpow2.f32 %v2567_v55  ;;  %v2569_v56 = vmul.f32 1.442695, %v2524_v52 }
 0x5a2   :  { %v4133_v53 = vpop.eup %3316  ;;  %3322 = vpow2.f32 %v2569_v56 }
 0x5a3   :  { %2627 = vadd.xlane.f32.xlu0 %v4133_v53  ;;  %v2476_v54 = vpop.xlane.xlu0 %2475 }
 0x5a4   :  { %v4136_v38 = vpop.eup %3318  ;;  %v2525_v58 = vsub.f32 %v4018_v12, %v2476_v54 }
 0x5a5   :  { %v2478_v29 = vpop.xlane.xlu1 %2477  ;;  %2629 = vadd.xlane.f32.xlu1 %v4136_v38 }
 0x5a6   :  { %v2571_v1 = vmul.f32 1.442695, %v2525_v58  ;;  %v2526_v60 = vsub.f32 %v4022_v14, %v2478_v29 }
 0x5a8   :  { %3324 = vpow2.f32 %v2571_v1  ;;  %v2573_v2 = vmul.f32 1.442695, %v2526_v60 }
 0x5aa   :  { %v4141_v43 = vpop.eup %3320  ;;  %3326 = vpow2.f32 %v2573_v2 }
 0x5ab   :  { %2631 = vadd.xlane.f32.xlu0 %v4141_v43  ;;  %v2480_v4 = vpop.xlane.xlu0 %2479 }
 0x5ac   :  { %v4144_v63 = vpop.eup %3322  ;;  %v2527_v5 = vsub.f32 %v4026_v9, %v2480_v4 }
 0x5ad   :  { %v2482_v6 = vpop.xlane.xlu1 %2481  ;;  %2633 = vadd.xlane.f32.xlu1 %v4144_v63 }
 0x5ae   :  { %v2575_v12 = vmul.f32 1.442695, %v2527_v5  ;;  %v2528_v8 = vsub.f32 %v4030_v13, %v2482_v6 }
 0x5b0   :  { %3328 = vpow2.f32 %v2575_v12  ;;  %v2577_v14 = vmul.f32 1.442695, %v2528_v8 }
 0x5b2   :  { %v4149_v10 = vpop.eup %3324  ;;  %3330 = vpow2.f32 %v2577_v14 }
 0x5b3   :  { %2635 = vadd.xlane.f32.xlu0 %v4149_v10  ;;  %v2484_v28 = vpop.xlane.xlu0 %2483 }
 0x5b4   :  { %v4152_v15 = vpop.eup %3326  ;;  %v2529_v26 = vsub.f32 %v4034_v21, %v2484_v28 }
 0x5b5   :  { %v2486_v7 = vpop.xlane.xlu1 %2485  ;;  %2637 = vadd.xlane.f32.xlu1 %v4152_v15 }
 0x5b6   :  { %v2579_v9 = vmul.f32 1.442695, %v2529_v26  ;;  %v2530_v33 = vsub.f32 %v4038_v22, %v2486_v7 }
 0x5b8   :  { %3332 = vpow2.f32 %v2579_v9  ;;  %v2581_v13 = vmul.f32 1.442695, %v2530_v33 }
 0x5ba   :  { %v4157_v47 = vpop.eup %3328  ;;  %3334 = vpow2.f32 %v2581_v13 }
 0x5bb   :  { %2639 = vadd.xlane.f32.xlu0 %v4157_v47  ;;  %v2488_v16 = vpop.xlane.xlu0 %2487 }
 0x5bc   :  { %v4160_v35 = vpop.eup %3330  ;;  %v2531_v18 = vsub.f32 %v4042_v32, %v2488_v16 }
 0x5bd   :  { %v2490_v24 = vpop.xlane.xlu1 %2489  ;;  %2641 = vadd.xlane.f32.xlu1 %v4160_v35 }
 0x5be   :  { %v2583_v21 = vmul.f32 1.442695, %v2531_v18  ;;  %v2532_v19 = vsub.f32 %v4046_v40, %v2490_v24 }
 0x5c0   :  { %3336 = vpow2.f32 %v2583_v21  ;;  %v2585_v22 = vmul.f32 1.442695, %v2532_v19 }
 0x5c2   :  { %v4165_v23 = vpop.eup %3332  ;;  %3338 = vpow2.f32 %v2585_v22 }
 0x5c3   :  { %2643 = vadd.xlane.f32.xlu0 %v4165_v23  ;;  %v2492_v46 = vpop.xlane.xlu0 %2491 }
 0x5c4   :  { %v4168_v41 = vpop.eup %3334  ;;  %v2533_v36 = vsub.f32 %v4050_v49, %v2492_v46 }
 0x5c5   :  { %v2494_v44 = vpop.xlane.xlu1 %2493  ;;  %2645 = vadd.xlane.f32.xlu1 %v4168_v41 }
 0x5c6   :  { %v2587_v32 = vmul.f32 1.442695, %v2533_v36  ;;  %v2534_v45 = vsub.f32 %v4054_v50, %v2494_v44 }
 0x5c8   :  { %3340 = vpow2.f32 %v2587_v32  ;;  %v2589_v40 = vmul.f32 1.442695, %v2534_v45 }
 0x5ca   :  { %v4173_v48 = vpop.eup %3336  ;;  %3342 = vpow2.f32 %v2589_v40 }
 0x5cb   :  { %2647 = vadd.xlane.f32.xlu0 %v4173_v48  ;;  %v2496_v55 = vpop.xlane.xlu0 %2495 }
 0x5cc   :  { %v4176_v52 = vpop.eup %3338  ;;  %v2535_v56 = vsub.f32 %v4058_v61, %v2496_v55 }
 0x5cd   :  { %v2498_v54 = vpop.xlane.xlu1 %2497  ;;  %2649 = vadd.xlane.f32.xlu1 %v4176_v52 }
 0x5ce   :  { %v2591_v49 = vmul.f32 1.442695, %v2535_v56  ;;  %v2536_v58 = vsub.f32 %v4062_v62, %v2498_v54 }
 0x5d0   :  { %3344 = vpow2.f32 %v2591_v49  ;;  %v2593_v50 = vmul.f32 1.442695, %v2536_v58 }
 0x5d2   :  { %v4181_v29 = vpop.eup %3340  ;;  %3346 = vpow2.f32 %v2593_v50 }
 0x5d3   :  { %2651 = vadd.xlane.f32.xlu0 %v4181_v29  ;;  %v2500_v1 = vpop.xlane.xlu0 %2499 }
 0x5d4   :  { %v4184_v60 = vpop.eup %3342  ;;  %v2537_v2 = vsub.f32 %v4066_v11, %v2500_v1 }
 0x5d5   :  { %v2502_v4 = vpop.xlane.xlu1 %2501  ;;  %2653 = vadd.xlane.f32.xlu1 %v4184_v60 }
 0x5d6   :  { %v2595_v61 = vmul.f32 1.442695, %v2537_v2  ;;  %v2538_v5 = vsub.f32 %v4070_v37, %v2502_v4 }
 0x5d8   :  { %3348 = vpow2.f32 %v2595_v61  ;;  %v2597_v62 = vmul.f32 1.442695, %v2538_v5 }
 0x5da   :  { %v4189_v6 = vpop.eup %3344  ;;  %3350 = vpow2.f32 %v2597_v62 }
 0x5db   :  { %2655 = vadd.xlane.f32.xlu0 %v4189_v6  ;;  %v2504_v12 = vpop.xlane.xlu0 %2503 }
 0x5dc   :  { %v4192_v8 = vpop.eup %3346  ;;  %v2539_v14 = vsub.f32 %v4074_v51, %v2504_v12 }
 0x5dd   :  { %v2506_v28 = vpop.xlane.xlu1 %2505  ;;  %2657 = vadd.xlane.f32.xlu1 %v4192_v8 }
 0x5de   :  { %v2599_v11 = vmul.f32 1.442695, %v2539_v14  ;;  %v2540_v26 = vsub.f32 %v4078_v59, %v2506_v28 }
 0x5e0   :  { %3352 = vpow2.f32 %v2599_v11  ;;  %v2601_v37 = vmul.f32 1.442695, %v2540_v26 }
 0x5e2   :  { %v4197_v7 = vpop.eup %3348  ;;  %3354 = vpow2.f32 %v2601_v37 }
 0x5e3   :  { %2659 = vadd.xlane.f32.xlu0 %v4197_v7  ;;  %v2508_v9 = vpop.xlane.xlu0 %2507 }
 0x5e4   :  { %v4200_v33 = vpop.eup %3350  ;;  %v2541_v13 = vsub.f32 %v4082_v30, %v2508_v9 }
 0x5e5   :  { %v2510_v16 = vpop.xlane.xlu1 %2509  ;;  %2661 = vadd.xlane.f32.xlu1 %v4200_v33 }
 0x5e6   :  { %v2603_v51 = vmul.f32 1.442695, %v2541_v13  ;;  %v2542_v18 = vsub.f32 %v4086_v31, %v2510_v16 }
 0x5e8   :  { %3356 = vpow2.f32 %v2603_v51  ;;  %v2605_v59 = vmul.f32 1.442695, %v2542_v18 }
 0x5ea   :  { %v4205_v24 = vpop.eup %3352  ;;  %3358 = vpow2.f32 %v2605_v59 }
 0x5eb   :  { %2663 = vadd.xlane.f32.xlu0 %v4205_v24 }
 0x5ec   :  { %v4208_v21 = vpop.eup %3354 }
 0x5ed   :  { %2665 = vadd.xlane.f32.xlu1 %v4208_v21 }
 0x5f2   :  { %v4211_v19 = vpop.eup %3356 }
 0x5f3   :  { %2667 = vadd.xlane.f32.xlu0 %v4211_v19 }
 0x5f4   :  { %v4214_v30 = vpop.eup %3358 }
 0x5f5   :  { %2669 = vadd.xlane.f32.xlu1 %v4214_v30 }
 0x608   :  { %v2608_v31 = vpop.xlane.xlu0 %2607 }
 0x609   :  { %3360 = vrcp.f32 %v2608_v31 }
 0x60c   :  { %v2610_v22 = vpop.xlane.xlu1 %2609 }
 0x60d   :  { %3362 = vrcp.f32 %v2610_v22 }
 0x610   :  { %v2612_v46 = vpop.xlane.xlu0 %2611 }
 0x611   :  { %3364 = vrcp.f32 %v2612_v46 }
 0x613   :  { %v3361_v36 = vpop.eup %3360 }
 0x614   :  { %v2703_v44 = vmul.f32 %v3361_v36, %v4093_v57  ;;  %v2614_v32 = vpop.xlane.xlu1 %2613 }
 0x615   :  { %3366 = vrcp.f32 %v2614_v32 }
 0x616   :  { %2735 = vst [vmem:[#allocation10] sm:$0xff] %v2703_v44 }
 0x617   :  { %v3363_v45 = vpop.eup %3362 }
 0x618   :  { %v2704_v40 = vmul.f32 %v3363_v45, %v4097_v0  ;;  %v2616_v55 = vpop.xlane.xlu0 %2615 }
 0x619   :  { %3368 = vrcp.f32 %v2616_v55 }
 0x61a   :  { %2736 = vst [vmem:[#allocation10 + $0x8] sm:$0xff] %v2704_v40  ;;  %v2618_v56 = vpop.xlane.xlu1 %2617 }
 0x61b   :  { %v3365_v54 = vpop.eup %3364  ;;  %3370 = vrcp.f32 %v2618_v56 }
 0x61c   :  { %v2705_v49 = vmul.f32 %v3365_v54, %v4101_v17 }
 0x61e   :  { %2737 = vst [vmem:[#allocation10 + $0x10] sm:$0xff] %v2705_v49 }
 0x61f   :  { %v3367_v58 = vpop.eup %3366 }
 0x620   :  { %v2706_v50 = vmul.f32 %v3367_v58, %v4105_v25  ;;  %v2620_v1 = vpop.xlane.xlu0 %2619 }
 0x621   :  { %3372 = vrcp.f32 %v2620_v1 }
 0x622   :  { %2738 = vst [vmem:[#allocation10 + $0x18] sm:$0xff] %v2706_v50  ;;  %v2622_v57 = vpop.xlane.xlu1 %2621 }
 0x623   :  { %v3369_v2 = vpop.eup %3368  ;;  %3374 = vrcp.f32 %v2622_v57 }
 0x624   :  { %v2707_v0 = vmul.f32 %v3369_v2, %v4109_v3 }
 0x625   :  { %v3371_v4 = vpop.eup %3370 }
 0x626   :  { %2739 = vst [vmem:[#allocation10 + $0x20] sm:$0xff] %v2707_v0  ;;  %v2708_v61 = vmul.f32 %v3371_v4, %v4112_v39 }
 0x628   :  { %2740 = vst [vmem:[#allocation10 + $0x28] sm:$0xff] %v2708_v61  ;;  %v2624_v5 = vpop.xlane.xlu0 %2623 }
 0x629   :  { %3376 = vrcp.f32 %v2624_v5 }
 0x62a   :  { %v2626_v17 = vpop.xlane.xlu1 %2625 }
 0x62b   :  { %v3373_v62 = vpop.eup %3372  ;;  %3378 = vrcp.f32 %v2626_v17 }
 0x62c   :  { %v2709_v25 = vmul.f32 %v3373_v62, %v4117_v20 }
 0x62d   :  { %v3375_v12 = vpop.eup %3374 }
 0x62e   :  { %2741 = vst [vmem:[#allocation10 + $0x30] sm:$0xff] %v2709_v25  ;;  %v2710_v14 = vmul.f32 %v3375_v12, %v4120_v27 }
 0x630   :  { %2742 = vst [vmem:[#allocation10 + $0x38] sm:$0xff] %v2710_v14  ;;  %v2628_v28 = vpop.xlane.xlu0 %2627 }
 0x631   :  { %3380 = vrcp.f32 %v2628_v28 }
 0x632   :  { %v2630_v3 = vpop.xlane.xlu1 %2629 }
 0x633   :  { %v3377_v11 = vpop.eup %3376  ;;  %3382 = vrcp.f32 %v2630_v3 }
 0x634   :  { %v2711_v39 = vmul.f32 %v3377_v11, %v4125_v42 }
 0x635   :  { %v3379_v26 = vpop.eup %3378 }
 0x636   :  { %2743 = vst [vmem:[#allocation10 + $0x40] sm:$0xff] %v2711_v39  ;;  %v2712_v37 = vmul.f32 %v3379_v26, %v4128_v34 }
 0x638   :  { %2744 = vst [vmem:[#allocation10 + $0x48] sm:$0xff] %v2712_v37  ;;  %v2632_v9 = vpop.xlane.xlu0 %2631 }
 0x639   :  { %3384 = vrcp.f32 %v2632_v9 }
 0x63a   :  { %v2634_v20 = vpop.xlane.xlu1 %2633 }
 0x63b   :  { %v3381_v13 = vpop.eup %3380  ;;  %3386 = vrcp.f32 %v2634_v20 }
 0x63c   :  { %v2713_v27 = vmul.f32 %v3381_v13, %v4133_v53 }
 0x63d   :  { %v3383_v16 = vpop.eup %3382 }
 0x63e   :  { %2745 = vst [vmem:[#allocation10 + $0x50] sm:$0xff] %v2713_v27  ;;  %v2714_v51 = vmul.f32 %v3383_v16, %v4136_v38 }
 0x640   :  { %2746 = vst [vmem:[#allocation10 + $0x58] sm:$0xff] %v2714_v51  ;;  %v2636_v18 = vpop.xlane.xlu0 %2635 }
 0x641   :  { %3388 = vrcp.f32 %v2636_v18 }
 0x642   :  { %v2638_v42 = vpop.xlane.xlu1 %2637 }
 0x643   :  { %v3385_v59 = vpop.eup %3384  ;;  %3390 = vrcp.f32 %v2638_v42 }
 0x644   :  { %v2715_v34 = vmul.f32 %v3385_v59, %v4141_v43 }
 0x645   :  { %v3387_v31 = vpop.eup %3386 }
 0x646   :  { %2747 = vst [vmem:[#allocation10 + $0x60] sm:$0xff] %v2715_v34  ;;  %v2716_v22 = vmul.f32 %v3387_v31, %v4144_v63 }
 0x648   :  { %2748 = vst [vmem:[#allocation10 + $0x68] sm:$0xff] %v2716_v22  ;;  %v2640_v46 = vpop.xlane.xlu0 %2639 }
 0x649   :  { %3392 = vrcp.f32 %v2640_v46 }
 0x64a   :  { %v2642_v53 = vpop.xlane.xlu1 %2641 }
 0x64b   :  { %v3389_v36 = vpop.eup %3388  ;;  %3394 = vrcp.f32 %v2642_v53 }
 0x64c   :  { %v2717_v38 = vmul.f32 %v3389_v36, %v4149_v10 }
 0x64d   :  { %v3391_v44 = vpop.eup %3390 }
 0x64e   :  { %2749 = vst [vmem:[#allocation10 + $0x70] sm:$0xff] %v2717_v38  ;;  %v2718_v32 = vmul.f32 %v3391_v44, %v4152_v15 }
 0x650   :  { %2750 = vst [vmem:[#allocation10 + $0x78] sm:$0xff] %v2718_v32  ;;  %v2644_v45 = vpop.xlane.xlu0 %2643 }
 0x651   :  { %3396 = vrcp.f32 %v2644_v45 }
 0x652   :  { %v2646_v43 = vpop.xlane.xlu1 %2645 }
 0x653   :  { %v3393_v40 = vpop.eup %3392  ;;  %3398 = vrcp.f32 %v2646_v43 }
 0x654   :  { %v2719_v63 = vmul.f32 %v3393_v40, %v4157_v47 }
 0x655   :  { %v3395_v55 = vpop.eup %3394 }
 0x656   :  { %2751 = vst [vmem:[#allocation10 + $0x80] sm:$0xff] %v2719_v63  ;;  %v2720_v56 = vmul.f32 %v3395_v55, %v4160_v35 }
 0x658   :  { %2752 = vst [vmem:[#allocation10 + $0x88] sm:$0xff] %v2720_v56  ;;  %v2648_v54 = vpop.xlane.xlu0 %2647 }
 0x659   :  { %3400 = vrcp.f32 %v2648_v54 }
 0x65a   :  { %v2650_v10 = vpop.xlane.xlu1 %2649 }
 0x65b   :  { %v3397_v49 = vpop.eup %3396  ;;  %3402 = vrcp.f32 %v2650_v10 }
 0x65c   :  { %v2721_v15 = vmul.f32 %v3397_v49, %v4165_v23 }
 0x65d   :  { %v3399_v58 = vpop.eup %3398 }
 0x65e   :  { %2753 = vst [vmem:[#allocation10 + $0x90] sm:$0xff] %v2721_v15  ;;  %v2722_v50 = vmul.f32 %v3399_v58, %v4168_v41 }
 0x660   :  { %2754 = vst [vmem:[#allocation10 + $0x98] sm:$0xff] %v2722_v50  ;;  %v2652_v1 = vpop.xlane.xlu0 %2651 }
 0x661   :  { %3404 = vrcp.f32 %v2652_v1 }
 0x662   :  { %v2654_v47 = vpop.xlane.xlu1 %2653 }
 0x663   :  { %v3401_v57 = vpop.eup %3400  ;;  %3406 = vrcp.f32 %v2654_v47 }
 0x664   :  { %v2723_v35 = vmul.f32 %v3401_v57, %v4173_v48 }
 0x665   :  { %v3403_v2 = vpop.eup %3402 }
 0x666   :  { %2755 = vst [vmem:[#allocation10 + $0xa0] sm:$0xff] %v2723_v35  ;;  %v2724_v0 = vmul.f32 %v3403_v2, %v4176_v52 }
 0x668   :  { %2756 = vst [vmem:[#allocation10 + $0xa8] sm:$0xff] %v2724_v0  ;;  %v2656_v4 = vpop.xlane.xlu0 %2655 }
 0x669   :  { %3408 = vrcp.f32 %v2656_v4 }
 0x66a   :  { %v2658_v23 = vpop.xlane.xlu1 %2657 }
 0x66b   :  { %v3405_v61 = vpop.eup %3404  ;;  %3410 = vrcp.f32 %v2658_v23 }
 0x66c   :  { %v2725_v41 = vmul.f32 %v3405_v61, %v4181_v29 }
 0x66d   :  { %v3407_v5 = vpop.eup %3406 }
 0x66e   :  { %2757 = vst [vmem:[#allocation10 + $0xb0] sm:$0xff] %v2725_v41  ;;  %v2726_v17 = vmul.f32 %v3407_v5, %v4184_v60 }
 0x670   :  { %2758 = vst [vmem:[#allocation10 + $0xb8] sm:$0xff] %v2726_v17  ;;  %v2660_v62 = vpop.xlane.xlu0 %2659 }
 0x671   :  { %3412 = vrcp.f32 %v2660_v62 }
 0x672   :  { %v2662_v48 = vpop.xlane.xlu1 %2661 }
 0x673   :  { %v3409_v25 = vpop.eup %3408  ;;  %3414 = vrcp.f32 %v2662_v48 }
 0x674   :  { %v2727_v52 = vmul.f32 %v3409_v25, %v4189_v6 }
 0x675   :  { %v3411_v12 = vpop.eup %3410 }
 0x676   :  { %2759 = vst [vmem:[#allocation10 + $0xc0] sm:$0xff] %v2727_v52  ;;  %v2728_v14 = vmul.f32 %v3411_v12, %v4192_v8 }
 0x678   :  { %2760 = vst [vmem:[#allocation10 + $0xc8] sm:$0xff] %v2728_v14  ;;  %v2664_v28 = vpop.xlane.xlu0 %2663 }
 0x679   :  { %3416 = vrcp.f32 %v2664_v28 }
 0x67a   :  { %v2666_v29 = vpop.xlane.xlu1 %2665 }
 0x67b   :  { %v3413_v3 = vpop.eup %3412  ;;  %3418 = vrcp.f32 %v2666_v29 }
 0x67c   :  { %v2729_v60 = vmul.f32 %v3413_v3, %v4197_v7 }
 0x67d   :  { %v3415_v11 = vpop.eup %3414 }
 0x67e   :  { %2761 = vst [vmem:[#allocation10 + $0xd0] sm:$0xff] %v2729_v60  ;;  %v2730_v39 = vmul.f32 %v3415_v11, %v4200_v33 }
 0x680   :  { %2762 = vst [vmem:[#allocation10 + $0xd8] sm:$0xff] %v2730_v39  ;;  %v2668_v26 = vpop.xlane.xlu0 %2667 }
 0x681   :  { %3420 = vrcp.f32 %v2668_v26 }
 0x682   :  { %v2670_v6 = vpop.xlane.xlu1 %2669 }
 0x683   :  { %v3417_v37 = vpop.eup %3416  ;;  %3422 = vrcp.f32 %v2670_v6 }
 0x684   :  { %v2731_v8 = vmul.f32 %v3417_v37, %v4205_v24 }
 0x685   :  { %v3419_v9 = vpop.eup %3418 }
 0x686   :  { %2763 = vst [vmem:[#allocation10 + $0xe0] sm:$0xff] %v2731_v8  ;;  %v2732_v20 = vmul.f32 %v3419_v9, %v4208_v21 }
 0x688   :  { %2764 = vst [vmem:[#allocation10 + $0xe8] sm:$0xff] %v2732_v20 }
 0x68b   :  { %v3421_v13 = vpop.eup %3420 }
 0x68c   :  { %v2733_v7 = vmul.f32 %v3421_v13, %v4211_v19 }
 0x68d   :  { %v3423_v27 = vpop.eup %3422 }
 0x68e   :  { %2765 = vst [vmem:[#allocation10 + $0xf0] sm:$0xff] %v2733_v7  ;;  %v2734_v33 = vmul.f32 %v3423_v27, %v4214_v30 }
 0x690   :  { %2766 = vst [vmem:[#allocation10 + $0xf8] sm:$0xff] %v2734_v33 }
 0x691   :  { %3523 = shalt.err (!%p3520_p8)
}
 0x692   :  { %s3524_s27 = scalar_lea.hbm %s4269_s5, 4096 }
 0x693   :  { %p3525_p9 = scmp.ne.s32.totalorder %s4269_s5, %s3524_s27  ;;  %p3528_p10 = scmp.lt.u32.totalorder %s3524_s27, %s4269_s5 }
 0x695   :  { %p3530_p11 = pnand %p3528_p10, %p3525_p9 }
 0x697   :  { %3533 = shalt.err (!%p3530_p11)
}
 0x698   :  { %2778 = dma.vmem_to_hbm [thread:$0]  %s2773_s23, 4096, %s4269_s5, [#allocation4], %s3543_s28, %s3543_s28, %s3544_s29  }
 0x699   :  { %3540 = dma.done.wait [#allocation4], 4096  }
 0x69a   :  { %3541 = vsyncadd [#allocation4], 4294963200 }
 0x69b   :  { %2782 = vsyncpa [#allocation3], 1 }
 0x69c   :  { %2783 = vsyncpa [#allocation6], 1 }
 0x69d   :  { %2784 = vsyncpa [#allocation9], 1 }
 0x69e   :  { %2785 = vsyncpa [#allocation4], 1 }

</bundles_post_ra>
